<compile_context>
chip_gen: v7x
topology: tpu7x:2x2x1
jax: 0.10.0
libtpu: 0.0.40
codegen_flags: <defaults>
</compile_context>

<pallas_src>
import functools

import jax
import jax.numpy as jnp
import numpy as np
from jax.experimental import pallas as pl
from jax.experimental.pallas import tpu as pltpu

EPS = 1e-5  # PyTorch nn.LayerNorm default eps


# ----------------------------------------------------------------------------
# Tiling / VMEM heuristics
# ----------------------------------------------------------------------------
def _pick_batch_tile(N, L, E):
    """Batch rows per grid step.

    Constraints:
      * TB divides N and (TB == N or TB % 8 == 0)  -> legal second-minor block dim.
      * per-step activation + scratch + score VMEM stays under a budget that
        leaves room for the resident weights on every generation (v7x: 64 MiB/TC).
    Largest fitting TB wins.
    """
    budget = 24 * 1024 * 1024

    def step_bytes(tb):
        r = tb * L
        act = 4 * r * E * 4          # double-buffered input + output blocks (f32)
        scr = 5 * r * E * 4          # xb (f32) + q/k/v/oh scratch (<= f32)
        sco = 2 * tb * L * L * 4     # score + prob tile (f32)
        return act + scr + sco

    cands = [d for d in range(1, N + 1)
             if N % d == 0 and (d == N or d % 8 == 0)]
    fits = [d for d in cands if step_bytes(d) <= budget]
    if fits:
        return max(fits)
    # TODO(synk): for very long L add a kv-tiled (flash-style online-softmax)
    # path; for v7x prefer an even number of grid steps so both TensorCores
    # get batch work on the "parallel" axis.
    return min(cands)


def _vmem_limit_bytes(TB, L, E, flat_params):
    """Explicit scoped-VMEM request: resident weights + per-step activations."""
    weight_bytes = sum(int(p.size) * p.dtype.itemsize for p in flat_params)
    r = TB * L
    act = 4 * r * E * 4              # double-buffered in + out blocks (f32)
    scr = 5 * r * E * 4              # xb + q/k/v/oh scratch (counted as f32)
    sco = 4 * TB * L * L * 4         # live score / prob / intermediate tiles
    need = weight_bytes + act + scr + sco + (4 << 20)
    try:
        cap = int(pltpu.get_tpu_info().vmem_capacity_bytes)
    except Exception:
        cap = 64 << 20               # conservative: v7x per-TensorCore VMEM
    # TODO(synk): if `need` exceeds `cap` (very large E, esp. on v7x), K-tile
    # the (E,E) projection weights over an "arbitrary" grid axis instead of
    # holding them fully resident.
    return int(min(cap, max(need, 32 << 20)))


# ----------------------------------------------------------------------------
# Pallas kernel
# ----------------------------------------------------------------------------
def _make_kernel(TB, L, E, H, cdt):
    D = E // H
    R = TB * L
    approx = cdt != jnp.float32  # exact divide on the f32 reference path

    def layer_norm(x, g, b):
        # x: (R, E) f32; g, b: (1, E) f32
        mu = jnp.mean(x, axis=-1, keepdims=True)
        xc = x - mu
        var = jnp.mean(xc * xc, axis=-1, keepdims=True)
        return xc * jax.lax.rsqrt(var + EPS) * g + b

    def kernel(x_ref,
               ln1g, ln1b, wq1, bq1, wk1, bk1, wv1, bv1, wo1, bo1,
               ln2g, ln2b, wq2, bq2, wk2, bk2, wv2, bv2, wo2, bo2,
               o_ref,
               xb_scr, q_scr, k_scr, v_scr, oh_scr):

        def mha(xn, wq, bq, wk, bk, wv, bv, wo, bo):
            # xn: (R, E) f32.  wq/wk/wv/wo: (E, E) [cdt]; biases (1, E) f32.
            xm = xn.astype(cdt)
            # Fused, lane-dense projections (scale already folded into wq/bq).
            q_scr[...] = (jnp.dot(xm, wq[...], preferred_element_type=jnp.float32)
                          + bq[...]).astype(cdt)
            k_scr[...] = (jnp.dot(xm, wk[...], preferred_element_type=jnp.float32)
                          + bk[...]).astype(cdt)
            v_scr[...] = (jnp.dot(xm, wv[...], preferred_element_type=jnp.float32)
                          + bv[...]).astype(cdt)
            # Per-head attention.  Static unroll: per-head temporaries are small
            # and q/k/v/concat-out live in VMEM scratch (bounded live ranges);
            # a fori_loop would force dynamic lane-offset slicing of the scratch.
            for h in range(H):
                sl = slice(h * D, (h + 1) * D)          # static lane slice
                qb = q_scr[:, sl].reshape(TB, L, D)
                kb = k_scr[:, sl].reshape(TB, L, D)
                vb = v_scr[:, sl].reshape(TB, L, D)
                s = jnp.einsum("bqd,bkd->bqk", qb, kb,
                               preferred_element_type=jnp.float32)   # (TB,L,L)
                s = s - jnp.max(s, axis=-1, keepdims=True)
                p = jnp.exp(s)
                denom = jnp.sum(p, axis=-1, keepdims=True)           # (TB,L,1)
                o = jnp.einsum("bqk,bkd->bqd", p.astype(cdt), vb,
                               preferred_element_type=jnp.float32)   # (TB,L,D)
                # Normalize the D-wide PV output (EUP reciprocal) instead of
                # dividing the L-wide probabilities.
                o = o * pl.reciprocal(denom, approx=approx)
                oh_scr[:, sl] = o.reshape(R, D).astype(cdt)
            # Single lane-dense output projection over concatenated heads.
            return (jnp.dot(oh_scr[...], wo[...],
                            preferred_element_type=jnp.float32) + bo[...])

        # (L, TB, E) block -> (b, l)-ordered rows; reorder stays in VMEM
        # (replaces the old host-side HBM transposes).
        for b in range(TB):
            xb_scr[b] = x_ref[:, b, :]
        x = xb_scr[...].reshape(R, E)

        # --- block 1: x = x + attn1(LN1(x)) ---
        h1 = layer_norm(x, ln1g[...], ln1b[...])
        x = x + mha(h1, wq1, bq1, wk1, bk1, wv1, bv1, wo1, bo1)

        # --- block 2: x = relu(LN2(x)); x = x + attn2(x) ---
        h2 = jnp.maximum(layer_norm(x, ln2g[...], ln2b[...]), 0.0)
        x = h2 + mha(h2, wq2, bq2, wk2, bk2, wv2, bv2, wo2, bo2)

        # back to (L, TB, E) layout
        y = x.reshape(TB, L, E)
        for b in range(TB):
            o_ref[:, b, :] = y[b].astype(o_ref.dtype)

    return kernel


# ----------------------------------------------------------------------------
# One-time host-side weight preparation (call once, reuse across steps)
# ----------------------------------------------------------------------------
def prepare_params(params, *, num_heads, compute_dtype=jnp.bfloat16):
    """Splits the fused in-projection, folds 1/sqrt(D) into Wq/bq, transposes
    everything for `x @ W`, and casts the matmul operands to `compute_dtype`
    (LN params and biases stay f32).  Do this once and reuse the result."""
    E = params["w_in1"].shape[1]
    D = E // num_heads
    scale = 1.0 / float(np.sqrt(D))

    def prep_layer(w_in, b_in, w_out, b_out, ln_g, ln_b):
        wq = (jnp.transpose(w_in[:E]) * scale).astype(compute_dtype)
        wk = jnp.transpose(w_in[E:2 * E]).astype(compute_dtype)
        wv = jnp.transpose(w_in[2 * E:]).astype(compute_dtype)
        bq = (b_in[:E] * scale).reshape(1, E).astype(jnp.float32)
        bk = b_in[E:2 * E].reshape(1, E).astype(jnp.float32)
        bv = b_in[2 * E:].reshape(1, E).astype(jnp.float32)
        wo = jnp.transpose(w_out).astype(compute_dtype)
        bo = b_out.reshape(1, E).astype(jnp.float32)
        return (ln_g.reshape(1, E).astype(jnp.float32),
                ln_b.reshape(1, E).astype(jnp.float32),
                wq, bq, wk, bk, wv, bv, wo, bo)

    return (prep_layer(params["w_in1"], params["b_in1"], params["w_out1"],
                       params["b_out1"], params["ln1_g"], params["ln1_b"])
            + prep_layer(params["w_in2"], params["b_in2"], params["w_out2"],
                         params["b_out2"], params["ln2_g"], params["ln2_b"]))


# ----------------------------------------------------------------------------
# Wrapper
# ----------------------------------------------------------------------------
@functools.partial(jax.jit, static_argnames=("num_heads",))
def attention_block(x, prepped, *, num_heads):
    """x: (L, N, E) float32 — same layout as the PyTorch module (batch_first=False).
    `prepped` is the output of prepare_params(); its weight dtype (bf16 by
    default) selects the MXU operand dtype, accumulation stays f32."""
    x = x.astype(jnp.float32)
    L, N, E = x.shape
    H = num_heads
    TB = _pick_batch_tile(N, L, E)
    R = TB * L
    flat = tuple(prepped)
    cdt = flat[2].dtype          # compute dtype, taken from the prepared Wq1

    # Activations: pipelined (L, TB, E) blocks over the batch grid.
    # Weights: unblocked VMEM residents (single copy, no double-buffering).
    x_spec = pl.BlockSpec((L, TB, E), lambda b: (0, b, 0))
    w_specs = [pl.BlockSpec(memory_space=pltpu.MemorySpace.VMEM) for _ in flat]
    out_spec = pl.BlockSpec((L, TB, E), lambda b: (0, b, 0))

    scratch = [
        pltpu.VMEM((TB, L, E), jnp.float32),   # (b,l)-reordered activations
        pltpu.VMEM((R, E), cdt),               # q
        pltpu.VMEM((R, E), cdt),               # k
        pltpu.VMEM((R, E), cdt),               # v
        pltpu.VMEM((R, E), cdt),               # concatenated head outputs
    ]

    rows = N * L
    flops = 16 * rows * E * E + 8 * N * L * L * E
    transcendentals = 2 * H * N * L * L
    bytes_accessed = 2 * rows * E * 4 + sum(int(p.size) * p.dtype.itemsize
                                            for p in flat)

    return pl.pallas_call(
        _make_kernel(TB, L, E, H, cdt),
        out_shape=jax.ShapeDtypeStruct((L, N, E), jnp.float32),
        grid_spec=pltpu.PrefetchScalarGridSpec(
            num_scalar_prefetch=0,
            grid=(N // TB,),
            in_specs=[x_spec] + w_specs,
            out_specs=out_spec,
            scratch_shapes=scratch),
        compiler_params=pltpu.CompilerParams(
            dimension_semantics=("parallel",),
            vmem_limit_bytes=_vmem_limit_bytes(TB, L, E, flat)),
        cost_estimate=pl.CostEstimate(
            flops=int(flops),
            transcendentals=int(transcendentals),
            bytes_accessed=int(bytes_accessed)),
        input_output_aliases={0: 0},
    )(x, *flat)


# ----------------------------------------------------------------------------
# Pure-JAX reference (mirrors PyTorch nn.MultiheadAttention / nn.LayerNorm math)
# ----------------------------------------------------------------------------
def _ref_mha(x, w_in, b_in, w_out, b_out, H):
    L, N, E = x.shape
    D = E // H
    qkv = jnp.einsum("lne,fe->lnf", x, w_in) + b_in
    q, k, v = jnp.split(qkv, 3, axis=-1)

    def heads(t):
        return t.reshape(L, N, H, D).transpose(1, 2, 0, 3)  # (N, H, L, D)

    qh, kh, vh = heads(q), heads(k), heads(v)
    s = jnp.einsum("nhqd,nhkd->nhqk", qh, kh) / np.sqrt(D)
    p = jax.nn.softmax(s, axis=-1)
    o = jnp.einsum("nhqk,nhkd->nhqd", p, vh)
    o = o.transpose(2, 0, 1, 3).reshape(L, N, E)
    return jnp.einsum("lne,fe->lnf", o, w_out) + b_out


def _ref_block(x, params, H):
    def ln(t, g, b):
        mu = t.mean(-1, keepdims=True)
        var = ((t - mu) ** 2).mean(-1, keepdims=True)
        return (t - mu) / jnp.sqrt(var + EPS) * g + b

    inp = ln(x, params["ln1_g"], params["ln1_b"])
    x = x + _ref_mha(inp, params["w_in1"], params["b_in1"],
                     params["w_out1"], params["b_out1"], H)
    x = ln(x, params["ln2_g"], params["ln2_b"])
    x = jax.nn.relu(x)
    x = x + _ref_mha(x, params["w_in2"], params["b_in2"],
                     params["w_out2"], params["b_out2"], H)
    return x


# ----------------------------------------------------------------------------
# Main
# ----------------------------------------------------------------------------
if __name__ == "__main__":
    L, N, E, H = 8, 4, 32, 4  # seq, batch, embed_dim, num_heads

    key = jax.random.PRNGKey(0)
    keys = jax.random.split(key, 16)

    def rnd(k, shape, s=0.1):
        return (s * jax.random.normal(k, shape)).astype(jnp.float32)

    params = {
        "ln1_g": 1.0 + rnd(keys[0], (E,)), "ln1_b": rnd(keys[1], (E,)),
        "w_in1": rnd(keys[2], (3 * E, E)), "b_in1": rnd(keys[3], (3 * E,)),
        "w_out1": rnd(keys[4], (E, E)),    "b_out1": rnd(keys[5], (E,)),
        "ln2_g": 1.0 + rnd(keys[6], (E,)), "ln2_b": rnd(keys[7], (E,)),
        "w_in2": rnd(keys[8], (3 * E, E)), "b_in2": rnd(keys[9], (3 * E,)),
        "w_out2": rnd(keys[10], (E, E)),   "b_out2": rnd(keys[11], (E,)),
    }

    x = jax.random.normal(keys[12], (L, N, E), dtype=jnp.float32)

    ref = jax.block_until_ready(_ref_block(x, params, H))

    # f32 path: matches the PyTorch math tightly.
    prepped_f32 = prepare_params(params, num_heads=H, compute_dtype=jnp.float32)
    out_f32 = jax.block_until_ready(attention_block(x, prepped_f32, num_heads=H))
    np.testing.assert_allclose(np.asarray(out_f32), np.asarray(ref),
                               rtol=5e-5, atol=5e-5)

    # Default bf16-operand path (f32 accumulation): mixed-precision tolerance.
    prepped_bf16 = prepare_params(params, num_heads=H)
    out_bf16 = jax.block_until_ready(attention_block(x, prepped_bf16, num_heads=H))
    np.testing.assert_allclose(np.asarray(out_bf16), np.asarray(ref),
                               rtol=3e-2, atol=3e-2)

    print("KERNEL_OK")
</pallas_src>

<mosaic_0001>
module attributes {stable_mosaic.version = 11 : i64} {
  func.func @kernel(%arg0: i32, %arg1: memref<8x4x32xf32, #tpu.memory_space<vmem>>, %arg2: memref<1x32xf32, #tpu.memory_space<vmem>>, %arg3: memref<1x32xf32, #tpu.memory_space<vmem>>, %arg4: memref<32x32xf32, #tpu.memory_space<vmem>>, %arg5: memref<1x32xf32, #tpu.memory_space<vmem>>, %arg6: memref<32x32xf32, #tpu.memory_space<vmem>>, %arg7: memref<1x32xf32, #tpu.memory_space<vmem>>, %arg8: memref<32x32xf32, #tpu.memory_space<vmem>>, %arg9: memref<1x32xf32, #tpu.memory_space<vmem>>, %arg10: memref<32x32xf32, #tpu.memory_space<vmem>>, %arg11: memref<1x32xf32, #tpu.memory_space<vmem>>, %arg12: memref<1x32xf32, #tpu.memory_space<vmem>>, %arg13: memref<1x32xf32, #tpu.memory_space<vmem>>, %arg14: memref<32x32xf32, #tpu.memory_space<vmem>>, %arg15: memref<1x32xf32, #tpu.memory_space<vmem>>, %arg16: memref<32x32xf32, #tpu.memory_space<vmem>>, %arg17: memref<1x32xf32, #tpu.memory_space<vmem>>, %arg18: memref<32x32xf32, #tpu.memory_space<vmem>>, %arg19: memref<1x32xf32, #tpu.memory_space<vmem>>, %arg20: memref<32x32xf32, #tpu.memory_space<vmem>>, %arg21: memref<1x32xf32, #tpu.memory_space<vmem>>, %arg22: memref<8x4x32xf32, #tpu.memory_space<vmem>>, %arg23: memref<4x8x32xf32, #tpu.memory_space<vmem>>, %arg24: memref<32x32xf32, #tpu.memory_space<vmem>>, %arg25: memref<32x32xf32, #tpu.memory_space<vmem>>, %arg26: memref<32x32xf32, #tpu.memory_space<vmem>>, %arg27: memref<32x32xf32, #tpu.memory_space<vmem>>) attributes {dimension_semantics = [#tpu.dimension_semantics<parallel>], iteration_bounds = array<i64: 1>, scalar_prefetch = 0 : i64, scratch_operands = 5 : i64, tpu.core_type = #tpu.core_type<tc>, window_params = [{transform_indices = @transform_0, window_bounds = array<i64: 8, 4, 32>}, {pipeline_mode = #tpu.pipeline_mode<synchronous>, transform_indices = @transform_1, window_bounds = array<i64: 1, 32>}, {pipeline_mode = #tpu.pipeline_mode<synchronous>, transform_indices = @transform_2, window_bounds = array<i64: 1, 32>}, {pipeline_mode = #tpu.pipeline_mode<synchronous>, transform_indices = @transform_3, window_bounds = array<i64: 32, 32>}, {pipeline_mode = #tpu.pipeline_mode<synchronous>, transform_indices = @transform_4, window_bounds = array<i64: 1, 32>}, {pipeline_mode = #tpu.pipeline_mode<synchronous>, transform_indices = @transform_5, window_bounds = array<i64: 32, 32>}, {pipeline_mode = #tpu.pipeline_mode<synchronous>, transform_indices = @transform_6, window_bounds = array<i64: 1, 32>}, {pipeline_mode = #tpu.pipeline_mode<synchronous>, transform_indices = @transform_7, window_bounds = array<i64: 32, 32>}, {pipeline_mode = #tpu.pipeline_mode<synchronous>, transform_indices = @transform_8, window_bounds = array<i64: 1, 32>}, {pipeline_mode = #tpu.pipeline_mode<synchronous>, transform_indices = @transform_9, window_bounds = array<i64: 32, 32>}, {pipeline_mode = #tpu.pipeline_mode<synchronous>, transform_indices = @transform_10, window_bounds = array<i64: 1, 32>}, {pipeline_mode = #tpu.pipeline_mode<synchronous>, transform_indices = @transform_11, window_bounds = array<i64: 1, 32>}, {pipeline_mode = #tpu.pipeline_mode<synchronous>, transform_indices = @transform_12, window_bounds = array<i64: 1, 32>}, {pipeline_mode = #tpu.pipeline_mode<synchronous>, transform_indices = @transform_13, window_bounds = array<i64: 32, 32>}, {pipeline_mode = #tpu.pipeline_mode<synchronous>, transform_indices = @transform_14, window_bounds = array<i64: 1, 32>}, {pipeline_mode = #tpu.pipeline_mode<synchronous>, transform_indices = @transform_15, window_bounds = array<i64: 32, 32>}, {pipeline_mode = #tpu.pipeline_mode<synchronous>, transform_indices = @transform_16, window_bounds = array<i64: 1, 32>}, {pipeline_mode = #tpu.pipeline_mode<synchronous>, transform_indices = @transform_17, window_bounds = array<i64: 32, 32>}, {pipeline_mode = #tpu.pipeline_mode<synchronous>, transform_indices = @transform_18, window_bounds = array<i64: 1, 32>}, {pipeline_mode = #tpu.pipeline_mode<synchronous>, transform_indices = @transform_19, window_bounds = array<i64: 32, 32>}, {pipeline_mode = #tpu.pipeline_mode<synchronous>, transform_indices = @transform_20, window_bounds = array<i64: 1, 32>}, {transform_indices = @transform_21, window_bounds = array<i64: 8, 4, 32>}]} {
    %c0 = arith.constant 0 : index
    %c0_0 = arith.constant 0 : index
    %c0_1 = arith.constant 0 : index
    %0 = vector.load %arg1[%c0, %c0_0, %c0_1] : memref<8x4x32xf32, #tpu.memory_space<vmem>>, vector<8x1x32xf32>
    %1 = vector.shape_cast %0 : vector<8x1x32xf32> to vector<8x32xf32>
    %c0_2 = arith.constant 0 : index
    %c0_3 = arith.constant 0 : index
    %c0_4 = arith.constant 0 : index
    %2 = vector.load %arg23[%c0_2, %c0_3, %c0_4] : memref<4x8x32xf32, #tpu.memory_space<vmem>>, vector<1x8x32xf32>
    %3 = vector.shape_cast %2 : vector<1x8x32xf32> to vector<8x32xf32>
    %4 = vector.shape_cast %1 : vector<8x32xf32> to vector<1x8x32xf32>
    tpu.vector_store %arg23[%c0_2, %c0_3, %c0_4], %4 {strides = array<i32>} : memref<4x8x32xf32, #tpu.memory_space<vmem>>, vector<1x8x32xf32>,
    %c0_5 = arith.constant 0 : index
    %c1 = arith.constant 1 : index
    %c0_6 = arith.constant 0 : index
    %5 = vector.load %arg1[%c0_5, %c1, %c0_6] : memref<8x4x32xf32, #tpu.memory_space<vmem>>, vector<8x1x32xf32>
    %6 = vector.shape_cast %5 : vector<8x1x32xf32> to vector<8x32xf32>
    %c1_7 = arith.constant 1 : index
    %c0_8 = arith.constant 0 : index
    %c0_9 = arith.constant 0 : index
    %7 = vector.load %arg23[%c1_7, %c0_8, %c0_9] : memref<4x8x32xf32, #tpu.memory_space<vmem>>, vector<1x8x32xf32>
    %8 = vector.shape_cast %7 : vector<1x8x32xf32> to vector<8x32xf32>
    %9 = vector.shape_cast %6 : vector<8x32xf32> to vector<1x8x32xf32>
    tpu.vector_store %arg23[%c1_7, %c0_8, %c0_9], %9 {strides = array<i32>} : memref<4x8x32xf32, #tpu.memory_space<vmem>>, vector<1x8x32xf32>,
    %c0_10 = arith.constant 0 : index
    %c2 = arith.constant 2 : index
    %c0_11 = arith.constant 0 : index
    %10 = vector.load %arg1[%c0_10, %c2, %c0_11] : memref<8x4x32xf32, #tpu.memory_space<vmem>>, vector<8x1x32xf32>
    %11 = vector.shape_cast %10 : vector<8x1x32xf32> to vector<8x32xf32>
    %c2_12 = arith.constant 2 : index
    %c0_13 = arith.constant 0 : index
    %c0_14 = arith.constant 0 : index
    %12 = vector.load %arg23[%c2_12, %c0_13, %c0_14] : memref<4x8x32xf32, #tpu.memory_space<vmem>>, vector<1x8x32xf32>
    %13 = vector.shape_cast %12 : vector<1x8x32xf32> to vector<8x32xf32>
    %14 = vector.shape_cast %11 : vector<8x32xf32> to vector<1x8x32xf32>
    tpu.vector_store %arg23[%c2_12, %c0_13, %c0_14], %14 {strides = array<i32>} : memref<4x8x32xf32, #tpu.memory_space<vmem>>, vector<1x8x32xf32>,
    %c0_15 = arith.constant 0 : index
    %c3 = arith.constant 3 : index
    %c0_16 = arith.constant 0 : index
    %15 = vector.load %arg1[%c0_15, %c3, %c0_16] : memref<8x4x32xf32, #tpu.memory_space<vmem>>, vector<8x1x32xf32>
    %16 = vector.shape_cast %15 : vector<8x1x32xf32> to vector<8x32xf32>
    %c3_17 = arith.constant 3 : index
    %c0_18 = arith.constant 0 : index
    %c0_19 = arith.constant 0 : index
    %17 = vector.load %arg23[%c3_17, %c0_18, %c0_19] : memref<4x8x32xf32, #tpu.memory_space<vmem>>, vector<1x8x32xf32>
    %18 = vector.shape_cast %17 : vector<1x8x32xf32> to vector<8x32xf32>
    %19 = vector.shape_cast %16 : vector<8x32xf32> to vector<1x8x32xf32>
    tpu.vector_store %arg23[%c3_17, %c0_18, %c0_19], %19 {strides = array<i32>} : memref<4x8x32xf32, #tpu.memory_space<vmem>>, vector<1x8x32xf32>,
    %c0_20 = arith.constant 0 : index
    %c0_21 = arith.constant 0 : index
    %c0_22 = arith.constant 0 : index
    %20 = vector.load %arg23[%c0_20, %c0_21, %c0_22] : memref<4x8x32xf32, #tpu.memory_space<vmem>>, vector<4x8x32xf32>
    %21 = vector.shape_cast %20 : vector<4x8x32xf32> to vector<32x32xf32>
    %c0_23 = arith.constant 0 : index
    %c0_24 = arith.constant 0 : index
    %22 = vector.load %arg2[%c0_23, %c0_24] : memref<1x32xf32, #tpu.memory_space<vmem>>, vector<1x32xf32>
    %c0_25 = arith.constant 0 : index
    %c0_26 = arith.constant 0 : index
    %23 = vector.load %arg3[%c0_25, %c0_26] : memref<1x32xf32, #tpu.memory_space<vmem>>, vector<1x32xf32>
    %cst = arith.constant dense<0.000000e+00> : vector<32xf32>
    %24 = vector.multi_reduction <add>, %21, %cst [1] : vector<32x32xf32> to vector<32xf32>
    %25 = vector.shape_cast %24 : vector<32xf32> to vector<32x1xf32>
    %cst_27 = arith.constant 3.200000e+01 : f32
    %26 = vector.broadcast %cst_27 : f32 to vector<32x1xf32>
    %27 = arith.divf %25, %26 : vector<32x1xf32>
    %28 = vector.broadcast %27 : vector<32x1xf32> to vector<32x32xf32>
    %29 = arith.subf %21, %28 : vector<32x32xf32>
    %30 = arith.mulf %29, %29 : vector<32x32xf32>
    %cst_28 = arith.constant dense<0.000000e+00> : vector<32xf32>
    %31 = vector.multi_reduction <add>, %30, %cst_28 [1] : vector<32x32xf32> to vector<32xf32>
    %32 = vector.shape_cast %31 : vector<32xf32> to vector<32x1xf32>
    %cst_29 = arith.constant 3.200000e+01 : f32
    %33 = vector.broadcast %cst_29 : f32 to vector<32x1xf32>
    %34 = arith.divf %32, %33 : vector<32x1xf32>
    %cst_30 = arith.constant 9.99999974E-6 : f32
    %35 = vector.broadcast %cst_30 : f32 to vector<32x1xf32>
    %36 = arith.addf %34, %35 : vector<32x1xf32>
    %37 = math.rsqrt %36 : vector<32x1xf32>
    %38 = vector.broadcast %37 : vector<32x1xf32> to vector<32x32xf32>
    %39 = arith.mulf %29, %38 : vector<32x32xf32>
    %40 = vector.broadcast %22 : vector<1x32xf32> to vector<32x32xf32>
    %41 = arith.mulf %39, %40 : vector<32x32xf32>
    %42 = vector.broadcast %23 : vector<1x32xf32> to vector<32x32xf32>
    %43 = arith.addf %41, %42 : vector<32x32xf32>
    %c0_31 = arith.constant 0 : index
    %c0_32 = arith.constant 0 : index
    %44 = vector.load %arg4[%c0_31, %c0_32] : memref<32x32xf32, #tpu.memory_space<vmem>>, vector<32x32xf32>
    %cst_33 = arith.constant dense<0.000000e+00> : vector<32x32xf32>
    %45 = tpu.matmul %43, %44, %cst_33 {dimension_numbers = #tpu.dot_dimension_numbers<[1], [0], [0], [1], [0, 0, 1, 1], [], []>} : vector<32x32xf32>, vector<32x32xf32>, vector<32x32xf32> -> vector<32x32xf32>
    %c0_34 = arith.constant 0 : index
    %c0_35 = arith.constant 0 : index
    %46 = vector.load %arg5[%c0_34, %c0_35] : memref<1x32xf32, #tpu.memory_space<vmem>>, vector<1x32xf32>
    %47 = vector.broadcast %46 : vector<1x32xf32> to vector<32x32xf32>
    %48 = arith.addf %45, %47 : vector<32x32xf32>
    %c0_36 = arith.constant 0 : index
    %c0_37 = arith.constant 0 : index
    %49 = vector.load %arg24[%c0_36, %c0_37] : memref<32x32xf32, #tpu.memory_space<vmem>>, vector<32x32xf32>
    tpu.vector_store %arg24[%c0_36, %c0_37], %48 {strides = array<i32>} : memref<32x32xf32, #tpu.memory_space<vmem>>, vector<32x32xf32>,
    %c0_38 = arith.constant 0 : index
    %c0_39 = arith.constant 0 : index
    %50 = vector.load %arg6[%c0_38, %c0_39] : memref<32x32xf32, #tpu.memory_space<vmem>>, vector<32x32xf32>
    %cst_40 = arith.constant dense<0.000000e+00> : vector<32x32xf32>
    %51 = tpu.matmul %43, %50, %cst_40 {dimension_numbers = #tpu.dot_dimension_numbers<[1], [0], [0], [1], [0, 0, 1, 1], [], []>} : vector<32x32xf32>, vector<32x32xf32>, vector<32x32xf32> -> vector<32x32xf32>
    %c0_41 = arith.constant 0 : index
    %c0_42 = arith.constant 0 : index
    %52 = vector.load %arg7[%c0_41, %c0_42] : memref<1x32xf32, #tpu.memory_space<vmem>>, vector<1x32xf32>
    %53 = vector.broadcast %52 : vector<1x32xf32> to vector<32x32xf32>
    %54 = arith.addf %51, %53 : vector<32x32xf32>
    %c0_43 = arith.constant 0 : index
    %c0_44 = arith.constant 0 : index
    %55 = vector.load %arg25[%c0_43, %c0_44] : memref<32x32xf32, #tpu.memory_space<vmem>>, vector<32x32xf32>
    tpu.vector_store %arg25[%c0_43, %c0_44], %54 {strides = array<i32>} : memref<32x32xf32, #tpu.memory_space<vmem>>, vector<32x32xf32>,
    %c0_45 = arith.constant 0 : index
    %c0_46 = arith.constant 0 : index
    %56 = vector.load %arg8[%c0_45, %c0_46] : memref<32x32xf32, #tpu.memory_space<vmem>>, vector<32x32xf32>
    %cst_47 = arith.constant dense<0.000000e+00> : vector<32x32xf32>
    %57 = tpu.matmul %43, %56, %cst_47 {dimension_numbers = #tpu.dot_dimension_numbers<[1], [0], [0], [1], [0, 0, 1, 1], [], []>} : vector<32x32xf32>, vector<32x32xf32>, vector<32x32xf32> -> vector<32x32xf32>
    %c0_48 = arith.constant 0 : index
    %c0_49 = arith.constant 0 : index
    %58 = vector.load %arg9[%c0_48, %c0_49] : memref<1x32xf32, #tpu.memory_space<vmem>>, vector<1x32xf32>
    %59 = vector.broadcast %58 : vector<1x32xf32> to vector<32x32xf32>
    %60 = arith.addf %57, %59 : vector<32x32xf32>
    %c0_50 = arith.constant 0 : index
    %c0_51 = arith.constant 0 : index
    %61 = vector.load %arg26[%c0_50, %c0_51] : memref<32x32xf32, #tpu.memory_space<vmem>>, vector<32x32xf32>
    tpu.vector_store %arg26[%c0_50, %c0_51], %60 {strides = array<i32>} : memref<32x32xf32, #tpu.memory_space<vmem>>, vector<32x32xf32>,
    %c0_52 = arith.constant 0 : index
    %c0_53 = arith.constant 0 : index
    %62 = vector.load %arg24[%c0_52, %c0_53] : memref<32x32xf32, #tpu.memory_space<vmem>>, vector<32x8xf32>
    %63 = vector.shape_cast %62 : vector<32x8xf32> to vector<4x8x8xf32>
    %c0_54 = arith.constant 0 : index
    %c0_55 = arith.constant 0 : index
    %64 = vector.load %arg25[%c0_54, %c0_55] : memref<32x32xf32, #tpu.memory_space<vmem>>, vector<32x8xf32>
    %65 = vector.shape_cast %64 : vector<32x8xf32> to vector<4x8x8xf32>
    %c0_56 = arith.constant 0 : index
    %c0_57 = arith.constant 0 : index
    %66 = vector.load %arg26[%c0_56, %c0_57] : memref<32x32xf32, #tpu.memory_space<vmem>>, vector<32x8xf32>
    %67 = vector.shape_cast %66 : vector<32x8xf32> to vector<4x8x8xf32>
    "tpu.trace_start"() <{level = 10 : i32, message = "bqd,bkd->bqk"}> : () -> ()
    %cst_58 = arith.constant dense<0.000000e+00> : vector<4x8x8xf32>
    %68 = tpu.matmul %63, %65, %cst_58 {dimension_numbers = #tpu.dot_dimension_numbers<[2], [2], [1], [1], [0, 0, 0, 1, 1, 1], [0], [0]>} : vector<4x8x8xf32>, vector<4x8x8xf32>, vector<4x8x8xf32> -> vector<4x8x8xf32>
    "tpu.trace_stop"() : () -> ()
    %cst_59 = arith.constant dense<0xFF800000> : vector<4x8xf32>
    %69 = vector.multi_reduction <maximumf>, %68, %cst_59 [2] : vector<4x8x8xf32> to vector<4x8xf32>
    %70 = vector.shape_cast %69 : vector<4x8xf32> to vector<4x8x1xf32>
    %71 = vector.broadcast %70 : vector<4x8x1xf32> to vector<4x8x8xf32>
    %72 = arith.subf %68, %71 : vector<4x8x8xf32>
    %73 = math.exp %72 : vector<4x8x8xf32>
    %cst_60 = arith.constant dense<0.000000e+00> : vector<4x8xf32>
    %74 = vector.multi_reduction <add>, %73, %cst_60 [2] : vector<4x8x8xf32> to vector<4x8xf32>
    %75 = vector.shape_cast %74 : vector<4x8xf32> to vector<4x8x1xf32>
    "tpu.trace_start"() <{level = 10 : i32, message = "bqk,bkd->bqd"}> : () -> ()
    %cst_61 = arith.constant dense<0.000000e+00> : vector<4x8x8xf32>
    %76 = tpu.matmul %73, %67, %cst_61 {dimension_numbers = #tpu.dot_dimension_numbers<[2], [1], [1], [2], [0, 0, 0, 1, 1, 2], [0], [0]>} : vector<4x8x8xf32>, vector<4x8x8xf32>, vector<4x8x8xf32> -> vector<4x8x8xf32>
    "tpu.trace_stop"() : () -> ()
    %77 = tpu.reciprocal %75 : vector<4x8x1xf32> -> vector<4x8x1xf32>
    %78 = vector.broadcast %77 : vector<4x8x1xf32> to vector<4x8x8xf32>
    %79 = arith.mulf %76, %78 : vector<4x8x8xf32>
    %80 = vector.shape_cast %79 : vector<4x8x8xf32> to vector<32x8xf32>
    %c0_62 = arith.constant 0 : index
    %c0_63 = arith.constant 0 : index
    %81 = vector.load %arg27[%c0_62, %c0_63] : memref<32x32xf32, #tpu.memory_space<vmem>>, vector<32x8xf32>
    tpu.vector_store %arg27[%c0_62, %c0_63], %80 {strides = array<i32>} : memref<32x32xf32, #tpu.memory_space<vmem>>, vector<32x8xf32>,
    %c0_64 = arith.constant 0 : index
    %c8 = arith.constant 8 : index
    %82 = vector.load %arg24[%c0_64, %c8] : memref<32x32xf32, #tpu.memory_space<vmem>>, vector<32x8xf32>
    %83 = vector.shape_cast %82 : vector<32x8xf32> to vector<4x8x8xf32>
    %c0_65 = arith.constant 0 : index
    %c8_66 = arith.constant 8 : index
    %84 = vector.load %arg25[%c0_65, %c8_66] : memref<32x32xf32, #tpu.memory_space<vmem>>, vector<32x8xf32>
    %85 = vector.shape_cast %84 : vector<32x8xf32> to vector<4x8x8xf32>
    %c0_67 = arith.constant 0 : index
    %c8_68 = arith.constant 8 : index
    %86 = vector.load %arg26[%c0_67, %c8_68] : memref<32x32xf32, #tpu.memory_space<vmem>>, vector<32x8xf32>
    %87 = vector.shape_cast %86 : vector<32x8xf32> to vector<4x8x8xf32>
    "tpu.trace_start"() <{level = 10 : i32, message = "bqd,bkd->bqk"}> : () -> ()
    %cst_69 = arith.constant dense<0.000000e+00> : vector<4x8x8xf32>
    %88 = tpu.matmul %83, %85, %cst_69 {dimension_numbers = #tpu.dot_dimension_numbers<[2], [2], [1], [1], [0, 0, 0, 1, 1, 1], [0], [0]>} : vector<4x8x8xf32>, vector<4x8x8xf32>, vector<4x8x8xf32> -> vector<4x8x8xf32>
    "tpu.trace_stop"() : () -> ()
    %cst_70 = arith.constant dense<0xFF800000> : vector<4x8xf32>
    %89 = vector.multi_reduction <maximumf>, %88, %cst_70 [2] : vector<4x8x8xf32> to vector<4x8xf32>
    %90 = vector.shape_cast %89 : vector<4x8xf32> to vector<4x8x1xf32>
    %91 = vector.broadcast %90 : vector<4x8x1xf32> to vector<4x8x8xf32>
    %92 = arith.subf %88, %91 : vector<4x8x8xf32>
    %93 = math.exp %92 : vector<4x8x8xf32>
    %cst_71 = arith.constant dense<0.000000e+00> : vector<4x8xf32>
    %94 = vector.multi_reduction <add>, %93, %cst_71 [2] : vector<4x8x8xf32> to vector<4x8xf32>
    %95 = vector.shape_cast %94 : vector<4x8xf32> to vector<4x8x1xf32>
    "tpu.trace_start"() <{level = 10 : i32, message = "bqk,bkd->bqd"}> : () -> ()
    %cst_72 = arith.constant dense<0.000000e+00> : vector<4x8x8xf32>
    %96 = tpu.matmul %93, %87, %cst_72 {dimension_numbers = #tpu.dot_dimension_numbers<[2], [1], [1], [2], [0, 0, 0, 1, 1, 2], [0], [0]>} : vector<4x8x8xf32>, vector<4x8x8xf32>, vector<4x8x8xf32> -> vector<4x8x8xf32>
    "tpu.trace_stop"() : () -> ()
    %97 = tpu.reciprocal %95 : vector<4x8x1xf32> -> vector<4x8x1xf32>
    %98 = vector.broadcast %97 : vector<4x8x1xf32> to vector<4x8x8xf32>
    %99 = arith.mulf %96, %98 : vector<4x8x8xf32>
    %100 = vector.shape_cast %99 : vector<4x8x8xf32> to vector<32x8xf32>
    %c0_73 = arith.constant 0 : index
    %c8_74 = arith.constant 8 : index
    %101 = vector.load %arg27[%c0_73, %c8_74] : memref<32x32xf32, #tpu.memory_space<vmem>>, vector<32x8xf32>
    tpu.vector_store %arg27[%c0_73, %c8_74], %100 {strides = array<i32>} : memref<32x32xf32, #tpu.memory_space<vmem>>, vector<32x8xf32>,
    %c0_75 = arith.constant 0 : index
    %c16 = arith.constant 16 : index
    %102 = vector.load %arg24[%c0_75, %c16] : memref<32x32xf32, #tpu.memory_space<vmem>>, vector<32x8xf32>
    %103 = vector.shape_cast %102 : vector<32x8xf32> to vector<4x8x8xf32>
    %c0_76 = arith.constant 0 : index
    %c16_77 = arith.constant 16 : index
    %104 = vector.load %arg25[%c0_76, %c16_77] : memref<32x32xf32, #tpu.memory_space<vmem>>, vector<32x8xf32>
    %105 = vector.shape_cast %104 : vector<32x8xf32> to vector<4x8x8xf32>
    %c0_78 = arith.constant 0 : index
    %c16_79 = arith.constant 16 : index
    %106 = vector.load %arg26[%c0_78, %c16_79] : memref<32x32xf32, #tpu.memory_space<vmem>>, vector<32x8xf32>
    %107 = vector.shape_cast %106 : vector<32x8xf32> to vector<4x8x8xf32>
    "tpu.trace_start"() <{level = 10 : i32, message = "bqd,bkd->bqk"}> : () -> ()
    %cst_80 = arith.constant dense<0.000000e+00> : vector<4x8x8xf32>
    %108 = tpu.matmul %103, %105, %cst_80 {dimension_numbers = #tpu.dot_dimension_numbers<[2], [2], [1], [1], [0, 0, 0, 1, 1, 1], [0], [0]>} : vector<4x8x8xf32>, vector<4x8x8xf32>, vector<4x8x8xf32> -> vector<4x8x8xf32>
    "tpu.trace_stop"() : () -> ()
    %cst_81 = arith.constant dense<0xFF800000> : vector<4x8xf32>
    %109 = vector.multi_reduction <maximumf>, %108, %cst_81 [2] : vector<4x8x8xf32> to vector<4x8xf32>
    %110 = vector.shape_cast %109 : vector<4x8xf32> to vector<4x8x1xf32>
    %111 = vector.broadcast %110 : vector<4x8x1xf32> to vector<4x8x8xf32>
    %112 = arith.subf %108, %111 : vector<4x8x8xf32>
    %113 = math.exp %112 : vector<4x8x8xf32>
    %cst_82 = arith.constant dense<0.000000e+00> : vector<4x8xf32>
    %114 = vector.multi_reduction <add>, %113, %cst_82 [2] : vector<4x8x8xf32> to vector<4x8xf32>
    %115 = vector.shape_cast %114 : vector<4x8xf32> to vector<4x8x1xf32>
    "tpu.trace_start"() <{level = 10 : i32, message = "bqk,bkd->bqd"}> : () -> ()
    %cst_83 = arith.constant dense<0.000000e+00> : vector<4x8x8xf32>
    %116 = tpu.matmul %113, %107, %cst_83 {dimension_numbers = #tpu.dot_dimension_numbers<[2], [1], [1], [2], [0, 0, 0, 1, 1, 2], [0], [0]>} : vector<4x8x8xf32>, vector<4x8x8xf32>, vector<4x8x8xf32> -> vector<4x8x8xf32>
    "tpu.trace_stop"() : () -> ()
    %117 = tpu.reciprocal %115 : vector<4x8x1xf32> -> vector<4x8x1xf32>
    %118 = vector.broadcast %117 : vector<4x8x1xf32> to vector<4x8x8xf32>
    %119 = arith.mulf %116, %118 : vector<4x8x8xf32>
    %120 = vector.shape_cast %119 : vector<4x8x8xf32> to vector<32x8xf32>
    %c0_84 = arith.constant 0 : index
    %c16_85 = arith.constant 16 : index
    %121 = vector.load %arg27[%c0_84, %c16_85] : memref<32x32xf32, #tpu.memory_space<vmem>>, vector<32x8xf32>
    tpu.vector_store %arg27[%c0_84, %c16_85], %120 {strides = array<i32>} : memref<32x32xf32, #tpu.memory_space<vmem>>, vector<32x8xf32>,
    %c0_86 = arith.constant 0 : index
    %c24 = arith.constant 24 : index
    %122 = vector.load %arg24[%c0_86, %c24] : memref<32x32xf32, #tpu.memory_space<vmem>>, vector<32x8xf32>
    %123 = vector.shape_cast %122 : vector<32x8xf32> to vector<4x8x8xf32>
    %c0_87 = arith.constant 0 : index
    %c24_88 = arith.constant 24 : index
    %124 = vector.load %arg25[%c0_87, %c24_88] : memref<32x32xf32, #tpu.memory_space<vmem>>, vector<32x8xf32>
    %125 = vector.shape_cast %124 : vector<32x8xf32> to vector<4x8x8xf32>
    %c0_89 = arith.constant 0 : index
    %c24_90 = arith.constant 24 : index
    %126 = vector.load %arg26[%c0_89, %c24_90] : memref<32x32xf32, #tpu.memory_space<vmem>>, vector<32x8xf32>
    %127 = vector.shape_cast %126 : vector<32x8xf32> to vector<4x8x8xf32>
    "tpu.trace_start"() <{level = 10 : i32, message = "bqd,bkd->bqk"}> : () -> ()
    %cst_91 = arith.constant dense<0.000000e+00> : vector<4x8x8xf32>
    %128 = tpu.matmul %123, %125, %cst_91 {dimension_numbers = #tpu.dot_dimension_numbers<[2], [2], [1], [1], [0, 0, 0, 1, 1, 1], [0], [0]>} : vector<4x8x8xf32>, vector<4x8x8xf32>, vector<4x8x8xf32> -> vector<4x8x8xf32>
    "tpu.trace_stop"() : () -> ()
    %cst_92 = arith.constant dense<0xFF800000> : vector<4x8xf32>
    %129 = vector.multi_reduction <maximumf>, %128, %cst_92 [2] : vector<4x8x8xf32> to vector<4x8xf32>
    %130 = vector.shape_cast %129 : vector<4x8xf32> to vector<4x8x1xf32>
    %131 = vector.broadcast %130 : vector<4x8x1xf32> to vector<4x8x8xf32>
    %132 = arith.subf %128, %131 : vector<4x8x8xf32>
    %133 = math.exp %132 : vector<4x8x8xf32>
    %cst_93 = arith.constant dense<0.000000e+00> : vector<4x8xf32>
    %134 = vector.multi_reduction <add>, %133, %cst_93 [2] : vector<4x8x8xf32> to vector<4x8xf32>
    %135 = vector.shape_cast %134 : vector<4x8xf32> to vector<4x8x1xf32>
    "tpu.trace_start"() <{level = 10 : i32, message = "bqk,bkd->bqd"}> : () -> ()
    %cst_94 = arith.constant dense<0.000000e+00> : vector<4x8x8xf32>
    %136 = tpu.matmul %133, %127, %cst_94 {dimension_numbers = #tpu.dot_dimension_numbers<[2], [1], [1], [2], [0, 0, 0, 1, 1, 2], [0], [0]>} : vector<4x8x8xf32>, vector<4x8x8xf32>, vector<4x8x8xf32> -> vector<4x8x8xf32>
    "tpu.trace_stop"() : () -> ()
    %137 = tpu.reciprocal %135 : vector<4x8x1xf32> -> vector<4x8x1xf32>
    %138 = vector.broadcast %137 : vector<4x8x1xf32> to vector<4x8x8xf32>
    %139 = arith.mulf %136, %138 : vector<4x8x8xf32>
    %140 = vector.shape_cast %139 : vector<4x8x8xf32> to vector<32x8xf32>
    %c0_95 = arith.constant 0 : index
    %c24_96 = arith.constant 24 : index
    %141 = vector.load %arg27[%c0_95, %c24_96] : memref<32x32xf32, #tpu.memory_space<vmem>>, vector<32x8xf32>
    tpu.vector_store %arg27[%c0_95, %c24_96], %140 {strides = array<i32>} : memref<32x32xf32, #tpu.memory_space<vmem>>, vector<32x8xf32>,
    %c0_97 = arith.constant 0 : index
    %c0_98 = arith.constant 0 : index
    %142 = vector.load %arg27[%c0_97, %c0_98] : memref<32x32xf32, #tpu.memory_space<vmem>>, vector<32x32xf32>
    %c0_99 = arith.constant 0 : index
    %c0_100 = arith.constant 0 : index
    %143 = vector.load %arg10[%c0_99, %c0_100] : memref<32x32xf32, #tpu.memory_space<vmem>>, vector<32x32xf32>
    %cst_101 = arith.constant dense<0.000000e+00> : vector<32x32xf32>
    %144 = tpu.matmul %142, %143, %cst_101 {dimension_numbers = #tpu.dot_dimension_numbers<[1], [0], [0], [1], [0, 0, 1, 1], [], []>} : vector<32x32xf32>, vector<32x32xf32>, vector<32x32xf32> -> vector<32x32xf32>
    %c0_102 = arith.constant 0 : index
    %c0_103 = arith.constant 0 : index
    %145 = vector.load %arg11[%c0_102, %c0_103] : memref<1x32xf32, #tpu.memory_space<vmem>>, vector<1x32xf32>
    %146 = vector.broadcast %145 : vector<1x32xf32> to vector<32x32xf32>
    %147 = arith.addf %144, %146 : vector<32x32xf32>
    %148 = arith.addf %21, %147 : vector<32x32xf32>
    %c0_104 = arith.constant 0 : index
    %c0_105 = arith.constant 0 : index
    %149 = vector.load %arg12[%c0_104, %c0_105] : memref<1x32xf32, #tpu.memory_space<vmem>>, vector<1x32xf32>
    %c0_106 = arith.constant 0 : index
    %c0_107 = arith.constant 0 : index
    %150 = vector.load %arg13[%c0_106, %c0_107] : memref<1x32xf32, #tpu.memory_space<vmem>>, vector<1x32xf32>
    %cst_108 = arith.constant dense<0.000000e+00> : vector<32xf32>
    %151 = vector.multi_reduction <add>, %148, %cst_108 [1] : vector<32x32xf32> to vector<32xf32>
    %152 = vector.shape_cast %151 : vector<32xf32> to vector<32x1xf32>
    %cst_109 = arith.constant 3.200000e+01 : f32
    %153 = vector.broadcast %cst_109 : f32 to vector<32x1xf32>
    %154 = arith.divf %152, %153 : vector<32x1xf32>
    %155 = vector.broadcast %154 : vector<32x1xf32> to vector<32x32xf32>
    %156 = arith.subf %148, %155 : vector<32x32xf32>
    %157 = arith.mulf %156, %156 : vector<32x32xf32>
    %cst_110 = arith.constant dense<0.000000e+00> : vector<32xf32>
    %158 = vector.multi_reduction <add>, %157, %cst_110 [1] : vector<32x32xf32> to vector<32xf32>
    %159 = vector.shape_cast %158 : vector<32xf32> to vector<32x1xf32>
    %cst_111 = arith.constant 3.200000e+01 : f32
    %160 = vector.broadcast %cst_111 : f32 to vector<32x1xf32>
    %161 = arith.divf %159, %160 : vector<32x1xf32>
    %cst_112 = arith.constant 9.99999974E-6 : f32
    %162 = vector.broadcast %cst_112 : f32 to vector<32x1xf32>
    %163 = arith.addf %161, %162 : vector<32x1xf32>
    %164 = math.rsqrt %163 : vector<32x1xf32>
    %165 = vector.broadcast %164 : vector<32x1xf32> to vector<32x32xf32>
    %166 = arith.mulf %156, %165 : vector<32x32xf32>
    %167 = vector.broadcast %149 : vector<1x32xf32> to vector<32x32xf32>
    %168 = arith.mulf %166, %167 : vector<32x32xf32>
    %169 = vector.broadcast %150 : vector<1x32xf32> to vector<32x32xf32>
    %170 = arith.addf %168, %169 : vector<32x32xf32>
    %cst_113 = arith.constant 0.000000e+00 : f32
    %171 = vector.broadcast %cst_113 : f32 to vector<32x32xf32>
    %172 = arith.maximumf %170, %171 : vector<32x32xf32>
    %c0_114 = arith.constant 0 : index
    %c0_115 = arith.constant 0 : index
    %173 = vector.load %arg14[%c0_114, %c0_115] : memref<32x32xf32, #tpu.memory_space<vmem>>, vector<32x32xf32>
    %cst_116 = arith.constant dense<0.000000e+00> : vector<32x32xf32>
    %174 = tpu.matmul %172, %173, %cst_116 {dimension_numbers = #tpu.dot_dimension_numbers<[1], [0], [0], [1], [0, 0, 1, 1], [], []>} : vector<32x32xf32>, vector<32x32xf32>, vector<32x32xf32> -> vector<32x32xf32>
    %c0_117 = arith.constant 0 : index
    %c0_118 = arith.constant 0 : index
    %175 = vector.load %arg15[%c0_117, %c0_118] : memref<1x32xf32, #tpu.memory_space<vmem>>, vector<1x32xf32>
    %176 = vector.broadcast %175 : vector<1x32xf32> to vector<32x32xf32>
    %177 = arith.addf %174, %176 : vector<32x32xf32>
    %c0_119 = arith.constant 0 : index
    %c0_120 = arith.constant 0 : index
    %178 = vector.load %arg24[%c0_119, %c0_120] : memref<32x32xf32, #tpu.memory_space<vmem>>, vector<32x32xf32>
    tpu.vector_store %arg24[%c0_119, %c0_120], %177 {strides = array<i32>} : memref<32x32xf32, #tpu.memory_space<vmem>>, vector<32x32xf32>,
    %c0_121 = arith.constant 0 : index
    %c0_122 = arith.constant 0 : index
    %179 = vector.load %arg16[%c0_121, %c0_122] : memref<32x32xf32, #tpu.memory_space<vmem>>, vector<32x32xf32>
    %cst_123 = arith.constant dense<0.000000e+00> : vector<32x32xf32>
    %180 = tpu.matmul %172, %179, %cst_123 {dimension_numbers = #tpu.dot_dimension_numbers<[1], [0], [0], [1], [0, 0, 1, 1], [], []>} : vector<32x32xf32>, vector<32x32xf32>, vector<32x32xf32> -> vector<32x32xf32>
    %c0_124 = arith.constant 0 : index
    %c0_125 = arith.constant 0 : index
    %181 = vector.load %arg17[%c0_124, %c0_125] : memref<1x32xf32, #tpu.memory_space<vmem>>, vector<1x32xf32>
    %182 = vector.broadcast %181 : vector<1x32xf32> to vector<32x32xf32>
    %183 = arith.addf %180, %182 : vector<32x32xf32>
    %c0_126 = arith.constant 0 : index
    %c0_127 = arith.constant 0 : index
    %184 = vector.load %arg25[%c0_126, %c0_127] : memref<32x32xf32, #tpu.memory_space<vmem>>, vector<32x32xf32>
    tpu.vector_store %arg25[%c0_126, %c0_127], %183 {strides = array<i32>} : memref<32x32xf32, #tpu.memory_space<vmem>>, vector<32x32xf32>,
    %c0_128 = arith.constant 0 : index
    %c0_129 = arith.constant 0 : index
    %185 = vector.load %arg18[%c0_128, %c0_129] : memref<32x32xf32, #tpu.memory_space<vmem>>, vector<32x32xf32>
    %cst_130 = arith.constant dense<0.000000e+00> : vector<32x32xf32>
    %186 = tpu.matmul %172, %185, %cst_130 {dimension_numbers = #tpu.dot_dimension_numbers<[1], [0], [0], [1], [0, 0, 1, 1], [], []>} : vector<32x32xf32>, vector<32x32xf32>, vector<32x32xf32> -> vector<32x32xf32>
    %c0_131 = arith.constant 0 : index
    %c0_132 = arith.constant 0 : index
    %187 = vector.load %arg19[%c0_131, %c0_132] : memref<1x32xf32, #tpu.memory_space<vmem>>, vector<1x32xf32>
    %188 = vector.broadcast %187 : vector<1x32xf32> to vector<32x32xf32>
    %189 = arith.addf %186, %188 : vector<32x32xf32>
    %c0_133 = arith.constant 0 : index
    %c0_134 = arith.constant 0 : index
    %190 = vector.load %arg26[%c0_133, %c0_134] : memref<32x32xf32, #tpu.memory_space<vmem>>, vector<32x32xf32>
    tpu.vector_store %arg26[%c0_133, %c0_134], %189 {strides = array<i32>} : memref<32x32xf32, #tpu.memory_space<vmem>>, vector<32x32xf32>,
    %c0_135 = arith.constant 0 : index
    %c0_136 = arith.constant 0 : index
    %191 = vector.load %arg24[%c0_135, %c0_136] : memref<32x32xf32, #tpu.memory_space<vmem>>, vector<32x8xf32>
    %192 = vector.shape_cast %191 : vector<32x8xf32> to vector<4x8x8xf32>
    %c0_137 = arith.constant 0 : index
    %c0_138 = arith.constant 0 : index
    %193 = vector.load %arg25[%c0_137, %c0_138] : memref<32x32xf32, #tpu.memory_space<vmem>>, vector<32x8xf32>
    %194 = vector.shape_cast %193 : vector<32x8xf32> to vector<4x8x8xf32>
    %c0_139 = arith.constant 0 : index
    %c0_140 = arith.constant 0 : index
    %195 = vector.load %arg26[%c0_139, %c0_140] : memref<32x32xf32, #tpu.memory_space<vmem>>, vector<32x8xf32>
    %196 = vector.shape_cast %195 : vector<32x8xf32> to vector<4x8x8xf32>
    "tpu.trace_start"() <{level = 10 : i32, message = "bqd,bkd->bqk"}> : () -> ()
    %cst_141 = arith.constant dense<0.000000e+00> : vector<4x8x8xf32>
    %197 = tpu.matmul %192, %194, %cst_141 {dimension_numbers = #tpu.dot_dimension_numbers<[2], [2], [1], [1], [0, 0, 0, 1, 1, 1], [0], [0]>} : vector<4x8x8xf32>, vector<4x8x8xf32>, vector<4x8x8xf32> -> vector<4x8x8xf32>
    "tpu.trace_stop"() : () -> ()
    %cst_142 = arith.constant dense<0xFF800000> : vector<4x8xf32>
    %198 = vector.multi_reduction <maximumf>, %197, %cst_142 [2] : vector<4x8x8xf32> to vector<4x8xf32>
    %199 = vector.shape_cast %198 : vector<4x8xf32> to vector<4x8x1xf32>
    %200 = vector.broadcast %199 : vector<4x8x1xf32> to vector<4x8x8xf32>
    %201 = arith.subf %197, %200 : vector<4x8x8xf32>
    %202 = math.exp %201 : vector<4x8x8xf32>
    %cst_143 = arith.constant dense<0.000000e+00> : vector<4x8xf32>
    %203 = vector.multi_reduction <add>, %202, %cst_143 [2] : vector<4x8x8xf32> to vector<4x8xf32>
    %204 = vector.shape_cast %203 : vector<4x8xf32> to vector<4x8x1xf32>
    "tpu.trace_start"() <{level = 10 : i32, message = "bqk,bkd->bqd"}> : () -> ()
    %cst_144 = arith.constant dense<0.000000e+00> : vector<4x8x8xf32>
    %205 = tpu.matmul %202, %196, %cst_144 {dimension_numbers = #tpu.dot_dimension_numbers<[2], [1], [1], [2], [0, 0, 0, 1, 1, 2], [0], [0]>} : vector<4x8x8xf32>, vector<4x8x8xf32>, vector<4x8x8xf32> -> vector<4x8x8xf32>
    "tpu.trace_stop"() : () -> ()
    %206 = tpu.reciprocal %204 : vector<4x8x1xf32> -> vector<4x8x1xf32>
    %207 = vector.broadcast %206 : vector<4x8x1xf32> to vector<4x8x8xf32>
    %208 = arith.mulf %205, %207 : vector<4x8x8xf32>
    %209 = vector.shape_cast %208 : vector<4x8x8xf32> to vector<32x8xf32>
    %c0_145 = arith.constant 0 : index
    %c0_146 = arith.constant 0 : index
    %210 = vector.load %arg27[%c0_145, %c0_146] : memref<32x32xf32, #tpu.memory_space<vmem>>, vector<32x8xf32>
    tpu.vector_store %arg27[%c0_145, %c0_146], %209 {strides = array<i32>} : memref<32x32xf32, #tpu.memory_space<vmem>>, vector<32x8xf32>,
    %c0_147 = arith.constant 0 : index
    %c8_148 = arith.constant 8 : index
    %211 = vector.load %arg24[%c0_147, %c8_148] : memref<32x32xf32, #tpu.memory_space<vmem>>, vector<32x8xf32>
    %212 = vector.shape_cast %211 : vector<32x8xf32> to vector<4x8x8xf32>
    %c0_149 = arith.constant 0 : index
    %c8_150 = arith.constant 8 : index
    %213 = vector.load %arg25[%c0_149, %c8_150] : memref<32x32xf32, #tpu.memory_space<vmem>>, vector<32x8xf32>
    %214 = vector.shape_cast %213 : vector<32x8xf32> to vector<4x8x8xf32>
    %c0_151 = arith.constant 0 : index
    %c8_152 = arith.constant 8 : index
    %215 = vector.load %arg26[%c0_151, %c8_152] : memref<32x32xf32, #tpu.memory_space<vmem>>, vector<32x8xf32>
    %216 = vector.shape_cast %215 : vector<32x8xf32> to vector<4x8x8xf32>
    "tpu.trace_start"() <{level = 10 : i32, message = "bqd,bkd->bqk"}> : () -> ()
    %cst_153 = arith.constant dense<0.000000e+00> : vector<4x8x8xf32>
    %217 = tpu.matmul %212, %214, %cst_153 {dimension_numbers = #tpu.dot_dimension_numbers<[2], [2], [1], [1], [0, 0, 0, 1, 1, 1], [0], [0]>} : vector<4x8x8xf32>, vector<4x8x8xf32>, vector<4x8x8xf32> -> vector<4x8x8xf32>
    "tpu.trace_stop"() : () -> ()
    %cst_154 = arith.constant dense<0xFF800000> : vector<4x8xf32>
    %218 = vector.multi_reduction <maximumf>, %217, %cst_154 [2] : vector<4x8x8xf32> to vector<4x8xf32>
    %219 = vector.shape_cast %218 : vector<4x8xf32> to vector<4x8x1xf32>
    %220 = vector.broadcast %219 : vector<4x8x1xf32> to vector<4x8x8xf32>
    %221 = arith.subf %217, %220 : vector<4x8x8xf32>
    %222 = math.exp %221 : vector<4x8x8xf32>
    %cst_155 = arith.constant dense<0.000000e+00> : vector<4x8xf32>
    %223 = vector.multi_reduction <add>, %222, %cst_155 [2] : vector<4x8x8xf32> to vector<4x8xf32>
    %224 = vector.shape_cast %223 : vector<4x8xf32> to vector<4x8x1xf32>
    "tpu.trace_start"() <{level = 10 : i32, message = "bqk,bkd->bqd"}> : () -> ()
    %cst_156 = arith.constant dense<0.000000e+00> : vector<4x8x8xf32>
    %225 = tpu.matmul %222, %216, %cst_156 {dimension_numbers = #tpu.dot_dimension_numbers<[2], [1], [1], [2], [0, 0, 0, 1, 1, 2], [0], [0]>} : vector<4x8x8xf32>, vector<4x8x8xf32>, vector<4x8x8xf32> -> vector<4x8x8xf32>
    "tpu.trace_stop"() : () -> ()
    %226 = tpu.reciprocal %224 : vector<4x8x1xf32> -> vector<4x8x1xf32>
    %227 = vector.broadcast %226 : vector<4x8x1xf32> to vector<4x8x8xf32>
    %228 = arith.mulf %225, %227 : vector<4x8x8xf32>
    %229 = vector.shape_cast %228 : vector<4x8x8xf32> to vector<32x8xf32>
    %c0_157 = arith.constant 0 : index
    %c8_158 = arith.constant 8 : index
    %230 = vector.load %arg27[%c0_157, %c8_158] : memref<32x32xf32, #tpu.memory_space<vmem>>, vector<32x8xf32>
    tpu.vector_store %arg27[%c0_157, %c8_158], %229 {strides = array<i32>} : memref<32x32xf32, #tpu.memory_space<vmem>>, vector<32x8xf32>,
    %c0_159 = arith.constant 0 : index
    %c16_160 = arith.constant 16 : index
    %231 = vector.load %arg24[%c0_159, %c16_160] : memref<32x32xf32, #tpu.memory_space<vmem>>, vector<32x8xf32>
    %232 = vector.shape_cast %231 : vector<32x8xf32> to vector<4x8x8xf32>
    %c0_161 = arith.constant 0 : index
    %c16_162 = arith.constant 16 : index
    %233 = vector.load %arg25[%c0_161, %c16_162] : memref<32x32xf32, #tpu.memory_space<vmem>>, vector<32x8xf32>
    %234 = vector.shape_cast %233 : vector<32x8xf32> to vector<4x8x8xf32>
    %c0_163 = arith.constant 0 : index
    %c16_164 = arith.constant 16 : index
    %235 = vector.load %arg26[%c0_163, %c16_164] : memref<32x32xf32, #tpu.memory_space<vmem>>, vector<32x8xf32>
    %236 = vector.shape_cast %235 : vector<32x8xf32> to vector<4x8x8xf32>
    "tpu.trace_start"() <{level = 10 : i32, message = "bqd,bkd->bqk"}> : () -> ()
    %cst_165 = arith.constant dense<0.000000e+00> : vector<4x8x8xf32>
    %237 = tpu.matmul %232, %234, %cst_165 {dimension_numbers = #tpu.dot_dimension_numbers<[2], [2], [1], [1], [0, 0, 0, 1, 1, 1], [0], [0]>} : vector<4x8x8xf32>, vector<4x8x8xf32>, vector<4x8x8xf32> -> vector<4x8x8xf32>
    "tpu.trace_stop"() : () -> ()
    %cst_166 = arith.constant dense<0xFF800000> : vector<4x8xf32>
    %238 = vector.multi_reduction <maximumf>, %237, %cst_166 [2] : vector<4x8x8xf32> to vector<4x8xf32>
    %239 = vector.shape_cast %238 : vector<4x8xf32> to vector<4x8x1xf32>
    %240 = vector.broadcast %239 : vector<4x8x1xf32> to vector<4x8x8xf32>
    %241 = arith.subf %237, %240 : vector<4x8x8xf32>
    %242 = math.exp %241 : vector<4x8x8xf32>
    %cst_167 = arith.constant dense<0.000000e+00> : vector<4x8xf32>
    %243 = vector.multi_reduction <add>, %242, %cst_167 [2] : vector<4x8x8xf32> to vector<4x8xf32>
    %244 = vector.shape_cast %243 : vector<4x8xf32> to vector<4x8x1xf32>
    "tpu.trace_start"() <{level = 10 : i32, message = "bqk,bkd->bqd"}> : () -> ()
    %cst_168 = arith.constant dense<0.000000e+00> : vector<4x8x8xf32>
    %245 = tpu.matmul %242, %236, %cst_168 {dimension_numbers = #tpu.dot_dimension_numbers<[2], [1], [1], [2], [0, 0, 0, 1, 1, 2], [0], [0]>} : vector<4x8x8xf32>, vector<4x8x8xf32>, vector<4x8x8xf32> -> vector<4x8x8xf32>
    "tpu.trace_stop"() : () -> ()
    %246 = tpu.reciprocal %244 : vector<4x8x1xf32> -> vector<4x8x1xf32>
    %247 = vector.broadcast %246 : vector<4x8x1xf32> to vector<4x8x8xf32>
    %248 = arith.mulf %245, %247 : vector<4x8x8xf32>
    %249 = vector.shape_cast %248 : vector<4x8x8xf32> to vector<32x8xf32>
    %c0_169 = arith.constant 0 : index
    %c16_170 = arith.constant 16 : index
    %250 = vector.load %arg27[%c0_169, %c16_170] : memref<32x32xf32, #tpu.memory_space<vmem>>, vector<32x8xf32>
    tpu.vector_store %arg27[%c0_169, %c16_170], %249 {strides = array<i32>} : memref<32x32xf32, #tpu.memory_space<vmem>>, vector<32x8xf32>,
    %c0_171 = arith.constant 0 : index
    %c24_172 = arith.constant 24 : index
    %251 = vector.load %arg24[%c0_171, %c24_172] : memref<32x32xf32, #tpu.memory_space<vmem>>, vector<32x8xf32>
    %252 = vector.shape_cast %251 : vector<32x8xf32> to vector<4x8x8xf32>
    %c0_173 = arith.constant 0 : index
    %c24_174 = arith.constant 24 : index
    %253 = vector.load %arg25[%c0_173, %c24_174] : memref<32x32xf32, #tpu.memory_space<vmem>>, vector<32x8xf32>
    %254 = vector.shape_cast %253 : vector<32x8xf32> to vector<4x8x8xf32>
    %c0_175 = arith.constant 0 : index
    %c24_176 = arith.constant 24 : index
    %255 = vector.load %arg26[%c0_175, %c24_176] : memref<32x32xf32, #tpu.memory_space<vmem>>, vector<32x8xf32>
    %256 = vector.shape_cast %255 : vector<32x8xf32> to vector<4x8x8xf32>
    "tpu.trace_start"() <{level = 10 : i32, message = "bqd,bkd->bqk"}> : () -> ()
    %cst_177 = arith.constant dense<0.000000e+00> : vector<4x8x8xf32>
    %257 = tpu.matmul %252, %254, %cst_177 {dimension_numbers = #tpu.dot_dimension_numbers<[2], [2], [1], [1], [0, 0, 0, 1, 1, 1], [0], [0]>} : vector<4x8x8xf32>, vector<4x8x8xf32>, vector<4x8x8xf32> -> vector<4x8x8xf32>
    "tpu.trace_stop"() : () -> ()
    %cst_178 = arith.constant dense<0xFF800000> : vector<4x8xf32>
    %258 = vector.multi_reduction <maximumf>, %257, %cst_178 [2] : vector<4x8x8xf32> to vector<4x8xf32>
    %259 = vector.shape_cast %258 : vector<4x8xf32> to vector<4x8x1xf32>
    %260 = vector.broadcast %259 : vector<4x8x1xf32> to vector<4x8x8xf32>
    %261 = arith.subf %257, %260 : vector<4x8x8xf32>
    %262 = math.exp %261 : vector<4x8x8xf32>
    %cst_179 = arith.constant dense<0.000000e+00> : vector<4x8xf32>
    %263 = vector.multi_reduction <add>, %262, %cst_179 [2] : vector<4x8x8xf32> to vector<4x8xf32>
    %264 = vector.shape_cast %263 : vector<4x8xf32> to vector<4x8x1xf32>
    "tpu.trace_start"() <{level = 10 : i32, message = "bqk,bkd->bqd"}> : () -> ()
    %cst_180 = arith.constant dense<0.000000e+00> : vector<4x8x8xf32>
    %265 = tpu.matmul %262, %256, %cst_180 {dimension_numbers = #tpu.dot_dimension_numbers<[2], [1], [1], [2], [0, 0, 0, 1, 1, 2], [0], [0]>} : vector<4x8x8xf32>, vector<4x8x8xf32>, vector<4x8x8xf32> -> vector<4x8x8xf32>
    "tpu.trace_stop"() : () -> ()
    %266 = tpu.reciprocal %264 : vector<4x8x1xf32> -> vector<4x8x1xf32>
    %267 = vector.broadcast %266 : vector<4x8x1xf32> to vector<4x8x8xf32>
    %268 = arith.mulf %265, %267 : vector<4x8x8xf32>
    %269 = vector.shape_cast %268 : vector<4x8x8xf32> to vector<32x8xf32>
    %c0_181 = arith.constant 0 : index
    %c24_182 = arith.constant 24 : index
    %270 = vector.load %arg27[%c0_181, %c24_182] : memref<32x32xf32, #tpu.memory_space<vmem>>, vector<32x8xf32>
    tpu.vector_store %arg27[%c0_181, %c24_182], %269 {strides = array<i32>} : memref<32x32xf32, #tpu.memory_space<vmem>>, vector<32x8xf32>,
    %c0_183 = arith.constant 0 : index
    %c0_184 = arith.constant 0 : index
    %271 = vector.load %arg27[%c0_183, %c0_184] : memref<32x32xf32, #tpu.memory_space<vmem>>, vector<32x32xf32>
    %c0_185 = arith.constant 0 : index
    %c0_186 = arith.constant 0 : index
    %272 = vector.load %arg20[%c0_185, %c0_186] : memref<32x32xf32, #tpu.memory_space<vmem>>, vector<32x32xf32>
    %cst_187 = arith.constant dense<0.000000e+00> : vector<32x32xf32>
    %273 = tpu.matmul %271, %272, %cst_187 {dimension_numbers = #tpu.dot_dimension_numbers<[1], [0], [0], [1], [0, 0, 1, 1], [], []>} : vector<32x32xf32>, vector<32x32xf32>, vector<32x32xf32> -> vector<32x32xf32>
    %c0_188 = arith.constant 0 : index
    %c0_189 = arith.constant 0 : index
    %274 = vector.load %arg21[%c0_188, %c0_189] : memref<1x32xf32, #tpu.memory_space<vmem>>, vector<1x32xf32>
    %275 = vector.broadcast %274 : vector<1x32xf32> to vector<32x32xf32>
    %276 = arith.addf %273, %275 : vector<32x32xf32>
    %277 = arith.addf %172, %276 : vector<32x32xf32>
    %278 = vector.shape_cast %277 : vector<32x32xf32> to vector<4x8x32xf32>
    %279 = vector.extract_strided_slice %278 {offsets = [0, 0, 0], sizes = [1, 8, 32], strides = [1, 1, 1]} : vector<4x8x32xf32> to vector<1x8x32xf32>
    %280 = vector.shape_cast %279 : vector<1x8x32xf32> to vector<8x32xf32>
    %c0_190 = arith.constant 0 : index
    %c0_191 = arith.constant 0 : index
    %c0_192 = arith.constant 0 : index
    %281 = vector.load %arg22[%c0_190, %c0_191, %c0_192] : memref<8x4x32xf32, #tpu.memory_space<vmem>>, vector<8x1x32xf32>
    %282 = vector.shape_cast %281 : vector<8x1x32xf32> to vector<8x32xf32>
    %283 = vector.shape_cast %280 : vector<8x32xf32> to vector<8x1x32xf32>
    tpu.vector_store %arg22[%c0_190, %c0_191, %c0_192], %283 {strides = array<i32>} : memref<8x4x32xf32, #tpu.memory_space<vmem>>, vector<8x1x32xf32>,
    %284 = vector.extract_strided_slice %278 {offsets = [1, 0, 0], sizes = [1, 8, 32], strides = [1, 1, 1]} : vector<4x8x32xf32> to vector<1x8x32xf32>
    %285 = vector.shape_cast %284 : vector<1x8x32xf32> to vector<8x32xf32>
    %c0_193 = arith.constant 0 : index
    %c1_194 = arith.constant 1 : index
    %c0_195 = arith.constant 0 : index
    %286 = vector.load %arg22[%c0_193, %c1_194, %c0_195] : memref<8x4x32xf32, #tpu.memory_space<vmem>>, vector<8x1x32xf32>
    %287 = vector.shape_cast %286 : vector<8x1x32xf32> to vector<8x32xf32>
    %288 = vector.shape_cast %285 : vector<8x32xf32> to vector<8x1x32xf32>
    tpu.vector_store %arg22[%c0_193, %c1_194, %c0_195], %288 {strides = array<i32>} : memref<8x4x32xf32, #tpu.memory_space<vmem>>, vector<8x1x32xf32>,
    %289 = vector.extract_strided_slice %278 {offsets = [2, 0, 0], sizes = [1, 8, 32], strides = [1, 1, 1]} : vector<4x8x32xf32> to vector<1x8x32xf32>
    %290 = vector.shape_cast %289 : vector<1x8x32xf32> to vector<8x32xf32>
    %c0_196 = arith.constant 0 : index
    %c2_197 = arith.constant 2 : index
    %c0_198 = arith.constant 0 : index
    %291 = vector.load %arg22[%c0_196, %c2_197, %c0_198] : memref<8x4x32xf32, #tpu.memory_space<vmem>>, vector<8x1x32xf32>
    %292 = vector.shape_cast %291 : vector<8x1x32xf32> to vector<8x32xf32>
    %293 = vector.shape_cast %290 : vector<8x32xf32> to vector<8x1x32xf32>
    tpu.vector_store %arg22[%c0_196, %c2_197, %c0_198], %293 {strides = array<i32>} : memref<8x4x32xf32, #tpu.memory_space<vmem>>, vector<8x1x32xf32>,
    %294 = vector.extract_strided_slice %278 {offsets = [3, 0, 0], sizes = [1, 8, 32], strides = [1, 1, 1]} : vector<4x8x32xf32> to vector<1x8x32xf32>
    %295 = vector.shape_cast %294 : vector<1x8x32xf32> to vector<8x32xf32>
    %c0_199 = arith.constant 0 : index
    %c3_200 = arith.constant 3 : index
    %c0_201 = arith.constant 0 : index
    %296 = vector.load %arg22[%c0_199, %c3_200, %c0_201] : memref<8x4x32xf32, #tpu.memory_space<vmem>>, vector<8x1x32xf32>
    %297 = vector.shape_cast %296 : vector<8x1x32xf32> to vector<8x32xf32>
    %298 = vector.shape_cast %295 : vector<8x32xf32> to vector<8x1x32xf32>
    tpu.vector_store %arg22[%c0_199, %c3_200, %c0_201], %298 {strides = array<i32>} : memref<8x4x32xf32, #tpu.memory_space<vmem>>, vector<8x1x32xf32>,
    return
  }
  func.func @transform_0(%arg0: i32) -> (i32, i32, i32) {
    %c0_i32 = arith.constant 0 : i32
    %c0_i32_0 = arith.constant 0 : i32
    %c0_i32_1 = arith.constant 0 : i32
    return %c0_i32, %arg0, %c0_i32_0 : i32, i32, i32
  }
  func.func @transform_1(%arg0: i32) -> (i32, i32) {
    %c0_i32 = arith.constant 0 : i32
    %c0_i32_0 = arith.constant 0 : i32
    %c0_i32_1 = arith.constant 0 : i32
    return %c0_i32, %c0_i32_0 : i32, i32
  }
  func.func @transform_2(%arg0: i32) -> (i32, i32) {
    %c0_i32 = arith.constant 0 : i32
    %c0_i32_0 = arith.constant 0 : i32
    %c0_i32_1 = arith.constant 0 : i32
    return %c0_i32, %c0_i32_0 : i32, i32
  }
  func.func @transform_3(%arg0: i32) -> (i32, i32) {
    %c0_i32 = arith.constant 0 : i32
    %c0_i32_0 = arith.constant 0 : i32
    %c0_i32_1 = arith.constant 0 : i32
    return %c0_i32, %c0_i32_0 : i32, i32
  }
  func.func @transform_4(%arg0: i32) -> (i32, i32) {
    %c0_i32 = arith.constant 0 : i32
    %c0_i32_0 = arith.constant 0 : i32
    %c0_i32_1 = arith.constant 0 : i32
    return %c0_i32, %c0_i32_0 : i32, i32
  }
  func.func @transform_5(%arg0: i32) -> (i32, i32) {
    %c0_i32 = arith.constant 0 : i32
    %c0_i32_0 = arith.constant 0 : i32
    %c0_i32_1 = arith.constant 0 : i32
    return %c0_i32, %c0_i32_0 : i32, i32
  }
  func.func @transform_6(%arg0: i32) -> (i32, i32) {
    %c0_i32 = arith.constant 0 : i32
    %c0_i32_0 = arith.constant 0 : i32
    %c0_i32_1 = arith.constant 0 : i32
    return %c0_i32, %c0_i32_0 : i32, i32
  }
  func.func @transform_7(%arg0: i32) -> (i32, i32) {
    %c0_i32 = arith.constant 0 : i32
    %c0_i32_0 = arith.constant 0 : i32
    %c0_i32_1 = arith.constant 0 : i32
    return %c0_i32, %c0_i32_0 : i32, i32
  }
  func.func @transform_8(%arg0: i32) -> (i32, i32) {
    %c0_i32 = arith.constant 0 : i32
    %c0_i32_0 = arith.constant 0 : i32
    %c0_i32_1 = arith.constant 0 : i32
    return %c0_i32, %c0_i32_0 : i32, i32
  }
  func.func @transform_9(%arg0: i32) -> (i32, i32) {
    %c0_i32 = arith.constant 0 : i32
    %c0_i32_0 = arith.constant 0 : i32
    %c0_i32_1 = arith.constant 0 : i32
    return %c0_i32, %c0_i32_0 : i32, i32
  }
  func.func @transform_10(%arg0: i32) -> (i32, i32) {
    %c0_i32 = arith.constant 0 : i32
    %c0_i32_0 = arith.constant 0 : i32
    %c0_i32_1 = arith.constant 0 : i32
    return %c0_i32, %c0_i32_0 : i32, i32
  }
  func.func @transform_11(%arg0: i32) -> (i32, i32) {
    %c0_i32 = arith.constant 0 : i32
    %c0_i32_0 = arith.constant 0 : i32
    %c0_i32_1 = arith.constant 0 : i32
    return %c0_i32, %c0_i32_0 : i32, i32
  }
  func.func @transform_12(%arg0: i32) -> (i32, i32) {
    %c0_i32 = arith.constant 0 : i32
    %c0_i32_0 = arith.constant 0 : i32
    %c0_i32_1 = arith.constant 0 : i32
    return %c0_i32, %c0_i32_0 : i32, i32
  }
  func.func @transform_13(%arg0: i32) -> (i32, i32) {
    %c0_i32 = arith.constant 0 : i32
    %c0_i32_0 = arith.constant 0 : i32
    %c0_i32_1 = arith.constant 0 : i32
    return %c0_i32, %c0_i32_0 : i32, i32
  }
  func.func @transform_14(%arg0: i32) -> (i32, i32) {
    %c0_i32 = arith.constant 0 : i32
    %c0_i32_0 = arith.constant 0 : i32
    %c0_i32_1 = arith.constant 0 : i32
    return %c0_i32, %c0_i32_0 : i32, i32
  }
  func.func @transform_15(%arg0: i32) -> (i32, i32) {
    %c0_i32 = arith.constant 0 : i32
    %c0_i32_0 = arith.constant 0 : i32
    %c0_i32_1 = arith.constant 0 : i32
    return %c0_i32, %c0_i32_0 : i32, i32
  }
  func.func @transform_16(%arg0: i32) -> (i32, i32) {
    %c0_i32 = arith.constant 0 : i32
    %c0_i32_0 = arith.constant 0 : i32
    %c0_i32_1 = arith.constant 0 : i32
    return %c0_i32, %c0_i32_0 : i32, i32
  }
  func.func @transform_17(%arg0: i32) -> (i32, i32) {
    %c0_i32 = arith.constant 0 : i32
    %c0_i32_0 = arith.constant 0 : i32
    %c0_i32_1 = arith.constant 0 : i32
    return %c0_i32, %c0_i32_0 : i32, i32
  }
  func.func @transform_18(%arg0: i32) -> (i32, i32) {
    %c0_i32 = arith.constant 0 : i32
    %c0_i32_0 = arith.constant 0 : i32
    %c0_i32_1 = arith.constant 0 : i32
    return %c0_i32, %c0_i32_0 : i32, i32
  }
  func.func @transform_19(%arg0: i32) -> (i32, i32) {
    %c0_i32 = arith.constant 0 : i32
    %c0_i32_0 = arith.constant 0 : i32
    %c0_i32_1 = arith.constant 0 : i32
    return %c0_i32, %c0_i32_0 : i32, i32
  }
  func.func @transform_20(%arg0: i32) -> (i32, i32) {
    %c0_i32 = arith.constant 0 : i32
    %c0_i32_0 = arith.constant 0 : i32
    %c0_i32_1 = arith.constant 0 : i32
    return %c0_i32, %c0_i32_0 : i32, i32
  }
  func.func @transform_21(%arg0: i32) -> (i32, i32, i32) {
    %c0_i32 = arith.constant 0 : i32
    %c0_i32_0 = arith.constant 0 : i32
    %c0_i32_1 = arith.constant 0 : i32
    return %c0_i32, %arg0, %c0_i32_0 : i32, i32, i32
  }
}

</mosaic_0001>

<bundles_post_ra>
// kernel: attention_block.1
= control target key start
LH: loop header
LB: loop body
LE: loop exit
PB: predicated region body
PF: predicated region fallthrough
CT: control target
= control target key end

     0   :  { %s10025_s0 = inlined_call_operand.hbm [shape: f32[8,4,32], index: 0, kind: input, shape index: {}, may-alias: {0,21}]   ;;  %s10026_s1 = inlined_call_operand.hbm [shape: f32[1,32], index: 1, kind: input, shape index: {}]   ;;  %s10027_s2 = inlined_call_operand.hbm [shape: f32[1,32], index: 2, kind: input, shape index: {}]   ;;  %s10028_s3 = inlined_call_operand.vmem [shape: f32[32,32], index: 3, kind: input, shape index: {}]   ;;  %s10029_s4 = inlined_call_operand.hbm [shape: f32[1,32], index: 4, kind: input, shape index: {}]   ;;  %s10030_s5 = inlined_call_operand.vmem [shape: f32[32,32], index: 5, kind: input, shape index: {}]   ;;  %s10031_s6 = inlined_call_operand.hbm [shape: f32[1,32], index: 6, kind: input, shape index: {}]   ;;  %s10032_s7 = inlined_call_operand.hbm [shape: f32[32,32], index: 7, kind: input, shape index: {}]   ;;  %s10033_s8 = inlined_call_operand.hbm [shape: f32[1,32], index: 8, kind: input, shape index: {}]   ;;  %s10034_s9 = inlined_call_operand.vmem [shape: f32[32,32], index: 9, kind: input, shape index: {}]   ;;  %s10035_s10 = inlined_call_operand.hbm [shape: f32[1,32], index: 10, kind: input, shape index: {}]   ;;  %s10036_s11 = inlined_call_operand.hbm [shape: f32[1,32], index: 11, kind: input, shape index: {}]   ;;  %s10037_s12 = inlined_call_operand.hbm [shape: f32[1,32], index: 12, kind: input, shape index: {}]   ;;  %s10038_s13 = inlined_call_operand.hbm [shape: f32[32,32], index: 13, kind: input, shape index: {}]   ;;  %s10039_s14 = inlined_call_operand.hbm [shape: f32[1,32], index: 14, kind: input, shape index: {}]   ;;  %s10040_s15 = inlined_call_operand.hbm [shape: f32[32,32], index: 15, kind: input, shape index: {}]   ;;  %s10041_s16 = inlined_call_operand.hbm [shape: f32[1,32], index: 16, kind: input, shape index: {}]   ;;  %s10042_s17 = inlined_call_operand.vmem [shape: f32[32,32], index: 17, kind: input, shape index: {}]   ;;  %s10043_s18 = inlined_call_operand.vmem [shape: f32[1,32], index: 18, kind: input, shape index: {}]   ;;  %s10044_s19 = inlined_call_operand.hbm [shape: f32[32,32], index: 19, kind: input, shape index: {}]   ;;  %s10045_s20 = inlined_call_operand.vmem [shape: f32[1,32], index: 20, kind: input, shape index: {}]   ;;  %s10046_s21 = inlined_call_operand.hbm [shape: f32[8,4,32], index: 21, kind: output, shape index: {}, may-alias: {0,21}]  }
   0x1   :  { %10054 = sst [smem:[#allocation41_spill]] %s10025_s0 }
   0x2   :  { %10055 = sst [smem:[#allocation42_spill]] %s10026_s1 }
   0x3   :  { %10056 = sst [smem:[#allocation43_spill]] %s10027_s2 }
   0x4   :  { %10057 = sst [smem:[#allocation44_spill]] %s10028_s3 }
   0x5   :  { %10058 = sst [smem:[#allocation45_spill]] %s10029_s4 }
   0x6   :  { %10059 = sst [smem:[#allocation46_spill]] %s10030_s5 }
   0x7   :  { %10060 = sst [smem:[#allocation47_spill]] %s10046_s21 }
   0x8   :  { %26 = vsyncpa [#allocation8], 0 }
   0x9   :  { %27 = vsyncpa [#allocation11], 0 }
   0xa   :  { %28 = vsyncpa [#allocation14], 0 }
   0xb   :  { %29 = vsyncpa [#allocation17], 0 }
   0xc   :  { %30 = vsyncpa [#allocation20], 0 }
   0xd   :  { %31 = vsyncpa [#allocation23], 0 }
   0xe   :  { %32 = vsyncpa [#allocation26], 0 }
   0xf   :  { %33 = vsyncpa [#allocation29], 0 }
  0x10   :  { %34 = vsyncpa [#allocation9], 0  ;;  %s8607_s2 = smov [#allocation10]   ;;  %s8608_s26 = smov [#allocation13]  }
  0x11   :  { %s53_s25 = sshll.u32 %s8607_s2, 4  ;;  %s75_s27 = sshll.u32 %s8608_s26, 4  ;;  %s54_s25 = int_to_ptr.vmem [resolvable:$true] %s53_s25  ;;  %s76_s27 = int_to_ptr.vmem [resolvable:$true] %s75_s27 }
  0x12   :  { %s10061_s29 = sld [smem:[#allocation42_spill]] }
  0x18   :  { %s8237_s0 = scalar_lea.hbm %s10061_s29, 16 }
  0x19   :  { %p8238_p0 = scmp.ne.s32.totalorder %s10061_s29, %s8237_s0  ;;  %p8241_p1 = scmp.lt.u32.totalorder %s8237_s0, %s10061_s29 }
  0x1b   :  { %p8243_p2 = pnand %p8241_p1, %p8238_p0 }
  0x1d   :  { %8246 = shalt.err (!%p8243_p2)
}
  0x1e   :  { %s8247_s23 = scalar_lea.vmem %s54_s25, 16  ;;  %s8251_s1 = scalar_lea.vmem %s54_s25, 32 }
  0x1f   :  { %p8248_p3 = scmp.ne.s32.totalorder %s54_s25, %s8247_s23  ;;  %p8252_p4 = scmp.lt.s32.totalorder %s54_s25, %s54_s25 }
  0x20   :  { %p8253_p5 = scmp.lt.s32.totalorder %s8251_s1, %s8247_s23 }
  0x22   :  { %p8254_p6 = por %p8253_p5, %p8252_p4 }
  0x24   :  { %p8255_p7 = pnand %p8254_p6, %p8248_p3 }
  0x26   :  { %8258 = shalt.err (!%p8255_p7)
}
  0x27   :  { %56 = dma.hbm_to_vmem [thread:$0]  %s10061_s29, 16, %s54_s25, [#allocation11]  }
  0x28   :  { %s10062_s28 = sld [smem:[#allocation45_spill]] }
  0x2e   :  { %s8259_s4 = scalar_lea.hbm %s10062_s28, 16 }
  0x2f   :  { %p8260_p8 = scmp.ne.s32.totalorder %s10062_s28, %s8259_s4  ;;  %p8263_p9 = scmp.lt.u32.totalorder %s8259_s4, %s10062_s28 }
  0x31   :  { %p8265_p10 = pnand %p8263_p9, %p8260_p8 }
  0x33   :  { %8268 = shalt.err (!%p8265_p10)
}
  0x34   :  { %s8269_s23 = scalar_lea.vmem %s76_s27, 16  ;;  %s8273_s1 = scalar_lea.vmem %s76_s27, 32 }
  0x35   :  { %p8270_p11 = scmp.ne.s32.totalorder %s76_s27, %s8269_s23  ;;  %p8274_p12 = scmp.lt.s32.totalorder %s76_s27, %s76_s27 }
  0x36   :  { %p8275_p13 = scmp.lt.s32.totalorder %s8273_s1, %s8269_s23 }
  0x38   :  { %p8276_p0 = por %p8275_p13, %p8274_p12 }
  0x3a   :  { %p8277_p1 = pnand %p8276_p0, %p8270_p11 }
  0x3c   :  { %8280 = shalt.err (!%p8277_p1)
}
  0x3d   :  { %78 = dma.hbm_to_vmem [thread:$0]  %s10062_s28, 16, %s76_s27, [#allocation14]  }
  0x3e   :  { %s8609_s24 = smov [#allocation16]   ;;  %s8281_s4 = scalar_lea.hbm %s10032_s7, 512 }
  0x3f   :  { %s96_s2 = sshll.u32 %s8609_s24, 4  ;;  %p8282_p2 = scmp.ne.s32.totalorder %s10032_s7, %s8281_s4  ;;  %s97_s2 = int_to_ptr.vmem [resolvable:$true] %s96_s2 }
  0x40   :  { %p8285_p3 = scmp.lt.u32.totalorder %s8281_s4, %s10032_s7 }
  0x42   :  { %p8287_p4 = pnand %p8285_p3, %p8282_p2 }
  0x44   :  { %8290 = shalt.err (!%p8287_p4)
}
  0x45   :  { %s8291_s23 = scalar_lea.vmem %s97_s2, 512  ;;  %p8296_p6 = scmp.lt.s32.totalorder %s97_s2, %s97_s2 }
  0x46   :  { %p8292_p5 = scmp.ne.s32.totalorder %s97_s2, %s8291_s23  ;;  %p8297_p7 = scmp.lt.s32.totalorder %s8291_s23, %s8291_s23 }
  0x48   :  { %p8298_p8 = por %p8297_p7, %p8296_p6 }
  0x4a   :  { %p8299_p9 = pnand %p8298_p8, %p8292_p5 }
  0x4c   :  { %8302 = shalt.err (!%p8299_p9)
}
  0x4d   :  { %s8610_s27 = smov 128   ;;  %s8611_s28 = smov 8  }
  0x4e   :  { %102 = dma.hbm_to_vmem [thread:$0]  %s10032_s7, 512, %s97_s2, [#allocation17], %s8610_s27, %s8610_s27, %s8611_s28  }
  0x4f   :  { %s8612_s29 = smov [#allocation19]   ;;  %s8613_s26 = smov [#allocation22]  }
  0x50   :  { %s121_s24 = sshll.u32 %s8612_s29, 4  ;;  %s141_s3 = sshll.u32 %s8613_s26, 4  ;;  %s122_s24 = int_to_ptr.vmem [resolvable:$true] %s121_s24  ;;  %s142_s3 = int_to_ptr.vmem [resolvable:$true] %s141_s3 }
  0x51   :  { %s8303_s0 = scalar_lea.hbm %s10035_s10, 16 }
  0x52   :  { %p8304_p10 = scmp.ne.s32.totalorder %s10035_s10, %s8303_s0  ;;  %p8307_p11 = scmp.lt.u32.totalorder %s8303_s0, %s10035_s10 }
  0x54   :  { %p8309_p12 = pnand %p8307_p11, %p8304_p10 }
  0x56   :  { %8312 = shalt.err (!%p8309_p12)
}
  0x57   :  { %s8313_s7 = scalar_lea.vmem %s122_s24, 16  ;;  %s8317_s2 = scalar_lea.vmem %s122_s24, 32 }
  0x58   :  { %p8314_p13 = scmp.ne.s32.totalorder %s122_s24, %s8313_s7  ;;  %p8318_p0 = scmp.lt.s32.totalorder %s122_s24, %s122_s24 }
  0x59   :  { %p8319_p1 = scmp.lt.s32.totalorder %s8317_s2, %s8313_s7 }
  0x5b   :  { %p8320_p2 = por %p8319_p1, %p8318_p0 }
  0x5d   :  { %p8321_p3 = pnand %p8320_p2, %p8314_p13 }
  0x5f   :  { %8324 = shalt.err (!%p8321_p3)
}
  0x60   :  { %124 = dma.hbm_to_vmem [thread:$0]  %s10035_s10, 16, %s122_s24, [#allocation20]  }
  0x61   :  { %s8325_s21 = scalar_lea.hbm %s10037_s12, 16 }
  0x62   :  { %p8326_p4 = scmp.ne.s32.totalorder %s10037_s12, %s8325_s21  ;;  %p8329_p5 = scmp.lt.u32.totalorder %s8325_s21, %s10037_s12 }
  0x64   :  { %p8331_p6 = pnand %p8329_p5, %p8326_p4 }
  0x66   :  { %8334 = shalt.err (!%p8331_p6)
}
  0x67   :  { %s8335_s22 = scalar_lea.vmem %s142_s3, 16  ;;  %s8339_s23 = scalar_lea.vmem %s142_s3, 32 }
  0x68   :  { %p8336_p7 = scmp.ne.s32.totalorder %s142_s3, %s8335_s22  ;;  %p8340_p8 = scmp.lt.s32.totalorder %s142_s3, %s142_s3 }
  0x69   :  { %p8341_p9 = scmp.lt.s32.totalorder %s8339_s23, %s8335_s22 }
  0x6b   :  { %p8342_p10 = por %p8341_p9, %p8340_p8 }
  0x6d   :  { %p8343_p11 = pnand %p8342_p10, %p8336_p7 }
  0x6f   :  { %8346 = shalt.err (!%p8343_p11)
}
  0x70   :  { %144 = dma.hbm_to_vmem [thread:$0]  %s10037_s12, 16, %s142_s3, [#allocation23]  }
  0x71   :  { %s8614_s7 = smov [#allocation25]   ;;  %s8615_s1 = smov [#allocation28]  }
  0x72   :  { %s163_s2 = sshll.u32 %s8614_s7, 4  ;;  %s185_s25 = sshll.u32 %s8615_s1, 4  ;;  %s164_s2 = int_to_ptr.vmem [resolvable:$true] %s163_s2  ;;  %s186_s25 = int_to_ptr.vmem [resolvable:$true] %s185_s25 }
  0x73   :  { %s8347_s21 = scalar_lea.hbm %s10039_s14, 16 }
  0x74   :  { %p8348_p12 = scmp.ne.s32.totalorder %s10039_s14, %s8347_s21  ;;  %p8351_p13 = scmp.lt.u32.totalorder %s8347_s21, %s10039_s14 }
  0x76   :  { %p8353_p0 = pnand %p8351_p13, %p8348_p12 }
  0x78   :  { %8356 = shalt.err (!%p8353_p0)
}
  0x79   :  { %s8357_s12 = scalar_lea.vmem %s164_s2, 16  ;;  %s8361_s3 = scalar_lea.vmem %s164_s2, 32 }
  0x7a   :  { %p8358_p1 = scmp.ne.s32.totalorder %s164_s2, %s8357_s12  ;;  %p8362_p2 = scmp.lt.s32.totalorder %s164_s2, %s164_s2 }
  0x7b   :  { %p8363_p3 = scmp.lt.s32.totalorder %s8361_s3, %s8357_s12 }
  0x7d   :  { %p8364_p4 = por %p8363_p3, %p8362_p2 }
  0x7f   :  { %p8365_p5 = pnand %p8364_p4, %p8358_p1 }
  0x81   :  { %8368 = shalt.err (!%p8365_p5)
}
  0x82   :  { %166 = dma.hbm_to_vmem [thread:$0]  %s10039_s14, 16, %s164_s2, [#allocation26]  }
  0x83   :  { %s8369_s7 = scalar_lea.hbm %s10041_s16, 16 }
  0x84   :  { %p8370_p6 = scmp.ne.s32.totalorder %s10041_s16, %s8369_s7  ;;  %p8373_p7 = scmp.lt.u32.totalorder %s8369_s7, %s10041_s16 }
  0x86   :  { %p8375_p8 = pnand %p8373_p7, %p8370_p6 }
  0x88   :  { %8378 = shalt.err (!%p8375_p8)
}
  0x89   :  { %s8379_s4 = scalar_lea.vmem %s186_s25, 16  ;;  %s8383_s30 = scalar_lea.vmem %s186_s25, 32 }
  0x8a   :  { %p8380_p9 = scmp.ne.s32.totalorder %s186_s25, %s8379_s4  ;;  %p8384_p10 = scmp.lt.s32.totalorder %s186_s25, %s186_s25 }
  0x8b   :  { %p8385_p11 = scmp.lt.s32.totalorder %s8383_s30, %s8379_s4 }
  0x8d   :  { %p8386_p12 = por %p8385_p11, %p8384_p10 }
  0x8f   :  { %p8387_p13 = pnand %p8386_p12, %p8380_p9 }
  0x91   :  { %8390 = shalt.err (!%p8387_p13)
}
  0x92   :  { %188 = dma.hbm_to_vmem [thread:$0]  %s10041_s16, 16, %s186_s25, [#allocation29]  }
  0x93   :  { %s8616_s0 = smov [#allocation7]   ;;  %s10063_s22 = sld [smem:[#allocation41_spill]] }
  0x94   :  { %s40_s5 = sshll.u32 %s8616_s0, 4  ;;  %s41_s5 = int_to_ptr.vmem [resolvable:$true] %s40_s5 }
  0x99   :  { %s8391_s23 = scalar_lea.hbm %s10063_s22, 512 }
  0x9a   :  { %p8392_p0 = scmp.ne.s32.totalorder %s10063_s22, %s8391_s23  ;;  %p8395_p1 = scmp.lt.u32.totalorder %s8391_s23, %s10063_s22 }
  0x9c   :  { %p8397_p2 = pnand %p8395_p1, %p8392_p0 }
  0x9e   :  { %8400 = shalt.err (!%p8397_p2)
}
  0x9f   :  { %s8401_s29 = scalar_lea.vmem %s41_s5, 512  ;;  %p8406_p4 = scmp.lt.s32.totalorder %s41_s5, %s41_s5 }
  0xa0   :  { %p8402_p3 = scmp.ne.s32.totalorder %s41_s5, %s8401_s29  ;;  %p8407_p5 = scmp.lt.s32.totalorder %s8401_s29, %s8401_s29 }
  0xa2   :  { %p8408_p6 = por %p8407_p5, %p8406_p4 }
  0xa4   :  { %p8409_p7 = pnand %p8408_p6, %p8402_p3 }
  0xa6   :  { %8412 = shalt.err (!%p8409_p7)
}
  0xa7   :  { %s8617_s16 = smov 64   ;;  %s8618_s25 = smov 4  }
  0xa8   :  { %46 = dma.hbm_to_vmem [thread:$0]  %s10063_s22, 512, %s41_s5, [#allocation8], %s8617_s16, %s8617_s16, %s8618_s25  }
  0xa9   :  { %s8619_s4 = smov [#allocation12]   ;;  %s8620_s14 = smov [#allocation15]  }
  0xaa   :  { %s63_s30 = sshll.u32 %s8619_s4, 4  ;;  %s87_s2 = sshll.u32 %s8620_s14, 4  ;;  %s64_s30 = int_to_ptr.vmem [resolvable:$true] %s63_s30  ;;  %s88_s2 = int_to_ptr.vmem [resolvable:$true] %s87_s2 }
  0xab   :  { %s10064_s3 = sld [smem:[#allocation43_spill]] }
  0xb1   :  { %s8413_s23 = scalar_lea.hbm %s10064_s3, 16 }
  0xb2   :  { %p8414_p8 = scmp.ne.s32.totalorder %s10064_s3, %s8413_s23  ;;  %p8417_p9 = scmp.lt.u32.totalorder %s8413_s23, %s10064_s3 }
  0xb4   :  { %p8419_p10 = pnand %p8417_p9, %p8414_p8 }
  0xb6   :  { %8422 = shalt.err (!%p8419_p10)
}
  0xb7   :  { %s8423_s5 = scalar_lea.vmem %s64_s30, 16  ;;  %s8427_s22 = scalar_lea.vmem %s64_s30, 32 }
  0xb8   :  { %p8424_p11 = scmp.ne.s32.totalorder %s64_s30, %s8423_s5  ;;  %p8428_p12 = scmp.lt.s32.totalorder %s64_s30, %s64_s30 }
  0xb9   :  { %p8429_p13 = scmp.lt.s32.totalorder %s8427_s22, %s8423_s5 }
  0xbb   :  { %p8430_p0 = por %p8429_p13, %p8428_p12 }
  0xbd   :  { %p8431_p1 = pnand %p8430_p0, %p8424_p11 }
  0xbf   :  { %8434 = shalt.err (!%p8431_p1)
}
  0xc0   :  { %66 = dma.hbm_to_vmem [thread:$0]  %s10064_s3, 16, %s64_s30, [#allocation11]  }
  0xc1   :  { %s8435_s14 = scalar_lea.hbm %s10031_s6, 16 }
  0xc2   :  { %p8436_p2 = scmp.ne.s32.totalorder %s10031_s6, %s8435_s14  ;;  %p8439_p3 = scmp.lt.u32.totalorder %s8435_s14, %s10031_s6 }
  0xc4   :  { %p8441_p4 = pnand %p8439_p3, %p8436_p2 }
  0xc6   :  { %8444 = shalt.err (!%p8441_p4)
}
  0xc7   :  { %s8445_s24 = scalar_lea.vmem %s88_s2, 16  ;;  %s8449_s7 = scalar_lea.vmem %s88_s2, 32 }
  0xc8   :  { %p8446_p5 = scmp.ne.s32.totalorder %s88_s2, %s8445_s24  ;;  %p8450_p6 = scmp.lt.s32.totalorder %s88_s2, %s88_s2 }
  0xc9   :  { %p8451_p7 = scmp.lt.s32.totalorder %s8449_s7, %s8445_s24 }
  0xcb   :  { %p8452_p8 = por %p8451_p7, %p8450_p6 }
  0xcd   :  { %p8453_p9 = pnand %p8452_p8, %p8446_p5 }
  0xcf   :  { %8456 = shalt.err (!%p8453_p9)
}
  0xd0   :  { %90 = dma.hbm_to_vmem [thread:$0]  %s10031_s6, 16, %s88_s2, [#allocation14]  }
  0xd1   :  { %s8621_s1 = smov [#allocation18]   ;;  %s8622_s22 = smov [#allocation21]  }
  0xd2   :  { %s109_s5 = sshll.u32 %s8621_s1, 4  ;;  %s131_s29 = sshll.u32 %s8622_s22, 4  ;;  %s110_s5 = int_to_ptr.vmem [resolvable:$true] %s109_s5  ;;  %s132_s29 = int_to_ptr.vmem [resolvable:$true] %s131_s29 }
  0xd3   :  { %s8457_s4 = scalar_lea.hbm %s10033_s8, 16 }
  0xd4   :  { %p8458_p10 = scmp.ne.s32.totalorder %s10033_s8, %s8457_s4  ;;  %p8461_p11 = scmp.lt.u32.totalorder %s8457_s4, %s10033_s8 }
  0xd6   :  { %p8463_p12 = pnand %p8461_p11, %p8458_p10 }
  0xd8   :  { %8466 = shalt.err (!%p8463_p12)
}
  0xd9   :  { %s8467_s6 = scalar_lea.vmem %s110_s5, 16  ;;  %s8471_s2 = scalar_lea.vmem %s110_s5, 32 }
  0xda   :  { %p8468_p13 = scmp.ne.s32.totalorder %s110_s5, %s8467_s6  ;;  %p8472_p0 = scmp.lt.s32.totalorder %s110_s5, %s110_s5 }
  0xdb   :  { %p8473_p1 = scmp.lt.s32.totalorder %s8471_s2, %s8467_s6 }
  0xdd   :  { %p8474_p2 = por %p8473_p1, %p8472_p0 }
  0xdf   :  { %p8475_p3 = pnand %p8474_p2, %p8468_p13 }
  0xe1   :  { %8478 = shalt.err (!%p8475_p3)
}
  0xe2   :  { %112 = dma.hbm_to_vmem [thread:$0]  %s10033_s8, 16, %s110_s5, [#allocation17]  }
  0xe3   :  { %s8479_s3 = scalar_lea.hbm %s10036_s11, 16 }
  0xe4   :  { %p8480_p4 = scmp.ne.s32.totalorder %s10036_s11, %s8479_s3  ;;  %p8483_p5 = scmp.lt.u32.totalorder %s8479_s3, %s10036_s11 }
  0xe6   :  { %p8485_p6 = pnand %p8483_p5, %p8480_p4 }
  0xe8   :  { %8488 = shalt.err (!%p8485_p6)
}
  0xe9   :  { %s8489_s4 = scalar_lea.vmem %s132_s29, 16  ;;  %s8493_s14 = scalar_lea.vmem %s132_s29, 32 }
  0xea   :  { %p8490_p7 = scmp.ne.s32.totalorder %s132_s29, %s8489_s4  ;;  %p8494_p8 = scmp.lt.s32.totalorder %s132_s29, %s132_s29 }
  0xeb   :  { %p8495_p9 = scmp.lt.s32.totalorder %s8493_s14, %s8489_s4 }
  0xed   :  { %p8496_p10 = por %p8495_p9, %p8494_p8 }
  0xef   :  { %p8497_p11 = pnand %p8496_p10, %p8490_p7 }
  0xf1   :  { %8500 = shalt.err (!%p8497_p11)
}
  0xf2   :  { %134 = dma.hbm_to_vmem [thread:$0]  %s10036_s11, 16, %s132_s29, [#allocation20]  }
  0xf3   :  { %s8623_s0 = smov [#allocation24]   ;;  %s8624_s23 = smov [#allocation27]  }
  0xf4   :  { %s150_s12 = sshll.u32 %s8623_s0, 4  ;;  %s172_s6 = sshll.u32 %s8624_s23, 4  ;;  %s151_s12 = int_to_ptr.vmem [resolvable:$true] %s150_s12  ;;  %s8895_s6 = int_to_ptr.vmem [resolvable:$true] %s172_s6 }
  0xf5   :  { %s8501_s24 = scalar_lea.hbm %s10038_s13, 512 }
  0xf6   :  { %p8502_p12 = scmp.ne.s32.totalorder %s10038_s13, %s8501_s24  ;;  %p8505_p13 = scmp.lt.u32.totalorder %s8501_s24, %s10038_s13 }
  0xf8   :  { %p8507_p0 = pnand %p8505_p13, %p8502_p12 }
  0xfa   :  { %8510 = shalt.err (!%p8507_p0)
}
  0xfb   :  { %s8511_s11 = scalar_lea.vmem %s151_s12, 512  ;;  %p8516_p2 = scmp.lt.s32.totalorder %s151_s12, %s151_s12 }
  0xfc   :  { %p8512_p1 = scmp.ne.s32.totalorder %s151_s12, %s8511_s11  ;;  %p8517_p3 = scmp.lt.s32.totalorder %s8511_s11, %s8511_s11 }
  0xfe   :  { %p8518_p4 = por %p8517_p3, %p8516_p2 }
 0x100   :  { %p8519_p5 = pnand %p8518_p4, %p8512_p1 }
 0x102   :  { %8522 = shalt.err (!%p8519_p5)
}
 0x103   :  { %156 = dma.hbm_to_vmem [thread:$0]  %s10038_s13, 512, %s151_s12, [#allocation23], %s8610_s27, %s8610_s27, %s8611_s28  }
 0x104   :  { %s8523_s4 = scalar_lea.hbm %s10040_s15, 512 }
 0x105   :  { %p8524_p6 = scmp.ne.s32.totalorder %s10040_s15, %s8523_s4  ;;  %p8527_p7 = scmp.lt.u32.totalorder %s8523_s4, %s10040_s15 }
 0x107   :  { %p8529_p8 = pnand %p8527_p7, %p8524_p6 }
 0x109   :  { %8532 = shalt.err (!%p8529_p8)
}
 0x10a   :  { %s8533_s23 = scalar_lea.vmem %s8895_s6, 512  ;;  %p8538_p10 = scmp.lt.s32.totalorder %s8895_s6, %s8895_s6 }
 0x10b   :  { %p8534_p9 = scmp.ne.s32.totalorder %s8895_s6, %s8533_s23  ;;  %p8539_p11 = scmp.lt.s32.totalorder %s8533_s23, %s8533_s23 }
 0x10d   :  { %p8540_p12 = por %p8539_p11, %p8538_p10 }
 0x10f   :  { %p8541_p13 = pnand %p8540_p12, %p8534_p9 }
 0x111   :  { %8544 = shalt.err (!%p8541_p13)
}
 0x112   :  { %178 = dma.hbm_to_vmem [thread:$0]  %s10040_s15, 512, %s8895_s6, [#allocation26], %s8610_s27, %s8610_s27, %s8611_s28  }
 0x113   :  { %s8625_s2 = smov [#allocation30]   ;;  %s8545_s30 = scalar_lea.hbm %s10044_s19, 512 }
 0x114   :  { %s198_s10 = sshll.u32 %s8625_s2, 4  ;;  %p8546_p0 = scmp.ne.s32.totalorder %s10044_s19, %s8545_s30  ;;  %s199_s10 = int_to_ptr.vmem [resolvable:$true] %s198_s10 }
 0x115   :  { %p8549_p1 = scmp.lt.u32.totalorder %s8545_s30, %s10044_s19 }
 0x117   :  { %p8551_p2 = pnand %p8549_p1, %p8546_p0 }
 0x119   :  { %8554 = shalt.err (!%p8551_p2)
}
 0x11a   :  { %s8555_s22 = scalar_lea.vmem %s199_s10, 512  ;;  %p8560_p4 = scmp.lt.s32.totalorder %s199_s10, %s199_s10 }
 0x11b   :  { %p8556_p3 = scmp.ne.s32.totalorder %s199_s10, %s8555_s22  ;;  %p8561_p5 = scmp.lt.s32.totalorder %s8555_s22, %s8555_s22 }
 0x11d   :  { %p8562_p6 = por %p8561_p5, %p8560_p4 }
 0x11f   :  { %p8563_p7 = pnand %p8562_p6, %p8556_p3 }
 0x121   :  { %8566 = shalt.err (!%p8563_p7)
}
 0x122   :  { %204 = dma.hbm_to_vmem [thread:$0]  %s10044_s19, 512, %s199_s10, [#allocation29], %s8610_s27, %s8610_s27, %s8611_s28  }
 0x123   :  { %8589 = dma.done.wait [#allocation8], 512  }
 0x124   :  { %8590 = vsyncadd [#allocation8], 4294966784 }
 0x125   :  { %8591 = dma.done.wait [#allocation11], 32  }
 0x126   :  { %8592 = vsyncadd [#allocation11], 4294967264 }
 0x127   :  { %8593 = dma.done.wait [#allocation14], 32  }
 0x128   :  { %8594 = vsyncadd [#allocation14], 4294967264 }
 0x129   :  { %8595 = dma.done.wait [#allocation17], 528  }
 0x12a   :  { %8596 = vsyncadd [#allocation17], 4294966768 }
 0x12b   :  { %8597 = dma.done.wait [#allocation20], 32  }
 0x12c   :  { %8598 = vsyncadd [#allocation20], 4294967264 }
 0x12d   :  { %8599 = dma.done.wait [#allocation23], 528  }
 0x12e   :  { %8600 = vsyncadd [#allocation23], 4294966768 }
 0x12f   :  { %8601 = dma.done.wait [#allocation26], 528  }
 0x130   :  { %8602 = vsyncadd [#allocation26], 4294966768 }
 0x131   :  { %8603 = dma.done.wait [#allocation29], 528  }
 0x132   :  { %8604 = vsyncadd [#allocation29], 4294966768  ;;  %vm269_vm0 = vcmask 1041409   ;;  %vm272_vm1 = vcmask 1042434   ;;  %vm275_vm2 = vcmask 1043459   ;;  %vm278_vm3 = vcmask 1044484  }
 0x133   :  { %vm281_vm4 = vcmask 1045509   ;;  %vm284_vm5 = vcmask 1046534   ;;  %vm287_vm6 = vcmask 1047559   ;;  %v252_v0 = vld [vmem:[#allocation7] sm:$0x1]  ;;  %vm290_vm7 = vcmask 261120  }
 0x134   :  { %v253_v1 = vld [vmem:[#allocation7 + $0x4] sm:$0x1]  ;;  %v254_v2 = vld [vmem:[#allocation7 + $0x8] sm:$0x1]  ;;  %v255_v3 = vld [vmem:[#allocation7 + $0xc] sm:$0x1] }
 0x135   :  { %v256_v4 = vld [vmem:[#allocation7 + $0x10] sm:$0x1]  ;;  %v257_v5 = vld [vmem:[#allocation7 + $0x14] sm:$0x1]  ;;  %v258_v6 = vld [vmem:[#allocation7 + $0x18] sm:$0x1] }
 0x136   :  { %v259_v7 = vld [vmem:[#allocation7 + $0x1c] sm:$0x1]  ;;  %v268_v8 = vrot.slane %v253_v1, 7  ;;  %v271_v9 = vrot.slane %v254_v2, 6  ;;  %v274_v10 = vrot.slane %v255_v3, 5  ;;  %v277_v11 = vrot.slane %v256_v4, 4 }
 0x137   :  { %v280_v12 = vrot.slane %v257_v5, 3  ;;  %v325_v13 = vld [vmem:[#allocation7 + $0x2] sm:$0x1]  ;;  %v283_v15 = vrot.slane %v258_v6, 2  ;;  %v286_v16 = vrot.slane %v259_v7, 1  ;;  %s10065_s26 = sld [smem:[#allocation44_spill]] }
 0x138   :  { %v270_v14 = vsel %vm269_vm0, %v268_v8, %v252_v0  ;;  %v326_v17 = vld [vmem:[#allocation7 + $0x6] sm:$0x1]  ;;  %v327_v18 = vld [vmem:[#allocation7 + $0xa] sm:$0x1]  ;;  %v328_v20 = vld [vmem:[#allocation7 + $0xe] sm:$0x1] }
 0x139   :  { %v273_v19 = vsel %vm272_vm1, %v271_v9, %v270_v14  ;;  %v329_v21 = vld [vmem:[#allocation7 + $0x12] sm:$0x1]  ;;  %v330_v22 = vld [vmem:[#allocation7 + $0x16] sm:$0x1]  ;;  %v331_v24 = vld [vmem:[#allocation7 + $0x1a] sm:$0x1] }
 0x13a   :  { %v276_v23 = vsel %vm275_vm2, %v274_v10, %v273_v19  ;;  %v332_v25 = vld [vmem:[#allocation7 + $0x1e] sm:$0x1]  ;;  %v341_v26 = vrot.slane %v326_v17, 7  ;;  %v343_v27 = vrot.slane %v327_v18, 6  ;;  %v345_v29 = vrot.slane %v328_v20, 5  ;;  %s10066_s12 = sld [smem:[#allocation46_spill]] }
 0x13b   :  { %v279_v28 = vsel %vm278_vm3, %v277_v11, %v276_v23  ;;  %v347_v30 = vrot.slane %v329_v21, 4  ;;  %v349_v31 = vrot.slane %v330_v22, 3  ;;  %v292_v32 = vld [vmem:[#allocation7 + $0x1] sm:$0x1]  ;;  %v351_v35 = vrot.slane %v331_v24, 2  ;;  %s8628_s1 = smov 120  }
 0x13c   :  { %v282_v33 = vsel %vm281_vm4, %v280_v12, %v279_v28  ;;  %v342_v34 = vsel %vm269_vm0, %v341_v26, %v325_v13  ;;  %v353_v36 = vrot.slane %v332_v25, 1  ;;  %v293_v37 = vld [vmem:[#allocation7 + $0x5] sm:$0x1]  ;;  %v294_v38 = vld [vmem:[#allocation7 + $0x9] sm:$0x1]  ;;  %vm8627_vm8 = vmmov 0  }
 0x13d   :  { %v285_v39 = vsel %vm284_vm5, %v283_v15, %v282_v33  ;;  %v344_v40 = vsel %vm272_vm1, %v343_v27, %v342_v34  ;;  %v295_v41 = vld [vmem:[#allocation7 + $0xd] sm:$0x1]  ;;  %v296_v42 = vld [vmem:[#allocation7 + $0x11] sm:$0x1]  ;;  %v297_v43 = vld [vmem:[#allocation7 + $0x15] sm:$0x1] }
 0x13e   :  { %v288_v44 = vsel %vm287_vm6, %v286_v16, %v285_v39  ;;  %v346_v45 = vsel %vm275_vm2, %v345_v29, %v344_v40  ;;  %v298_v46 = vld [vmem:[#allocation7 + $0x19] sm:$0x1]  ;;  %v299_v47 = vld [vmem:[#allocation7 + $0x1d] sm:$0x1]  ;;  %v308_v48 = vrot.slane %v293_v37, 7  ;;  %v310_v49 = vrot.slane %v294_v38, 6 }
 0x13f   :  { %291 = vst.msk [vmem:[#allocation2] sm:$0xff] %vm290_vm7, %v288_v44  ;;  %v348_v50 = vsel %vm278_vm3, %v347_v30, %v346_v45  ;;  %v312_v51 = vrot.slane %v295_v41, 5  ;;  %v314_v52 = vrot.slane %v296_v42, 4  ;;  %v316_v53 = vrot.slane %v297_v43, 3  ;;  %v358_v54 = vld [vmem:[#allocation7 + $0x3] sm:$0x1] }
 0x140   :  { %v350_v55 = vsel %vm281_vm4, %v349_v31, %v348_v50  ;;  %v309_v56 = vsel %vm269_vm0, %v308_v48, %v292_v32  ;;  %v318_v57 = vrot.slane %v298_v46, 2  ;;  %v320_v58 = vrot.slane %v299_v47, 1  ;;  %v359_v59 = vld [vmem:[#allocation7 + $0x7] sm:$0x1]  ;;  %v360_v60 = vld [vmem:[#allocation7 + $0xb] sm:$0x1] }
 0x141   :  { %v352_v61 = vsel %vm284_vm5, %v351_v35, %v350_v55  ;;  %v311_v62 = vsel %vm272_vm1, %v310_v49, %v309_v56  ;;  %v361_v63 = vld [vmem:[#allocation7 + $0xf] sm:$0x1]  ;;  %v362_v0 = vld [vmem:[#allocation7 + $0x13] sm:$0x1]  ;;  %v363_v1 = vld [vmem:[#allocation7 + $0x17] sm:$0x1] }
 0x142   :  { %v354_v2 = vsel %vm287_vm6, %v353_v36, %v352_v61  ;;  %v313_v3 = vsel %vm275_vm2, %v312_v51, %v311_v62  ;;  %v364_v4 = vld [vmem:[#allocation7 + $0x1b] sm:$0x1]  ;;  %v374_v5 = vrot.slane %v359_v59, 7  ;;  %v376_v6 = vrot.slane %v360_v60, 6  ;;  %v365_v8 = vld [vmem:[#allocation7 + $0x1f] sm:$0x1] }
 0x143   :  { %357 = vst.msk [vmem:[#allocation2 + $0x10] sm:$0xff] %vm290_vm7, %v354_v2  ;;  %v315_v7 = vsel %vm278_vm3, %v314_v52, %v313_v3  ;;  %v378_v9 = vrot.slane %v361_v63, 5  ;;  %v380_v10 = vrot.slane %v362_v0, 4  ;;  %v382_v13 = vrot.slane %v363_v1, 3  ;;  %v470_v52 = vld [vmem:[%s10065_s26] sm:$0xff]  ;;  %v683_v56 = vld [vmem:[#allocation16 + $0x8] sm:$0xff] }
 0x144   :  { %v317_v11 = vsel %vm281_vm4, %v316_v53, %v315_v7  ;;  %v375_v12 = vsel %vm269_vm0, %v374_v5, %v358_v54  ;;  %v384_v16 = vrot.slane %v364_v4, 2  ;;  %v386_v20 = vrot.slane %v365_v8, 1  ;;  %v471_v53 = vld [vmem:[%s10065_s26 + $0x8] sm:$0xff]  ;;  %v684_v61 = vld [vmem:[#allocation16 + $0x10] sm:$0xff]  ;;  %v685_v62 = vld [vmem:[#allocation16 + $0x18] sm:$0xff]  ;;  %s8629_s11 = smov 112  }
 0x145   :  { %v319_v14 = vsel %vm284_vm5, %v318_v57, %v317_v11  ;;  %v377_v15 = vsel %vm272_vm1, %v376_v6, %v375_v12  ;;  %v682_v54 = vld [vmem:[#allocation16] sm:$0xff]  ;;  %v7997_v55 = vpack.c.bf16 %v471_v53, %v470_v52  ;;  %v472_v57 = vld [vmem:[%s10065_s26 + $0x10] sm:$0xff]  ;;  %v8017_v63 = vpack.c.bf16 %v685_v62, %v684_v61  ;;  %v582_v0 = vld [vmem:[%s10066_s12] sm:$0xff]  ;;  %s8630_s29 = smov 104   ;;  %s8631_s22 = smov 16  }
 0x146   :  { %v391_v17 = vld [vmem:[#allocation2] sm:$0xff]  ;;  %v321_v18 = vsel %vm287_vm6, %v320_v58, %v319_v14  ;;  %v379_v19 = vsel %vm275_vm2, %v378_v9, %v377_v15  ;;  %v473_v58 = vld [vmem:[%s10065_s26 + $0x18] sm:$0xff]  ;;  %v8013_v59 = vpack.c.bf16 %v683_v56, %v682_v54  ;;  %v583_v1 = vld [vmem:[%s10066_s12 + $0x8] sm:$0xff]  ;;  %vm794_vm9 = vcmask 64512   ;;  %s8632_s8 = smov 24  }
 0x147   :  { %v397_v21 = vsel %vm290_vm7, %v391_v17, 0.0  ;;  %324 = vst.msk [vmem:[#allocation2 + $0x8] sm:$0xff] %vm290_vm7, %v321_v18  ;;  %v381_v22 = vsel %vm278_vm3, %v380_v10, %v379_v19  ;;  %v8001_v60 = vpack.c.bf16 %v473_v58, %v472_v57  ;;  %7998 = vmatprep.subr.bf16.mxu1 %v7997_v55  ;;  %v8005_v2 = vpack.c.bf16 %v583_v1, %v582_v0  ;;  %v7234_v18 = vld [vmem:[#allocation12] ss:$0 sm:$0xff] }
 0x148   :  { %398 = vadd.xlane.f32.xlu0 %v397_v21  ;;  %v383_v23 = vsel %vm281_vm4, %v382_v13, %v381_v22  ;;  %8014 = vmatprep.subr.bf16.mxu0 %v8013_v59  ;;  %vm2139_vm10 = vcmask 130112   ;;  %vm2844_vm11 = vcmask 195712   ;;  %vm3549_vm12 = vcmask 261312  }
 0x149   :  { %v385_v24 = vsel %vm284_vm5, %v384_v16, %v383_v23  ;;  %8000 = vmatpush3.bf16.msra.mxu1 %v7997_v55  ;;  %8016 = vmatpush3.bf16.msra.mxu0 %v8013_v59  ;;  %v7233_v16 = vld [vmem:[#allocation10] ss:$0 sm:$0xff]  ;;  %v7240_v55 = vld [vmem:[#allocation15] ss:$0 sm:$0xff]  ;;  %vm7002_vm13 = vcmask 253952  }
 0x14a   :  { %v393_v25 = vld [vmem:[#allocation2 + $0x10] sm:$0xff]  ;;  %v387_v26 = vsel %vm287_vm6, %v386_v20, %v385_v24  ;;  %8002 = vmatprep.subr.bf16.mxu1 %v8001_v60  ;;  %8018 = vmatprep.subr.bf16.mxu0 %v8017_v63 }
 0x14b   :  { %v403_v27 = vsel %vm290_vm7, %v393_v25, 0.0  ;;  %390 = vst.msk [vmem:[#allocation2 + $0x18] sm:$0xff] %vm290_vm7, %v387_v26  ;;  %v584_v26 = vld [vmem:[%s10066_s12 + $0x10] sm:$0xff] }
 0x14c   :  { %404 = vadd.xlane.f32.xlu1 %v403_v27  ;;  %v585_v27 = vld [vmem:[%s10066_s12 + $0x18] sm:$0xff] }
 0x14d   :  { %8004 = vmatpush3.bf16.msra.mxu1 %v8001_v60  ;;  %8020 = vmatpush3.bf16.msra.mxu0 %v8017_v63 }
 0x14e   :  { %v392_v28 = vld [vmem:[#allocation2 + $0x8] sm:$0xff]  ;;  %8006 = vmatprep.subr.bf16.mxu1 %v8005_v2 }
 0x14f   :  { %v400_v29 = vsel %vm290_vm7, %v392_v28, 0.0 }
 0x150   :  { %401 = vadd.xlane.f32.xlu0 %v400_v29 }
 0x152   :  { %v394_v30 = vld [vmem:[#allocation2 + $0x18] sm:$0xff] }
 0x153   :  { %v406_v31 = vsel %vm290_vm7, %v394_v30, 0.0 }
 0x154   :  { %407 = vadd.xlane.f32.xlu1 %v406_v31 }
 0x1d5   :  { %v399_v32 = vpop.xlane.xlu0 %398 }
 0x1d6   :  { %v410_v33 = vmul.f32 0.03125, %v399_v32 }
 0x1d8   :  { %v8983_v34 = vsub.f32 %v391_v17, %v410_v33  ;;  %v8009_v33 = vpack.c.bf16 %v585_v27, %v584_v26 }
 0x1d9   :  { %v405_v35 = vpop.xlane.xlu1 %404 }
 0x1da   :  { %v412_v36 = vmul.f32 0.03125, %v405_v35  ;;  %v418_v37 = vmul.f32 %v8983_v34, %v8983_v34 }
 0x1dc   :  { %v8987_v38 = vsub.f32 %v393_v25, %v412_v36  ;;  %v422_v39 = vsel %vm290_vm7, %v418_v37, 0.0  ;;  %v8626_v36 = vmov 0.0   ;;  %v7235_v37 = vld [vmem:[#allocation13] ss:$0 sm:$0xff] }
 0x1dd   :  { %v402_v40 = vpop.xlane.xlu0 %401  ;;  %423 = vadd.xlane.f32.xlu0 %v422_v39  ;;  %7617 = vmatprep.subr.mxu0 %v8626_v36 }
 0x1de   :  { %v411_v41 = vmul.f32 0.03125, %v402_v40  ;;  %v420_v42 = vmul.f32 %v8987_v38, %v8987_v38 }
 0x1e0   :  { %v8992_v43 = vsub.f32 %v392_v28, %v411_v41  ;;  %v428_v44 = vsel %vm290_vm7, %v420_v42, 0.0 }
 0x1e1   :  { %v408_v45 = vpop.xlane.xlu1 %407  ;;  %429 = vadd.xlane.f32.xlu0 %v428_v44 }
 0x1e2   :  { %v413_v46 = vmul.f32 0.03125, %v408_v45  ;;  %v419_v47 = vmul.f32 %v8992_v43, %v8992_v43 }
 0x1e4   :  { %v8997_v48 = vsub.f32 %v394_v30, %v413_v46  ;;  %v425_v49 = vsel %vm290_vm7, %v419_v47, 0.0 }
 0x1e5   :  { %426 = vadd.xlane.f32.xlu1 %v425_v49 }
 0x1e6   :  { %v421_v50 = vmul.f32 %v8997_v48, %v8997_v48 }
 0x1e8   :  { %v431_v51 = vsel %vm290_vm7, %v421_v50, 0.0 }
 0x1e9   :  { %432 = vadd.xlane.f32.xlu1 %v431_v51 }
 0x26a   :  { %v424_v3 = vpop.xlane.xlu0 %423 }
 0x26b   :  { %v434_v4 = vmul.f32 0.03125, %v424_v3 }
 0x26d   :  { %v438_v5 = vadd.f32 1e-05, %v434_v4 }
 0x26e   :  { %v430_v6 = vpop.xlane.xlu0 %429 }
 0x26f   :  { %8089 = vrsqrt.f32 %v438_v5  ;;  %v436_v7 = vmul.f32 0.03125, %v430_v6 }
 0x271   :  { %v440_v8 = vadd.f32 1e-05, %v436_v7 }
 0x272   :  { %v427_v9 = vpop.xlane.xlu1 %426 }
 0x273   :  { %v435_v10 = vmul.f32 0.03125, %v427_v9  ;;  %8091 = vrsqrt.f32 %v440_v8 }
 0x275   :  { %v439_v11 = vadd.f32 1e-05, %v435_v10 }
 0x276   :  { %v433_v12 = vpop.xlane.xlu1 %432 }
 0x277   :  { %8093 = vrsqrt.f32 %v439_v11  ;;  %v437_v13 = vmul.f32 0.03125, %v433_v12 }
 0x279   :  { %v8090_v14 = vpop.eup %8089  ;;  %v441_v15 = vadd.f32 1e-05, %v437_v13 }
 0x27a   :  { %v446_v17 = vmul.f32 %v8090_v14, %v8983_v34 }
 0x27b   :  { %8095 = vrsqrt.f32 %v441_v15 }
 0x27c   :  { %v456_v19 = vmul.f32 %v7233_v16, %v446_v17 }
 0x27d   :  { %v8092_v20 = vpop.eup %8091 }
 0x27e   :  { %v466_v21 = vadd.f32 %v7234_v18, %v456_v19  ;;  %v448_v22 = vmul.f32 %v8092_v20, %v8987_v38  ;;  %v7245_v38 = vld [vmem:[#allocation18] ss:$0 sm:$0xff] }
 0x280   :  { %7573 = vmatprep.mubr.msk.f32.mxu1 %vm290_vm7, %v466_v21  ;;  %7601 = vmatprep.mubr.msk.f32.mxu0 %vm290_vm7, %v466_v21  ;;  %v458_v24 = vmul.f32 %v7233_v16, %v448_v22 }
 0x281   :  { %v8094_v23 = vpop.eup %8093 }
 0x282   :  { %v447_v25 = vmul.f32 %v8094_v23, %v8992_v43  ;;  %v468_v30 = vadd.f32 %v7234_v18, %v458_v24 }
 0x284   :  { %v457_v28 = vmul.f32 %v7233_v16, %v447_v25 }
 0x285   :  { %v8096_v29 = vpop.eup %8095 }
 0x286   :  { %v467_v31 = vadd.f32 %v7234_v18, %v457_v28  ;;  %v449_v32 = vmul.f32 %v8096_v29, %v8997_v48 }
 0x288   :  { %7574 = vmatmul.mubr.msk.f32.vlgmr.msra.gmra.mrb[0].mxu1 %vm290_vm7, %v467_v31  ;;  %7602 = vmatmul.mubr.msk.f32.vlgmr.msra.gmra.mrb[0].mxu0 %vm290_vm7, %v467_v31  ;;  %v459_v34 = vmul.f32 %v7233_v16, %v449_v32 }
 0x289   :  { %7576 = vmatprep.mubr.msk.f32.mxu1 %vm290_vm7, %v468_v30  ;;  %8008 = vmatpush3.bf16.msra.mxu1 %v8005_v2 }
 0x28a   :  { %7604 = vmatprep.mubr.msk.f32.mxu0 %vm290_vm7, %v468_v30  ;;  %v469_v35 = vadd.f32 %v7234_v18, %v459_v34  ;;  %8010 = vmatprep.subr.bf16.mxu1 %v8009_v33 }
 0x28c   :  { %7577 = vmatmul.mubr.msk.f32.gmra.mrb[2].mxu1 %vm290_vm7, %v469_v35  ;;  %7605 = vmatmul.mubr.msk.f32.gmra.mrb[2].mxu0 %vm290_vm7, %v469_v35 }
 0x28d   :  { %8012 = vmatpush3.bf16.msra.mxu1 %v8009_v33  ;;  %7587 = vmatprep.mubr.msk.f32.mxu1 %vm290_vm7, %v466_v21 }
 0x28e   :  { %7607 = vmatprep.subr.mxu1 %v8626_v36  ;;  %7619 = vmatprep.mubr.msk.f32.mxu0 %vm8627_vm8, %v8626_v36 }
 0x290   :  { %7588 = vmatmul.mubr.msk.f32.vlgmr.msra.gmra.mrb[4].mxu1 %vm290_vm7, %v467_v31 }
 0x291   :  { %7590 = vmatprep.mubr.msk.f32.mxu1 %vm290_vm7, %v468_v30 }
 0x294   :  { %7591 = vmatmul.mubr.msk.f32.gmra.mrb[6].mxu1 %vm290_vm7, %v469_v35 }
 0x295   :  { %7609 = vmatprep.mubr.msk.f32.mxu1 %vm8627_vm8, %v8626_v36 }
 0x35b   :  { %v7575_v39 = vpop.f32.mrb[0].mxu1  ;;  %v7603_v40 = vpop.f32.mrb[0].mxu0 }
 0x35c   :  { %v565_v41 = vadd.f32 %v7575_v39, %v7235_v37  ;;  %v765_v42 = vadd.f32 %v7603_v40, %v7245_v38  ;;  %v559_v43 = vpop.f32.mrb[1].mxu1  ;;  %v759_v44 = vpop.f32.mrb[1].mxu0 }
 0x35d   :  { %v560_v45 = vadd.f32 %v7235_v37, %v559_v43  ;;  %v760_v46 = vadd.f32 %v7245_v38, %v759_v44 }
 0x35e   :  { %579 = vst.msk [vmem:[#allocation3 + $0x8] sm:$0xff] %vm290_vm7, %v565_v41  ;;  %779 = vst.msk [vmem:[#allocation5 + $0x8] sm:$0xff] %vm290_vm7, %v765_v42 }
 0x35f   :  { %578 = vst.msk [vmem:[#allocation3] sm:$0xff] %vm290_vm7, %v560_v45  ;;  %778 = vst.msk [vmem:[#allocation5] sm:$0xff] %vm290_vm7, %v760_v46  ;;  %v7578_v47 = vpop.f32.mrb[2].mxu1  ;;  %v7606_v48 = vpop.f32.mrb[2].mxu0 }
 0x360   :  { %v575_v49 = vadd.f32 %v7578_v47, %v7235_v37  ;;  %v775_v50 = vadd.f32 %v7606_v48, %v7245_v38  ;;  %v569_v51 = vpop.f32.mrb[3].mxu1  ;;  %v769_v52 = vpop.f32.mrb[3].mxu0 }
 0x361   :  { %v570_v53 = vadd.f32 %v7235_v37, %v569_v51  ;;  %v770_v54 = vadd.f32 %v7245_v38, %v769_v52 }
 0x362   :  { %581 = vst.msk [vmem:[#allocation3 + $0x18] sm:$0xff] %vm290_vm7, %v575_v49  ;;  %781 = vst.msk [vmem:[#allocation5 + $0x18] sm:$0xff] %vm290_vm7, %v775_v50 }
 0x363   :  { %580 = vst.msk [vmem:[#allocation3 + $0x10] sm:$0xff] %vm290_vm7, %v570_v53  ;;  %780 = vst.msk [vmem:[#allocation5 + $0x10] sm:$0xff] %vm290_vm7, %v770_v54  ;;  %v7589_v56 = vpop.f32.mrb[4].mxu1 }
 0x364   :  { %v665_v57 = vadd.f32 %v7589_v56, %v7240_v55  ;;  %v659_v58 = vpop.f32.mrb[5].mxu1 }
 0x365   :  { %v660_v59 = vadd.f32 %v7240_v55, %v659_v58  ;;  %v9081_v4 = vld [vmem:[#allocation3 + $0x8] sm:$0xff] }
 0x366   :  { %679 = vst.msk [vmem:[#allocation4 + $0x8] sm:$0xff] %vm290_vm7, %v665_v57  ;;  %v9066_v1 = vld [vmem:[#allocation3] sm:$0xff]  ;;  %v9107_v9 = vld [vmem:[#allocation5 + $0x8] sm:$0xff] }
 0x367   :  { %678 = vst.msk [vmem:[#allocation4] sm:$0xff] %vm290_vm7, %v660_v59  ;;  %v7592_v60 = vpop.f32.mrb[6].mxu1  ;;  %v9092_v7 = vld [vmem:[#allocation5] sm:$0xff] }
 0x368   :  { %v675_v61 = vadd.f32 %v7592_v60, %v7240_v55  ;;  %v669_v62 = vpop.f32.mrb[7].mxu1 }
 0x369   :  { %v670_v63 = vadd.f32 %v7240_v55, %v669_v62  ;;  %v9100_v8 = vld [vmem:[#allocation3 + $0x18] sm:$0xff] }
 0x36a   :  { %681 = vst.msk [vmem:[#allocation4 + $0x18] sm:$0xff] %vm290_vm7, %v675_v61  ;;  %v9083_v5 = vld [vmem:[#allocation3 + $0x10] sm:$0xff]  ;;  %v9146_v23 = vld [vmem:[#allocation5 + $0x18] sm:$0xff] }
 0x36b   :  { %680 = vst.msk [vmem:[#allocation4 + $0x10] sm:$0xff] %vm290_vm7, %v670_v63  ;;  %v9142_v22 = vld [vmem:[#allocation5 + $0x10] sm:$0xff] }
 0x36d   :  { %v9070_v2 = vld [vmem:[#allocation4 + $0x8] sm:$0xff] }
 0x36e   :  { %v9061_v0 = vld [vmem:[#allocation4] sm:$0xff] }
 0x36f   :  { %7608 = vmatpush3.xpose.msk.msra.mxu1 %vm794_vm9, %v9061_v0 }
 0x370   :  { %7612 = vmatprep.subr.mxu1 %v8626_v36 }
 0x371   :  { %v9090_v6 = vld [vmem:[#allocation4 + $0x18] sm:$0xff] }
 0x372   :  { %7610 = vmatmul.mubr.msk.f32.vlgmr.msra.gmra.mrb[8].mxu1 %vm794_vm9, %v9066_v1  ;;  %v9072_v3 = vld [vmem:[#allocation4 + $0x10] sm:$0xff] }
 0x373   :  { %7613 = vmatpush3.xpose.msk.msra.mxu1 %vm794_vm9, %v9070_v2  ;;  %7618 = vmatpush3.xpose.msk.msra.mxu0 %vm794_vm9, %v9072_v3 }
 0x374   :  { %7614 = vmatprep.mubr.msk.f32.mxu1 %vm8627_vm8, %v8626_v36  ;;  %7622 = vmatprep.subr.mxu1 %v8626_v36 }
 0x375   :  { %7627 = vmatprep.subr.mxu0 %v8626_v36 }
 0x376   :  { %7615 = vmatmul.mubr.msk.f32.vlgmr.msra.gmra.mrb[10].mxu1 %vm794_vm9, %v9081_v4  ;;  %7620 = vmatmul.mubr.msk.f32.vlgmr.msra.gmra.mrb[4].mxu0 %vm794_vm9, %v9083_v5 }
 0x377   :  { %7623 = vmatpush3.xpose.msk.msra.mxu1 %vm794_vm9, %v9090_v6  ;;  %7628 = vmatpush3.msra.mxu0 %v9092_v7 }
 0x378   :  { %7624 = vmatprep.mubr.msk.f32.mxu1 %vm8627_vm8, %v8626_v36  ;;  %7632 = vmatprep.subr.mxu1 %v8626_v36 }
 0x379   :  { %7629 = vmatprep.mubr.msk.f32.mxu0 %vm8627_vm8, %v8626_v36  ;;  %7637 = vmatprep.subr.mxu0 %v8626_v36 }
 0x37a   :  { %7625 = vmatmul.mubr.msk.f32.vlgmr.msra.gmra.mrb[12].mxu1 %vm794_vm9, %v9100_v8 }
 0x37b   :  { %7633 = vmatpush3.msra.mxu1 %v9107_v9  ;;  %7634 = vmatprep.mubr.msk.f32.mxu1 %vm8627_vm8, %v8626_v36 }
 0x37c   :  { %7642 = vmatprep.subr.mxu1 %v8626_v36 }
 0x445   :  { %v867_v10 = vpop.f32.mrb[8].mxu1 }
 0x446   :  { %v7611_v11 = vpop.f32.mrb[9].mxu1  ;;  %v1099_v12 = vsel %vm794_vm9, %v867_v10, -inf }
 0x447   :  { %1100 = vmax.xlane.f32.xlu0 %v1099_v12 }
 0x449   :  { %v943_v13 = vpop.f32.mrb[10].mxu1  ;;  %v1019_v14 = vpop.f32.mrb[4].mxu0 }
 0x44a   :  { %v7616_v15 = vpop.f32.mrb[11].mxu1  ;;  %v7621_v16 = vpop.f32.mrb[5].mxu0  ;;  %v1102_v17 = vsel %vm794_vm9, %v943_v13, -inf  ;;  %v1105_v18 = vsel %vm794_vm9, %v1019_v14, -inf }
 0x44b   :  { %1103 = vmax.xlane.f32.xlu1 %v1102_v17  ;;  %1106 = vmax.xlane.f32.xlu0 %v1105_v18 }
 0x44d   :  { %v9116_v19 = vpop.f32.mrb[12].mxu1 }
 0x44e   :  { %v7626_v20 = vpop.f32.mrb[13].mxu1  ;;  %v1108_v21 = vsel %vm794_vm9, %v9116_v19, -inf }
 0x45c   :  { %1535 = vrot.lane.b32.xlu1 %v9070_v2, %s8628_s1 }
 0x460   :  { %1452 = vrot.lane.b32.xlu1 %v9066_v1, %s8628_s1 }
 0x461   :  { %1455 = vrot.lane.b32.xlu0 %v9061_v0, %s8628_s1 }
 0x464   :  { %1532 = vrot.lane.b32.xlu1 %v9081_v4, %s8628_s1 }
 0x465   :  { %1615 = vrot.lane.b32.xlu0 %v9072_v3, %s8628_s1 }
 0x469   :  { %1612 = vrot.lane.b32.xlu0 %v9083_v5, %s8628_s1 }
 0x46d   :  { %1808 = vrot.lane.b32.xlu0 %v9092_v7, %s8628_s1 }
 0x471   :  { %2160 = vrot.lane.b32.xlu0 %v9061_v0, %s8629_s11 }
 0x488   :  { %1109 = vmax.xlane.f32.xlu1 %v1108_v21 }
 0x499   :  { %1695 = vrot.lane.b32.xlu1 %v9090_v6, %s8628_s1 }
 0x49d   :  { %1692 = vrot.lane.b32.xlu1 %v9100_v8, %s8628_s1 }
 0x4a1   :  { %1885 = vrot.lane.b32.xlu1 %v9107_v9, %s8628_s1 }
 0x4a5   :  { %1962 = vrot.lane.b32.xlu1 %v9142_v22, %s8628_s1 }
 0x4a9   :  { %2039 = vrot.lane.b32.xlu1 %v9146_v23, %s8628_s1 }
 0x4d4   :  { %v1101_v24 = vpop.xlane.xlu0 %1100 }
 0x4d5   :  { %v1111_v25 = vsub.f32 %v867_v10, %v1101_v24 }
 0x4d7   :  { %v1115_v26 = vmul.f32 1.442695, %v1111_v25 }
 0x4d8   :  { %v1104_v27 = vpop.xlane.xlu1 %1103  ;;  %v1107_v28 = vpop.xlane.xlu0 %1106 }
 0x4d9   :  { %8097 = vpow2.f32 %v1115_v26  ;;  %v1112_v29 = vsub.f32 %v943_v13, %v1104_v27  ;;  %v1113_v30 = vsub.f32 %v1019_v14, %v1107_v28 }
 0x4db   :  { %v1117_v31 = vmul.f32 1.442695, %v1112_v29  ;;  %v1119_v32 = vmul.f32 1.442695, %v1113_v30 }
 0x4dc   :  { %v1456_v33 = vpop.permute.xlu0 %1455  ;;  %v1536_v39 = vpop.permute.xlu1 %1535 }
 0x4dd   :  { %8099 = vpow2.f32 %v1117_v31 }
 0x4de   :  { %8101 = vpow2.f32 %v1119_v32 }
 0x4e0   :  { %v1616_v37 = vpop.permute.xlu0 %1615  ;;  %v1453_v41 = vpop.permute.xlu1 %1452 }
 0x4e3   :  { %v9150_v34 = vpop.eup %8097 }
 0x4e4   :  { %7630 = vmatmul.mubr.msk.f32.vlgmr.msra.gmra.mrb[6].mxu0 %vm794_vm9, %v9150_v34  ;;  %v1613_v40 = vpop.permute.xlu0 %1612  ;;  %v1533_v43 = vpop.permute.xlu1 %1532 }
 0x4e5   :  { %7638 = vmatpush3.msra.mxu0 %v9142_v22  ;;  %7639 = vmatprep.mubr.msk.f32.mxu0 %vm8627_vm8, %v8626_v36 }
 0x4e6   :  { %7647 = vmatprep.subr.mxu0 %v8626_v36 }
 0x4e7   :  { %v9158_v35 = vpop.eup %8099 }
 0x4e8   :  { %v9160_v38 = vpop.eup %8101  ;;  %7635 = vmatmul.mubr.msk.f32.vlgmr.msra.gmra.mrb[14].mxu1 %vm794_vm9, %v9158_v35  ;;  %v1809_v42 = vpop.permute.xlu0 %1808 }
 0x4e9   :  { %7640 = vmatmul.mubr.msk.f32.vlgmr.msra.gmra.mrb[8].mxu0 %vm794_vm9, %v9160_v38  ;;  %7643 = vmatpush3.msra.mxu1 %v9146_v23 }
 0x4ea   :  { %7649 = vmatprep.mubr.msk.f32.mxu0 %vm8627_vm8, %v8626_v36  ;;  %7644 = vmatprep.mubr.msk.f32.mxu1 %vm8627_vm8, %v8626_v36 }
 0x4eb   :  { %7652 = vmatprep.subr.mxu1 %v8626_v36 }
 0x4ec   :  { %7648 = vmatpush3.xpose.msk.msra.mxu0 %vm794_vm9, %v1456_v33  ;;  %v2161_v17 = vpop.permute.xlu0 %2160 }
 0x4ed   :  { %7657 = vmatprep.subr.mxu0 %v8626_v36 }
 0x4ef   :  { %7650 = vmatmul.mubr.msk.f32.vlgmr.msra.gmra.mrb[10].mxu0 %vm794_vm9, %v1453_v41 }
 0x4f0   :  { %7658 = vmatpush3.xpose.msk.msra.mxu0 %vm794_vm9, %v1616_v37  ;;  %7659 = vmatprep.mubr.msk.f32.mxu0 %vm8627_vm8, %v8626_v36 }
 0x4f1   :  { %7667 = vmatprep.subr.mxu0 %v8626_v36 }
 0x4f3   :  { %7660 = vmatmul.mubr.msk.f32.vlgmr.msra.gmra.mrb[12].mxu0 %vm794_vm9, %v1613_v40 }
 0x4f4   :  { %7668 = vmatpush3.msra.mxu0 %v1809_v42  ;;  %7669 = vmatprep.mubr.msk.f32.mxu0 %vm8627_vm8, %v8626_v36 }
 0x4f5   :  { %7677 = vmatprep.subr.mxu0 %v8626_v36 }
 0x515   :  { %v1110_v44 = vpop.xlane.xlu1 %1109 }
 0x516   :  { %v1114_v45 = vsub.f32 %v9116_v19, %v1110_v44 }
 0x518   :  { %v1121_v46 = vmul.f32 1.442695, %v1114_v45 }
 0x519   :  { %v1696_v47 = vpop.permute.xlu1 %1695 }
 0x51a   :  { %8103 = vpow2.f32 %v1121_v46 }
 0x51d   :  { %v1693_v49 = vpop.permute.xlu1 %1692 }
 0x521   :  { %v1886_v50 = vpop.permute.xlu1 %1885 }
 0x524   :  { %v9184_v48 = vpop.eup %8103 }
 0x525   :  { %7645 = vmatmul.mubr.msk.f32.vlgmr.msra.gmra.mrb[16].mxu1 %vm794_vm9, %v9184_v48  ;;  %v1963_v27 = vpop.permute.xlu1 %1962 }
 0x526   :  { %7653 = vmatpush3.xpose.msk.msra.mxu1 %vm794_vm9, %v1536_v39  ;;  %7654 = vmatprep.mubr.msk.f32.mxu1 %vm8627_vm8, %v8626_v36 }
 0x527   :  { %7662 = vmatprep.subr.mxu1 %v8626_v36 }
 0x529   :  { %7655 = vmatmul.mubr.msk.f32.vlgmr.msra.gmra.mrb[18].mxu1 %vm794_vm9, %v1533_v43  ;;  %v2040_v28 = vpop.permute.xlu1 %2039 }
 0x52a   :  { %7663 = vmatpush3.xpose.msk.msra.mxu1 %vm794_vm9, %v1696_v47  ;;  %7664 = vmatprep.mubr.msk.f32.mxu1 %vm8627_vm8, %v8626_v36 }
 0x52b   :  { %7672 = vmatprep.subr.mxu1 %v8626_v36 }
 0x52d   :  { %7665 = vmatmul.mubr.msk.f32.vlgmr.msra.gmra.mrb[20].mxu1 %vm794_vm9, %v1693_v49 }
 0x52e   :  { %7673 = vmatpush3.msra.mxu1 %v1886_v50  ;;  %7674 = vmatprep.mubr.msk.f32.mxu1 %vm8627_vm8, %v8626_v36 }
 0x52f   :  { %7682 = vmatprep.subr.mxu1 %v8626_v36 }
 0x5b7   :  { %v9201_v51 = vpop.f32.mrb[6].mxu0 }
 0x5b8   :  { %v7631_v52 = vpop.f32.mrb[7].mxu0 }
 0x5bb   :  { %v9203_v53 = vpop.f32.mrb[14].mxu1 }
 0x5bc   :  { %v9205_v54 = vpop.f32.mrb[8].mxu0  ;;  %v7636_v55 = vpop.f32.mrb[15].mxu1 }
 0x5bd   :  { %v7641_v56 = vpop.f32.mrb[9].mxu0 }
 0x5c2   :  { %v1527_v57 = vpop.f32.mrb[10].mxu0 }
 0x5c3   :  { %v7651_v58 = vpop.f32.mrb[11].mxu0  ;;  %v1771_v59 = vsel %vm794_vm9, %v1527_v57, -inf }
 0x5c4   :  { %1772 = vmax.xlane.f32.xlu0 %v1771_v59 }
 0x5c6   :  { %v1687_v60 = vpop.f32.mrb[12].mxu0 }
 0x5c7   :  { %v7661_v61 = vpop.f32.mrb[13].mxu0  ;;  %v1777_v62 = vsel %vm794_vm9, %v1687_v60, -inf }
 0x5c8   :  { %1778 = vmax.xlane.f32.xlu0 %v1777_v62 }
 0x5f8   :  { %v9209_v63 = vpop.f32.mrb[16].mxu1 }
 0x5f9   :  { %v7646_v10 = vpop.f32.mrb[17].mxu1 }
 0x5fc   :  { %v1607_v11 = vpop.f32.mrb[18].mxu1 }
 0x5fd   :  { %v7656_v12 = vpop.f32.mrb[19].mxu1  ;;  %v1774_v13 = vsel %vm794_vm9, %v1607_v11, -inf }
 0x5fe   :  { %1775 = vmax.xlane.f32.xlu1 %v1774_v13 }
 0x600   :  { %v1767_v14 = vpop.f32.mrb[20].mxu1 }
 0x601   :  { %v7666_v15 = vpop.f32.mrb[21].mxu1  ;;  %v1780_v16 = vsel %vm794_vm9, %v1767_v14, -inf }
 0x602   :  { %1781 = vmax.xlane.f32.xlu0 %v1780_v16 }
 0x60f   :  { %2240 = vrot.lane.b32.xlu1 %v9070_v2, %s8629_s11 }
 0x613   :  { %2237 = vrot.lane.b32.xlu1 %v9081_v4, %s8629_s11 }
 0x617   :  { %2400 = vrot.lane.b32.xlu1 %v9090_v6, %s8629_s11 }
 0x618   :  { %2157 = vrot.lane.b32.xlu0 %v9066_v1, %s8629_s11 }
 0x61b   :  { %2397 = vrot.lane.b32.xlu1 %v9100_v8, %s8629_s11 }
 0x61c   :  { %2320 = vrot.lane.b32.xlu0 %v9072_v3, %s8629_s11 }
 0x61f   :  { %2590 = vrot.lane.b32.xlu1 %v9107_v9, %s8629_s11 }
 0x620   :  { %2317 = vrot.lane.b32.xlu0 %v9083_v5, %s8629_s11 }
 0x623   :  { %2667 = vrot.lane.b32.xlu1 %v9142_v22, %s8629_s11 }
 0x624   :  { %2513 = vrot.lane.b32.xlu0 %v9092_v7, %s8629_s11 }
 0x627   :  { %2744 = vrot.lane.b32.xlu1 %v9146_v23, %s8629_s11 }
 0x628   :  { %2865 = vrot.lane.b32.xlu0 %v9061_v0, %s8630_s29 }
 0x651   :  { %v1773_v18 = vpop.xlane.xlu0 %1772 }
 0x652   :  { %v1783_v19 = vsub.f32 %v1527_v57, %v1773_v18 }
 0x654   :  { %v1787_v20 = vmul.f32 1.442695, %v1783_v19 }
 0x655   :  { %v1779_v21 = vpop.xlane.xlu0 %1778 }
 0x656   :  { %8105 = vpow2.f32 %v1787_v20  ;;  %v1785_v24 = vsub.f32 %v1687_v60, %v1779_v21 }
 0x658   :  { %v1791_v25 = vmul.f32 1.442695, %v1785_v24 }
 0x65a   :  { %8107 = vpow2.f32 %v1791_v25 }
 0x660   :  { %v9237_v26 = vpop.eup %8105 }
 0x661   :  { %7670 = vmatmul.mubr.msk.f32.vlgmr.msra.gmra.mrb[14].mxu0 %vm794_vm9, %v9237_v26 }
 0x662   :  { %7678 = vmatpush3.msra.mxu0 %v1963_v27  ;;  %7679 = vmatprep.mubr.msk.f32.mxu0 %vm8627_vm8, %v8626_v36 }
 0x663   :  { %7687 = vmatprep.subr.mxu0 %v8626_v36 }
 0x664   :  { %v9244_v0 = vpop.eup %8107 }
 0x665   :  { %7680 = vmatmul.mubr.msk.f32.vlgmr.msra.gmra.mrb[16].mxu0 %vm794_vm9, %v9244_v0 }
 0x666   :  { %7689 = vmatprep.mubr.msk.f32.mxu0 %vm8627_vm8, %v8626_v36 }
 0x669   :  { %7688 = vmatpush3.xpose.msk.msra.mxu0 %vm794_vm9, %v2161_v17 }
 0x66a   :  { %7697 = vmatprep.subr.mxu0 %v8626_v36 }
 0x68b   :  { %v1776_v29 = vpop.xlane.xlu1 %1775 }
 0x68c   :  { %v1784_v30 = vsub.f32 %v1607_v11, %v1776_v29 }
 0x68e   :  { %v1789_v31 = vmul.f32 1.442695, %v1784_v30 }
 0x68f   :  { %v1782_v32 = vpop.xlane.xlu0 %1781  ;;  %v2241_v37 = vpop.permute.xlu1 %2240 }
 0x690   :  { %8109 = vpow2.f32 %v1789_v31  ;;  %v1786_v33 = vsub.f32 %v1767_v14, %v1782_v32 }
 0x692   :  { %v1793_v39 = vmul.f32 1.442695, %v1786_v33 }
 0x693   :  { %v2158_v40 = vpop.permute.xlu0 %2157  ;;  %v2238_v42 = vpop.permute.xlu1 %2237 }
 0x694   :  { %8111 = vpow2.f32 %v1793_v39  ;;  %7690 = vmatmul.mubr.msk.f32.vlgmr.msra.gmra.mrb[18].mxu0 %vm794_vm9, %v2158_v40 }
 0x695   :  { %7699 = vmatprep.mubr.msk.f32.mxu0 %vm8627_vm8, %v8626_v36 }
 0x697   :  { %v2321_v41 = vpop.permute.xlu0 %2320  ;;  %v2401_v46 = vpop.permute.xlu1 %2400 }
 0x698   :  { %7698 = vmatpush3.xpose.msk.msra.mxu0 %vm794_vm9, %v2321_v41 }
 0x699   :  { %7707 = vmatprep.subr.mxu0 %v8626_v36 }
 0x69a   :  { %v9257_v43 = vpop.eup %8109 }
 0x69b   :  { %7675 = vmatmul.mubr.msk.f32.vlgmr.msra.gmra.mrb[22].mxu1 %vm794_vm9, %v9257_v43  ;;  %v2318_v44 = vpop.permute.xlu0 %2317  ;;  %v2398_v49 = vpop.permute.xlu1 %2397 }
 0x69c   :  { %7683 = vmatpush3.msra.mxu1 %v2040_v28  ;;  %7700 = vmatmul.mubr.msk.f32.vlgmr.msra.gmra.mrb[20].mxu0 %vm794_vm9, %v2318_v44 }
 0x69d   :  { %7684 = vmatprep.mubr.msk.f32.mxu1 %vm8627_vm8, %v8626_v36  ;;  %7692 = vmatprep.subr.mxu1 %v8626_v36 }
 0x69e   :  { %v9265_v45 = vpop.eup %8111  ;;  %7709 = vmatprep.mubr.msk.f32.mxu0 %vm8627_vm8, %v8626_v36 }
 0x69f   :  { %7685 = vmatmul.mubr.msk.f32.vlgmr.msra.gmra.mrb[24].mxu1 %vm794_vm9, %v9265_v45  ;;  %v2514_v47 = vpop.permute.xlu0 %2513  ;;  %v2591_v50 = vpop.permute.xlu1 %2590 }
 0x6a0   :  { %7708 = vmatpush3.msra.mxu0 %v2514_v47  ;;  %7694 = vmatprep.mubr.msk.f32.mxu1 %vm8627_vm8, %v8626_v36 }
 0x6a1   :  { %7717 = vmatprep.subr.mxu0 %v8626_v36 }
 0x6a3   :  { %7693 = vmatpush3.xpose.msk.msra.mxu1 %vm794_vm9, %v2241_v37  ;;  %v2866_v21 = vpop.permute.xlu0 %2865 }
 0x6a4   :  { %7702 = vmatprep.subr.mxu1 %v8626_v36 }
 0x6a6   :  { %7695 = vmatmul.mubr.msk.f32.vlgmr.msra.gmra.mrb[26].mxu1 %vm794_vm9, %v2238_v42 }
 0x6a7   :  { %7703 = vmatpush3.xpose.msk.msra.mxu1 %vm794_vm9, %v2401_v46  ;;  %7704 = vmatprep.mubr.msk.f32.mxu1 %vm8627_vm8, %v8626_v36 }
 0x6a8   :  { %7712 = vmatprep.subr.mxu1 %v8626_v36 }
 0x6aa   :  { %7705 = vmatmul.mubr.msk.f32.vlgmr.msra.gmra.mrb[28].mxu1 %vm794_vm9, %v2398_v49 }
 0x6ab   :  { %7713 = vmatpush3.msra.mxu1 %v2591_v50  ;;  %7714 = vmatprep.mubr.msk.f32.mxu1 %vm8627_vm8, %v8626_v36 }
 0x6ac   :  { %7722 = vmatprep.subr.mxu1 %v8626_v36 }
 0x734   :  { %v9285_v52 = vpop.f32.mrb[14].mxu0 }
 0x735   :  { %v7671_v55 = vpop.f32.mrb[15].mxu0 }
 0x738   :  { %v9287_v56 = vpop.f32.mrb[16].mxu0 }
 0x739   :  { %v7681_v57 = vpop.f32.mrb[17].mxu0 }
 0x767   :  { %v2232_v58 = vpop.f32.mrb[18].mxu0 }
 0x768   :  { %v7691_v59 = vpop.f32.mrb[19].mxu0  ;;  %v2476_v60 = vsel %vm794_vm9, %v2232_v58, -inf }
 0x769   :  { %2477 = vmax.xlane.f32.xlu0 %v2476_v60 }
 0x76e   :  { %v9290_v61 = vpop.f32.mrb[22].mxu1 }
 0x76f   :  { %v7676_v62 = vpop.f32.mrb[23].mxu1  ;;  %v2392_v10 = vpop.f32.mrb[20].mxu0 }
 0x770   :  { %v7701_v11 = vpop.f32.mrb[21].mxu0  ;;  %v2482_v12 = vsel %vm794_vm9, %v2392_v10, -inf }
 0x771   :  { %2483 = vmax.xlane.f32.xlu0 %v2482_v12 }
 0x772   :  { %v9293_v13 = vpop.f32.mrb[24].mxu1 }
 0x773   :  { %v7686_v14 = vpop.f32.mrb[25].mxu1 }
 0x779   :  { %v2312_v15 = vpop.f32.mrb[26].mxu1 }
 0x77a   :  { %v7696_v16 = vpop.f32.mrb[27].mxu1  ;;  %v2479_v17 = vsel %vm794_vm9, %v2312_v15, -inf }
 0x77b   :  { %2480 = vmax.xlane.f32.xlu1 %v2479_v17 }
 0x77d   :  { %v2472_v18 = vpop.f32.mrb[28].mxu1 }
 0x77e   :  { %v7706_v19 = vpop.f32.mrb[29].mxu1  ;;  %v2485_v20 = vsel %vm794_vm9, %v2472_v18, -inf }
 0x77f   :  { %2486 = vmax.xlane.f32.xlu0 %v2485_v20 }
 0x78c   :  { %2945 = vrot.lane.b32.xlu1 %v9070_v2, %s8630_s29 }
 0x790   :  { %2942 = vrot.lane.b32.xlu1 %v9081_v4, %s8630_s29  ;;  %v2668_v4 = vpop.permute.xlu1 %2667 }
 0x794   :  { %3105 = vrot.lane.b32.xlu1 %v9090_v6, %s8630_s29 }
 0x795   :  { %2862 = vrot.lane.b32.xlu0 %v9066_v1, %s8630_s29  ;;  %v2745_v1 = vpop.permute.xlu1 %2744 }
 0x798   :  { %3102 = vrot.lane.b32.xlu1 %v9100_v8, %s8630_s29 }
 0x799   :  { %3025 = vrot.lane.b32.xlu0 %v9072_v3, %s8630_s29 }
 0x79d   :  { %3022 = vrot.lane.b32.xlu0 %v9083_v5, %s8630_s29 }
 0x7f6   :  { %v2478_v2 = vpop.xlane.xlu0 %2477 }
 0x7f7   :  { %v2488_v24 = vsub.f32 %v2232_v58, %v2478_v2 }
 0x7f9   :  { %v2492_v25 = vmul.f32 1.442695, %v2488_v24 }
 0x7fb   :  { %8113 = vpow2.f32 %v2492_v25  ;;  %v1795_v25 = vsel %vm794_vm9, %v9237_v26, 0.0 }
 0x7fe   :  { %v2484_v27 = vpop.xlane.xlu0 %2483 }
 0x7ff   :  { %v2490_v6 = vsub.f32 %v2392_v10, %v2484_v27 }
 0x801   :  { %v2496_v28 = vmul.f32 1.442695, %v2490_v6 }
 0x803   :  { %8115 = vpow2.f32 %v2496_v28 }
 0x805   :  { %v9311_v29 = vpop.eup %8113 }
 0x806   :  { %7710 = vmatmul.mubr.msk.f32.vlgmr.msra.gmra.mrb[22].mxu0 %vm794_vm9, %v9311_v29  ;;  %v2500_v27 = vsel %vm794_vm9, %v9311_v29, 0.0 }
 0x807   :  { %7718 = vmatpush3.msra.mxu0 %v2668_v4  ;;  %7719 = vmatprep.mubr.msk.f32.mxu0 %vm8627_vm8, %v8626_v36  ;;  %v1798_v4 = vsel %vm794_vm9, %v9257_v43, 0.0 }
 0x808   :  { %v2481_v3 = vpop.xlane.xlu1 %2480  ;;  %7727 = vmatprep.subr.mxu0 %v8626_v36 }
 0x809   :  { %v2489_v5 = vsub.f32 %v2312_v15, %v2481_v3 }
 0x80b   :  { %v2494_v8 = vmul.f32 1.442695, %v2489_v5 }
 0x80c   :  { %v2487_v30 = vpop.xlane.xlu0 %2486  ;;  %v2946_v39 = vpop.permute.xlu1 %2945 }
 0x80d   :  { %v9318_v31 = vpop.eup %8115  ;;  %8117 = vpow2.f32 %v2494_v8  ;;  %v2491_v32 = vsub.f32 %v2472_v18, %v2487_v30 }
 0x80e   :  { %7720 = vmatmul.mubr.msk.f32.vlgmr.msra.gmra.mrb[24].mxu0 %vm794_vm9, %v9318_v31  ;;  %v2506_v30 = vsel %vm794_vm9, %v9318_v31, 0.0  ;;  %v1123_v31 = vsel %vm794_vm9, %v9150_v34, 0.0 }
 0x80f   :  { %v2498_v33 = vmul.f32 1.442695, %v2491_v32  ;;  %7728 = vmatpush3.xpose.msk.msra.mxu0 %vm794_vm9, %v2866_v21  ;;  %7729 = vmatprep.mubr.msk.f32.mxu0 %vm8627_vm8, %v8626_v36 }
 0x810   :  { %v2863_v37 = vpop.permute.xlu0 %2862  ;;  %7737 = vmatprep.subr.mxu0 %v8626_v36  ;;  %v2943_v44 = vpop.permute.xlu1 %2942 }
 0x811   :  { %8119 = vpow2.f32 %v2498_v33 }
 0x812   :  { %7730 = vmatmul.mubr.msk.f32.vlgmr.msra.gmra.mrb[26].mxu0 %vm794_vm9, %v2863_v37 }
 0x813   :  { %7739 = vmatprep.mubr.msk.f32.mxu0 %vm8627_vm8, %v8626_v36 }
 0x814   :  { %v3026_v40 = vpop.permute.xlu0 %3025  ;;  %v3106_v47 = vpop.permute.xlu1 %3105 }
 0x815   :  { %7738 = vmatpush3.xpose.msk.msra.mxu0 %vm794_vm9, %v3026_v40 }
 0x816   :  { %7747 = vmatprep.subr.mxu0 %v8626_v36 }
 0x817   :  { %v8118_v41 = vpop.eup %8117 }
 0x818   :  { %7715 = vmatmul.mubr.msk.f32.vlgmr.msra.gmra.mrb[30].mxu1 %vm794_vm9, %v8118_v41  ;;  %v3023_v42 = vpop.permute.xlu0 %3022  ;;  %v3103_v49 = vpop.permute.xlu1 %3102 }
 0x819   :  { %7723 = vmatpush3.msra.mxu1 %v2745_v1  ;;  %7740 = vmatmul.mubr.msk.f32.vlgmr.msra.gmra.mrb[28].mxu0 %vm794_vm9, %v3023_v42 }
 0x81a   :  { %7724 = vmatprep.mubr.msk.f32.mxu1 %vm8627_vm8, %v8626_v36  ;;  %7732 = vmatprep.subr.mxu1 %v8626_v36 }
 0x81b   :  { %v9336_v46 = vpop.eup %8119  ;;  %7749 = vmatprep.mubr.msk.f32.mxu0 %vm8627_vm8, %v8626_v36 }
 0x81c   :  { %7725 = vmatmul.mubr.msk.f32.vlgmr.msra.gmra.mrb[32].mxu1 %vm794_vm9, %v9336_v46  ;;  %v2509_v34 = vsel %vm794_vm9, %v9336_v46, 0.0 }
 0x81d   :  { %7734 = vmatprep.mubr.msk.f32.mxu1 %vm8627_vm8, %v8626_v36 }
 0x820   :  { %7733 = vmatpush3.xpose.msk.msra.mxu1 %vm794_vm9, %v2946_v39 }
 0x821   :  { %7742 = vmatprep.subr.mxu1 %v8626_v36 }
 0x823   :  { %7735 = vmatmul.mubr.msk.f32.vlgmr.msra.gmra.mrb[34].mxu1 %vm794_vm9, %v2943_v44 }
 0x824   :  { %7743 = vmatpush3.xpose.msk.msra.mxu1 %vm794_vm9, %v3106_v47  ;;  %7744 = vmatprep.mubr.msk.f32.mxu1 %vm8627_vm8, %v8626_v36  ;;  %v1129_v47 = vsel %vm794_vm9, %v9160_v38, 0.0 }
 0x825   :  { %7752 = vmatprep.subr.mxu1 %v8626_v36 }
 0x827   :  { %7745 = vmatmul.mubr.msk.f32.vlgmr.msra.gmra.mrb[36].mxu1 %vm794_vm9, %v3103_v49 }
 0x828   :  { %7754 = vmatprep.mubr.msk.f32.mxu1 %vm8627_vm8, %v8626_v36 }
 0x8d9   :  { %v9354_v50 = vpop.f32.mrb[22].mxu0 }
 0x8da   :  { %v7711_v55 = vpop.f32.mrb[23].mxu0 }
 0x8e1   :  { %v9356_v57 = vpop.f32.mrb[24].mxu0 }
 0x8e2   :  { %v7721_v58 = vpop.f32.mrb[25].mxu0 }
 0x8e5   :  { %v2937_v59 = vpop.f32.mrb[26].mxu0 }
 0x8e6   :  { %v7731_v60 = vpop.f32.mrb[27].mxu0  ;;  %v3181_v62 = vsel %vm794_vm9, %v2937_v59, -inf }
 0x8e7   :  { %3182 = vmax.xlane.f32.xlu0 %v3181_v62  ;;  %v1132_v60 = vsel %vm794_vm9, %v9184_v48, 0.0 }
 0x8eb   :  { %v9359_v10 = vpop.f32.mrb[30].mxu1 }
 0x8ec   :  { %v7716_v11 = vpop.f32.mrb[31].mxu1  ;;  %v3097_v12 = vpop.f32.mrb[28].mxu0 }
 0x8ed   :  { %v7741_v14 = vpop.f32.mrb[29].mxu0  ;;  %v3187_v15 = vsel %vm794_vm9, %v3097_v12, -inf }
 0x8ee   :  { %3188 = vmax.xlane.f32.xlu0 %v3187_v15 }
 0x8ef   :  { %v9362_v16 = vpop.f32.mrb[32].mxu1 }
 0x8f0   :  { %v7726_v17 = vpop.f32.mrb[33].mxu1 }
 0x8f6   :  { %v3017_v18 = vpop.f32.mrb[34].mxu1 }
 0x8f7   :  { %v7736_v19 = vpop.f32.mrb[35].mxu1  ;;  %v3184_v20 = vsel %vm794_vm9, %v3017_v18, -inf }
 0x8f8   :  { %3185 = vmax.xlane.f32.xlu1 %v3184_v20 }
 0x8fa   :  { %v3177_v21 = vpop.f32.mrb[36].mxu1 }
 0x8fb   :  { %v7746_v2 = vpop.f32.mrb[37].mxu1  ;;  %v3190_v24 = vsel %vm794_vm9, %v3177_v21, -inf }
 0x8fc   :  { %3191 = vmax.xlane.f32.xlu0 %v3190_v24 }
 0x909   :  { %3295 = vrot.lane.b32.xlu1 %v9107_v9, %s8630_s29  ;;  %v1804_v9 = vsel %vm794_vm9, %v9265_v45, 0.0 }
 0x90d   :  { %3372 = vrot.lane.b32.xlu1 %v9142_v22, %s8630_s29  ;;  %v2503_v22 = vsel %vm794_vm9, %v8118_v41, 0.0 }
 0x911   :  { %3449 = vrot.lane.b32.xlu1 %v9146_v23, %s8630_s29 }
 0x912   :  { %3218 = vrot.lane.b32.xlu0 %v9092_v7, %s8630_s29  ;;  %v1801_v7 = vsel %vm794_vm9, %v9244_v0, 0.0 }
 0x931   :  { %1796 = vadd.xlane.f32.xlu0 %v1795_v25 }
 0x935   :  { %1799 = vadd.xlane.f32.xlu1 %v1798_v4  ;;  %2501 = vadd.xlane.f32.xlu0 %v2500_v27 }
 0x939   :  { %1805 = vadd.xlane.f32.xlu1 %v1804_v9  ;;  %2504 = vadd.xlane.f32.xlu0 %v2503_v22 }
 0x93d   :  { %1802 = vadd.xlane.f32.xlu0 %v1801_v7 }
 0x974   :  { %v3183_v23 = vpop.xlane.xlu0 %3182 }
 0x975   :  { %v3193_v26 = vsub.f32 %v2937_v59, %v3183_v23  ;;  %v1126_v59 = vsel %vm794_vm9, %v9158_v35, 0.0 }
 0x977   :  { %v3197_v6 = vmul.f32 1.442695, %v3193_v26 }
 0x979   :  { %8121 = vpow2.f32 %v3197_v6 }
 0x97b   :  { %v3189_v43 = vpop.xlane.xlu0 %3188 }
 0x97c   :  { %v3195_v28 = vsub.f32 %v3097_v12, %v3189_v43 }
 0x97e   :  { %v3201_v1 = vmul.f32 1.442695, %v3195_v28 }
 0x980   :  { %8123 = vpow2.f32 %v3201_v1 }
 0x983   :  { %v8122_v29 = vpop.eup %8121 }
 0x984   :  { %v3205_v3 = vsel %vm794_vm9, %v8122_v29, 0.0 }
 0x985   :  { %v3186_v45 = vpop.xlane.xlu1 %3185  ;;  %3206 = vadd.xlane.f32.xlu0 %v3205_v3 }
 0x986   :  { %v3194_v5 = vsub.f32 %v3017_v18, %v3186_v45 }
 0x988   :  { %v3199_v8 = vmul.f32 1.442695, %v3194_v5 }
 0x989   :  { %v3296_v0 = vpop.permute.xlu1 %3295  ;;  %v3192_v32 = vpop.xlane.xlu0 %3191  ;;  %2507 = vadd.xlane.f32.xlu0 %v2506_v30 }
 0x98a   :  { %v8124_v33 = vpop.eup %8123  ;;  %8125 = vpow2.f32 %v3199_v8  ;;  %v3196_v37 = vsub.f32 %v3177_v21, %v3192_v32  ;;  %7753 = vmatpush3.msra.mxu1 %v3296_v0  ;;  %v3559_v0 = vld [vmem:[%s10034_s9 + $0x8] sm:$0xff] }
 0x98b   :  { %7762 = vmatprep.subr.mxu1 %v8626_v36  ;;  %v3211_v40 = vsel %vm794_vm9, %v8124_v33, 0.0 }
 0x98c   :  { %v3203_v39 = vmul.f32 1.442695, %v3196_v37  ;;  %v3561_v37 = vld [vmem:[%s10034_s9 + $0x18] sm:$0xff] }
 0x98d   :  { %v3219_v41 = vpop.permute.xlu0 %3218  ;;  %3212 = vadd.xlane.f32.xlu0 %v3211_v40  ;;  %v3373_v42 = vpop.permute.xlu1 %3372 }
 0x98e   :  { %8127 = vpow2.f32 %v3203_v39  ;;  %7748 = vmatpush3.msra.mxu0 %v3219_v41 }
 0x98f   :  { %7750 = vmatmul.mubr.msk.f32.vlgmr.msra.gmra.mrb[30].mxu0 %vm794_vm9, %v8122_v29  ;;  %7757 = vmatprep.subr.mxu0 %v8626_v36 }
 0x990   :  { %7758 = vmatpush3.msra.mxu0 %v3373_v42  ;;  %7759 = vmatprep.mubr.msk.f32.mxu0 %vm8627_vm8, %v8626_v36 }
 0x991   :  { %1124 = vadd.xlane.f32.xlu0 %v1123_v31  ;;  %v3450_v49 = vpop.permute.xlu1 %3449 }
 0x993   :  { %7760 = vmatmul.mubr.msk.f32.vlgmr.msra.gmra.mrb[32].mxu0 %vm794_vm9, %v8124_v33  ;;  %v3560_v33 = vld [vmem:[%s10034_s9 + $0x10] sm:$0xff] }
 0x994   :  { %v8126_v44 = vpop.eup %8125  ;;  %v8025_v39 = vpack.c.bf16 %v3561_v37, %v3560_v33 }
 0x995   :  { %7755 = vmatmul.mubr.msk.f32.vlgmr.msra.gmra.mrb[38].mxu1 %vm794_vm9, %v8126_v44  ;;  %v3208_v55 = vsel %vm794_vm9, %v8126_v44, 0.0  ;;  %1130 = vadd.xlane.f32.xlu0 %v1129_v47 }
 0x996   :  { %7763 = vmatpush3.msra.mxu1 %v3450_v49  ;;  %3209 = vadd.xlane.f32.xlu1 %v3208_v55 }
 0x997   :  { %7764 = vmatprep.mubr.msk.f32.mxu1 %vm8627_vm8, %v8626_v36 }
 0x998   :  { %v8128_v58 = vpop.eup %8127 }
 0x999   :  { %7765 = vmatmul.mubr.msk.f32.vlgmr.msra.gmra.mrb[40].mxu1 %vm794_vm9, %v8128_v58  ;;  %v3214_v38 = vsel %vm794_vm9, %v8128_v58, 0.0 }
 0x99a   :  { %2510 = vadd.xlane.f32.xlu1 %v2509_v34 }
 0x99e   :  { %3215 = vadd.xlane.f32.xlu1 %v3214_v38 }
 0x9a2   :  { %1127 = vadd.xlane.f32.xlu1 %v1126_v59 }
 0x9a6   :  { %1133 = vadd.xlane.f32.xlu1 %v1132_v60 }
 0x9be   :  { %v1797_v62 = vpop.xlane.xlu0 %1796 }
 0x9bf   :  { %8129 = vrcp.f32 %v1797_v62 }
 0x9c2   :  { %v1800_v11 = vpop.xlane.xlu1 %1799  ;;  %v2502_v12 = vpop.xlane.xlu0 %2501 }
 0x9c3   :  { %8131 = vrcp.f32 %v1800_v11 }
 0x9c4   :  { %8133 = vrcp.f32 %v2502_v12 }
 0x9c6   :  { %v2505_v14 = vpop.xlane.xlu0 %2504  ;;  %v1806_v15 = vpop.xlane.xlu1 %1805 }
 0x9c7   :  { %8135 = vrcp.f32 %v2505_v14 }
 0x9c9   :  { %v8130_v46 = vpop.eup %8129 }
 0x9ca   :  { %v1803_v17 = vpop.xlane.xlu0 %1802  ;;  %v2119_v18 = vmul.f32 %v8130_v46, %v9285_v52 }
 0x9cb   :  { %8137 = vrcp.f32 %v1803_v17 }
 0x9cc   :  { %2127 = vrot.lane.b32.xlu0 %v2119_v18, %s8611_s28  ;;  %8139 = vrcp.f32 %v1806_v15 }
 0x9cd   :  { %v8132_v35 = vpop.eup %8131 }
 0x9ce   :  { %v2120_v48 = vmul.f32 %v8132_v35, %v9290_v61  ;;  %v8134_v19 = vpop.eup %8133 }
 0x9cf   :  { %v2824_v20 = vmul.f32 %v8134_v19, %v9354_v50 }
 0x9d0   :  { %2129 = vrot.lane.b32.xlu1 %v2120_v48, %s8611_s28 }
 0x9d1   :  { %v8136_v21 = vpop.eup %8135 }
 0x9d2   :  { %v2825_v24 = vmul.f32 %v8136_v21, %v9359_v10 }
 0x9d4   :  { %2832 = vrot.lane.b32.xlu1 %v2824_v20, %s8631_s22 }
 0x9d5   :  { %v8138_v2 = vpop.eup %8137 }
 0x9d6   :  { %v2121_v52 = vmul.f32 %v8138_v2, %v9287_v56  ;;  %v8140_v25 = vpop.eup %8139 }
 0x9d7   :  { %v2122_v61 = vmul.f32 %v8140_v25, %v9293_v13 }
 0x9d8   :  { %2834 = vrot.lane.b32.xlu1 %v2825_v24, %s8631_s22  ;;  %2131 = vrot.lane.b32.xlu0 %v2121_v52, %s8611_s28  ;;  %v7298_v52 = vld [vmem:[#allocation19] ss:$0 sm:$0xff] }
 0x9dc   :  { %2133 = vrot.lane.b32.xlu1 %v2122_v61, %s8611_s28 }
 0xa12   :  { %v3207_v4 = vpop.xlane.xlu0 %3206 }
 0xa16   :  { %v2508_v50 = vpop.xlane.xlu0 %2507 }
 0xa1a   :  { %v3213_v27 = vpop.xlane.xlu0 %3212 }
 0xa1e   :  { %v1125_v9 = vpop.xlane.xlu0 %1124 }
 0xa1f   :  { %8141 = vrcp.f32 %v1125_v9 }
 0xa22   :  { %v1131_v22 = vpop.xlane.xlu0 %1130 }
 0xa23   :  { %v3210_v7 = vpop.xlane.xlu1 %3209  ;;  %8143 = vrcp.f32 %v1131_v22  ;;  %v8234_v22 = vld [vmem:[#allocation2] sm:$0xff] }
 0xa27   :  { %v2511_v10 = vpop.xlane.xlu1 %2510 }
 0xa29   :  { %v8142_v23 = vpop.eup %8141 }
 0xa2a   :  { %v1431_v56 = vmul.f32 %v8142_v23, %v9201_v51 }
 0xa2b   :  { %v3216_v26 = vpop.xlane.xlu1 %3215 }
 0xa2c   :  { %1435 = vst.msk [vmem:[#allocation6] sm:$0xff] %vm794_vm9, %v1431_v56 }
 0xa2d   :  { %v8144_v6 = vpop.eup %8143 }
 0xa2e   :  { %v1433_v13 = vmul.f32 %v8144_v6, %v9205_v54 }
 0xa2f   :  { %v1128_v43 = vpop.xlane.xlu1 %1127 }
 0xa30   :  { %8145 = vrcp.f32 %v1128_v43  ;;  %1437 = vst.msk [vmem:[#allocation6 + $0x10] sm:$0xff] %vm794_vm9, %v1433_v13  ;;  %v8235_v43 = vld [vmem:[#allocation2 + $0x10] sm:$0xff] }
 0xa33   :  { %v1134_v28 = vpop.xlane.xlu1 %1133 }
 0xa34   :  { %8147 = vrcp.f32 %v1134_v28 }
 0xa35   :  { %8149 = vrcp.f32 %v3207_v4 }
 0xa36   :  { %8151 = vrcp.f32 %v2508_v50 }
 0xa37   :  { %8153 = vrcp.f32 %v3210_v7 }
 0xa38   :  { %8155 = vrcp.f32 %v3213_v27  ;;  %v8233_v27 = vld [vmem:[#allocation2 + $0x8] sm:$0xff] }
 0xa39   :  { %8157 = vrcp.f32 %v2511_v10 }
 0xa3a   :  { %v8146_v1 = vpop.eup %8145  ;;  %8159 = vrcp.f32 %v3216_v26 }
 0xa3b   :  { %v1432_v29 = vmul.f32 %v8146_v1, %v9203_v53 }
 0xa3d   :  { %1436 = vst.msk [vmem:[#allocation6 + $0x8] sm:$0xff] %vm794_vm9, %v1432_v29  ;;  %v8236_v29 = vld [vmem:[#allocation2 + $0x18] sm:$0xff] }
 0xa3e   :  { %v8148_v3 = vpop.eup %8147  ;;  %v2128_v51 = vpop.permute.xlu0 %2127 }
 0xa3f   :  { %2140 = vst.msk [vmem:[#allocation6] sm:$0xff] %vm2139_vm10, %v2128_v51  ;;  %v1434_v45 = vmul.f32 %v8148_v3, %v9209_v63  ;;  %v3558_v63 = vld [vmem:[%s10034_s9] sm:$0xff]  ;;  %v8150_v40 = vpop.eup %8149 }
 0xa40   :  { %v8021_v32 = vpack.c.bf16 %v3559_v0, %v3558_v63  ;;  %v8152_v44 = vpop.eup %8151 }
 0xa41   :  { %1438 = vst.msk [vmem:[#allocation6 + $0x18] sm:$0xff] %vm794_vm9, %v1434_v45  ;;  %v2826_v55 = vmul.f32 %v8152_v44, %v9356_v57  ;;  %v8154_v58 = vpop.eup %8153 }
 0xa42   :  { %v2130_v54 = vpop.permute.xlu1 %2129  ;;  %8022 = vmatprep.subr.bf16.mxu0 %v8021_v32  ;;  %v8156_v38 = vpop.eup %8155 }
 0xa43   :  { %2141 = vst.msk [vmem:[#allocation6 + $0x8] sm:$0xff] %vm2139_vm10, %v2130_v54  ;;  %8024 = vmatpush3.bf16.msra.mxu0 %v8021_v32  ;;  %v8158_v62 = vpop.eup %8157 }
 0xa44   :  { %8026 = vmatprep.subr.bf16.mxu0 %v8025_v39  ;;  %v2827_v46 = vmul.f32 %v8158_v62, %v9362_v16  ;;  %v8160_v57 = vpop.eup %8159 }
 0xa46   :  { %v2833_v5 = vpop.permute.xlu1 %2832 }
 0xa47   :  { %2845 = vst.msk [vmem:[#allocation6] sm:$0xff] %vm2844_vm11, %v2833_v5  ;;  %8028 = vmatpush3.bf16.msra.mxu0 %v8025_v39 }
 0xa4a   :  { %v2835_v8 = vpop.permute.xlu1 %2834  ;;  %v2132_v53 = vpop.permute.xlu0 %2131 }
 0xa4b   :  { %2846 = vst.msk [vmem:[#allocation6 + $0x8] sm:$0xff] %vm2844_vm11, %v2835_v8 }
 0xa4c   :  { %2142 = vst.msk [vmem:[#allocation6 + $0x10] sm:$0xff] %vm2139_vm10, %v2132_v53 }
 0xa4e   :  { %v2134_v30 = vpop.permute.xlu1 %2133 }
 0xa4f   :  { %2143 = vst.msk [vmem:[#allocation6 + $0x18] sm:$0xff] %vm2139_vm10, %v2134_v30 }
 0xa62   :  { %v3290_v41 = vpop.f32.mrb[30].mxu0 }
 0xa63   :  { %v3529_v42 = vmul.f32 %v8150_v40, %v3290_v41  ;;  %v7751_v31 = vpop.f32.mrb[31].mxu0 }
 0xa65   :  { %3537 = vrot.lane.b32.xlu0 %v3529_v42, %s8632_s8 }
 0xa66   :  { %v3444_v47 = vpop.f32.mrb[32].mxu0 }
 0xa67   :  { %v7761_v49 = vpop.f32.mrb[33].mxu0  ;;  %v3531_v11 = vmul.f32 %v8156_v38, %v3444_v47  ;;  %v3860_v38 = vld [vmem:[#allocation27] sm:$0xff] }
 0xa68   :  { %v3367_v34 = vpop.f32.mrb[38].mxu1 }
 0xa69   :  { %v3530_v59 = vmul.f32 %v8154_v58, %v3367_v34  ;;  %v7756_v60 = vpop.f32.mrb[39].mxu1  ;;  %2836 = vrot.lane.b32.xlu0 %v2826_v55, %s8631_s22  ;;  %v3748_v58 = vld [vmem:[#allocation24] sm:$0xff]  ;;  %v3749_v34 = vld [vmem:[#allocation24 + $0x8] sm:$0xff] }
 0xa6a   :  { %v3861_v60 = vld [vmem:[#allocation27 + $0x8] sm:$0xff] }
 0xa6b   :  { %3539 = vrot.lane.b32.xlu1 %v3530_v59, %s8632_s8  ;;  %v8029_v59 = vpack.c.bf16 %v3749_v34, %v3748_v58  ;;  %v8037_v62 = vpack.c.bf16 %v3861_v60, %v3860_v38 }
 0xa6c   :  { %v3521_v12 = vpop.f32.mrb[40].mxu1 }
 0xa6d   :  { %v7766_v14 = vpop.f32.mrb[41].mxu1  ;;  %3541 = vrot.lane.b32.xlu0 %v3531_v11, %s8632_s8  ;;  %v3532_v15 = vmul.f32 %v8160_v57, %v3521_v12  ;;  %v3750_v11 = vld [vmem:[#allocation24 + $0x10] sm:$0xff]  ;;  %v3751_v12 = vld [vmem:[#allocation24 + $0x18] sm:$0xff]  ;;  %8030 = vmatprep.subr.bf16.mxu1 %v8029_v59 }
 0xa6e   :  { %v3862_v14 = vld [vmem:[#allocation27 + $0x10] sm:$0xff]  ;;  %v3863_v57 = vld [vmem:[#allocation27 + $0x18] sm:$0xff]  ;;  %8038 = vmatprep.subr.bf16.mxu0 %v8037_v62  ;;  %8032 = vmatpush3.bf16.msra.mxu1 %v8029_v59 }
 0xa6f   :  { %2838 = vrot.lane.b32.xlu1 %v2827_v46, %s8631_s22  ;;  %v8033_v46 = vpack.c.bf16 %v3751_v12, %v3750_v11 }
 0xa71   :  { %8034 = vmatprep.subr.bf16.mxu1 %v8033_v46 }
 0xa72   :  { %8036 = vmatpush3.bf16.msra.mxu1 %v8033_v46 }
 0xa73   :  { %3543 = vrot.lane.b32.xlu1 %v3532_v15, %s8632_s8  ;;  %v8041_v15 = vpack.c.bf16 %v3863_v57, %v3862_v14  ;;  %v7315_v57 = vld [vmem:[%s10043_s18] ss:$0 sm:$0xff] }
 0xad7   :  { %v3538_v17 = vpop.permute.xlu0 %3537 }
 0xad8   :  { %3550 = vst.msk [vmem:[#allocation6] sm:$0xff] %vm3549_vm12, %v3538_v17  ;;  %v3960_v17 = vld [vmem:[%s10042_s17] sm:$0xff] }
 0xadb   :  { %v2837_v18 = vpop.permute.xlu0 %2836 }
 0xadc   :  { %2847 = vst.msk [vmem:[#allocation6 + $0x10] sm:$0xff] %vm2844_vm11, %v2837_v18  ;;  %v3961_v18 = vld [vmem:[%s10042_s17 + $0x8] sm:$0xff] }
 0xadd   :  { %v3540_v35 = vpop.permute.xlu1 %3539 }
 0xade   :  { %3551 = vst.msk [vmem:[#allocation6 + $0x8] sm:$0xff] %vm3549_vm12, %v3540_v35  ;;  %v8045_v35 = vpack.c.bf16 %v3961_v18, %v3960_v17 }
 0xadf   :  { %v3542_v48 = vpop.permute.xlu0 %3541  ;;  %v3554_v19 = vld [vmem:[#allocation6] sm:$0xff] }
 0xae0   :  { %3552 = vst.msk [vmem:[#allocation6 + $0x10] sm:$0xff] %vm3549_vm12, %v3542_v48  ;;  %7775 = vmatprep.mubr.msk.f32.mxu0 %vm290_vm7, %v3554_v19  ;;  %8046 = vmatprep.subr.bf16.mxu1 %v8045_v35 }
 0xae1   :  { %v2839_v16 = vpop.permute.xlu1 %2838 }
 0xae2   :  { %2848 = vst.msk [vmem:[#allocation6 + $0x18] sm:$0xff] %vm2844_vm11, %v2839_v16 }
 0xae5   :  { %v3544_v20 = vpop.permute.xlu1 %3543  ;;  %v3555_v21 = vld [vmem:[#allocation6 + $0x8] sm:$0xff] }
 0xae6   :  { %3553 = vst.msk [vmem:[#allocation6 + $0x18] sm:$0xff] %vm3549_vm12, %v3544_v20  ;;  %7776 = vmatmul.mubr.msk.f32.vlgmr.msra.gmra.mrb[34].mxu0 %vm290_vm7, %v3555_v21 }
 0xae7   :  { %v3556_v2 = vld [vmem:[#allocation6 + $0x10] sm:$0xff]  ;;  %8040 = vmatpush3.bf16.msra.mxu0 %v8037_v62 }
 0xae8   :  { %7778 = vmatprep.mubr.msk.f32.mxu0 %vm290_vm7, %v3556_v2  ;;  %8042 = vmatprep.subr.bf16.mxu0 %v8041_v15 }
 0xaeb   :  { %8044 = vmatpush3.bf16.msra.mxu0 %v8041_v15 }
 0xaec   :  { %7823 = vmatprep.subr.mxu0 %v8626_v36 }
 0xaed   :  { %v3557_v24 = vld [vmem:[#allocation6 + $0x18] sm:$0xff] }
 0xaee   :  { %7779 = vmatmul.mubr.msk.f32.gmra.mrb[36].mxu0 %vm290_vm7, %v3557_v24 }
 0xbb9   :  { %v7777_v25 = vpop.f32.mrb[34].mxu0 }
 0xbba   :  { %v3653_v61 = vadd.f32 %v7777_v25, %v7298_v52  ;;  %v3647_v4 = vpop.f32.mrb[35].mxu0 }
 0xbbb   :  { %v3648_v50 = vadd.f32 %v7298_v52, %v3647_v4 }
 0xbbc   :  { %v3667_v9 = vadd.f32 %v8233_v27, %v3653_v61  ;;  %v7303_v27 = vld [vmem:[#allocation21] ss:$0 sm:$0xff] }
 0xbbd   :  { %v3666_v7 = vadd.f32 %v8234_v22, %v3648_v50 }
 0xbbe   :  { %v3675_v10 = vsel %vm290_vm7, %v3667_v9, 0.0 }
 0xbbf   :  { %3676 = vadd.xlane.f32.xlu1 %v3675_v10  ;;  %v3672_v23 = vsel %vm290_vm7, %v3666_v7, 0.0  ;;  %v7304_v10 = vld [vmem:[#allocation22] ss:$0 sm:$0xff] }
 0xbc0   :  { %3673 = vadd.xlane.f32.xlu0 %v3672_v23 }
 0xbc1   :  { %v7780_v56 = vpop.f32.mrb[36].mxu0 }
 0xbc2   :  { %v3657_v26 = vpop.f32.mrb[37].mxu0  ;;  %v3663_v6 = vadd.f32 %v7780_v56, %v7298_v52 }
 0xbc3   :  { %v3658_v13 = vadd.f32 %v7298_v52, %v3657_v26 }
 0xbc4   :  { %v3669_v3 = vadd.f32 %v8236_v29, %v3663_v6 }
 0xbc5   :  { %v3668_v28 = vadd.f32 %v8235_v43, %v3658_v13  ;;  %v3962_v43 = vld [vmem:[%s10042_s17 + $0x10] sm:$0xff] }
 0xbc6   :  { %v3681_v51 = vsel %vm290_vm7, %v3669_v3, 0.0 }
 0xbc7   :  { %v3678_v1 = vsel %vm290_vm7, %v3668_v28, 0.0 }
 0xbc8   :  { %3679 = vadd.xlane.f32.xlu0 %v3678_v1 }
 0xbcc   :  { %3682 = vadd.xlane.f32.xlu0 %v3681_v51 }
 0xc4c   :  { %v3677_v45 = vpop.xlane.xlu1 %3676 }
 0xc4d   :  { %v3685_v54 = vmul.f32 0.03125, %v3677_v45  ;;  %v3674_v5 = vpop.xlane.xlu0 %3673 }
 0xc4e   :  { %v3684_v8 = vmul.f32 0.03125, %v3674_v5 }
 0xc4f   :  { %v3689_v53 = vsub.f32 %v3667_v9, %v3685_v54 }
 0xc50   :  { %v9471_v30 = vsub.f32 %v3666_v7, %v3684_v8 }
 0xc51   :  { %v3693_v63 = vmul.f32 %v3689_v53, %v3689_v53 }
 0xc52   :  { %v3692_v0 = vmul.f32 %v9471_v30, %v9471_v30 }
 0xc53   :  { %v3699_v32 = vsel %vm290_vm7, %v3693_v63, 0.0 }
 0xc54   :  { %3700 = vadd.xlane.f32.xlu1 %v3699_v32  ;;  %v3696_v33 = vsel %vm290_vm7, %v3692_v0, 0.0 }
 0xc55   :  { %3697 = vadd.xlane.f32.xlu0 %v3696_v33  ;;  %v3680_v37 = vpop.xlane.xlu0 %3679  ;;  %v7305_v33 = vld [vmem:[#allocation25] ss:$0 sm:$0xff] }
 0xc56   :  { %v3686_v39 = vmul.f32 0.03125, %v3680_v37  ;;  %v7310_v37 = vld [vmem:[#allocation28] ss:$0 sm:$0xff] }
 0xc58   :  { %v9477_v40 = vsub.f32 %v3668_v28, %v3686_v39  ;;  %v3963_v28 = vld [vmem:[%s10042_s17 + $0x18] sm:$0xff] }
 0xc59   :  { %v3683_v41 = vpop.xlane.xlu0 %3682  ;;  %v8049_v51 = vpack.c.bf16 %v3963_v28, %v3962_v43 }
 0xc5a   :  { %v3687_v42 = vmul.f32 0.03125, %v3683_v41  ;;  %v3694_v31 = vmul.f32 %v9477_v40, %v9477_v40 }
 0xc5c   :  { %v9481_v44 = vsub.f32 %v3669_v3, %v3687_v42  ;;  %v3702_v47 = vsel %vm290_vm7, %v3694_v31, 0.0 }
 0xc5d   :  { %3703 = vadd.xlane.f32.xlu0 %v3702_v47 }
 0xc5e   :  { %v3695_v49 = vmul.f32 %v9481_v44, %v9481_v44 }
 0xc60   :  { %v3705_v55 = vsel %vm290_vm7, %v3695_v49, 0.0 }
 0xc61   :  { %3706 = vadd.xlane.f32.xlu1 %v3705_v55 }
 0xce1   :  { %v3701_v48 = vpop.xlane.xlu1 %3700 }
 0xce2   :  { %v3709_v19 = vmul.f32 0.03125, %v3701_v48  ;;  %v3698_v16 = vpop.xlane.xlu0 %3697 }
 0xce3   :  { %v3708_v20 = vmul.f32 0.03125, %v3698_v16 }
 0xce4   :  { %v3713_v21 = vadd.f32 1e-05, %v3709_v19 }
 0xce5   :  { %v3712_v2 = vadd.f32 1e-05, %v3708_v20 }
 0xce6   :  { %8161 = vrsqrt.f32 %v3713_v21 }
 0xce7   :  { %8163 = vrsqrt.f32 %v3712_v2 }
 0xcea   :  { %v3704_v24 = vpop.xlane.xlu0 %3703 }
 0xceb   :  { %v3710_v52 = vmul.f32 0.03125, %v3704_v24 }
 0xced   :  { %v3714_v25 = vadd.f32 1e-05, %v3710_v52 }
 0xcee   :  { %v3707_v61 = vpop.xlane.xlu1 %3706 }
 0xcef   :  { %8165 = vrsqrt.f32 %v3714_v25  ;;  %v3711_v4 = vmul.f32 0.03125, %v3707_v61 }
 0xcf0   :  { %v8162_v50 = vpop.eup %8161 }
 0xcf1   :  { %v8164_v9 = vpop.eup %8163  ;;  %v3721_v22 = vmul.f32 %v8162_v50, %v3689_v53  ;;  %v3715_v7 = vadd.f32 1e-05, %v3711_v4 }
 0xcf2   :  { %v3720_v23 = vmul.f32 %v8164_v9, %v9471_v30 }
 0xcf3   :  { %8167 = vrsqrt.f32 %v3715_v7  ;;  %v3731_v56 = vmul.f32 %v7303_v27, %v3721_v22 }
 0xcf4   :  { %v3730_v26 = vmul.f32 %v7303_v27, %v3720_v23 }
 0xcf5   :  { %v3741_v6 = vadd.f32 %v7304_v10, %v3731_v56 }
 0xcf6   :  { %v3740_v13 = vadd.f32 %v7304_v10, %v3730_v26 }
 0xcf7   :  { %v9503_v3 = vmax.f32 %v3741_v6, 0.0 }
 0xcf8   :  { %v9501_v1 = vmax.f32 %v3740_v13, 0.0 }
 0xcf9   :  { %v8166_v29 = vpop.eup %8165 }
 0xcfa   :  { %7789 = vmatprep.mubr.msk.f32.mxu1 %vm290_vm7, %v9501_v1  ;;  %7803 = vmatprep.mubr.msk.f32.mxu0 %vm290_vm7, %v9501_v1  ;;  %v3722_v45 = vmul.f32 %v8166_v29, %v9477_v40 }
 0xcfb   :  { %7790 = vmatmul.mubr.msk.f32.vlgmr.msra.gmra.mrb[42].mxu1 %vm290_vm7, %v9503_v3  ;;  %7804 = vmatmul.mubr.msk.f32.vlgmr.msra.gmra.mrb[38].mxu0 %vm290_vm7, %v9503_v3 }
 0xcfc   :  { %v3732_v54 = vmul.f32 %v7303_v27, %v3722_v45  ;;  %8048 = vmatpush3.bf16.msra.mxu1 %v8045_v35 }
 0xcfd   :  { %v8168_v5 = vpop.eup %8167  ;;  %8050 = vmatprep.subr.bf16.mxu1 %v8049_v51 }
 0xcfe   :  { %v3742_v8 = vadd.f32 %v7304_v10, %v3732_v54  ;;  %v3723_v53 = vmul.f32 %v8168_v5, %v9481_v44 }
 0xd00   :  { %v9515_v30 = vmax.f32 %v3742_v8, 0.0  ;;  %v3733_v63 = vmul.f32 %v7303_v27, %v3723_v53  ;;  %8052 = vmatpush3.bf16.msra.mxu1 %v8049_v51 }
 0xd01   :  { %7828 = vmatprep.subr.mxu1 %v8626_v36 }
 0xd02   :  { %7792 = vmatprep.mubr.msk.f32.mxu1 %vm290_vm7, %v9515_v30  ;;  %7806 = vmatprep.mubr.msk.f32.mxu0 %vm290_vm7, %v9515_v30  ;;  %v3743_v0 = vadd.f32 %v7304_v10, %v3733_v63 }
 0xd04   :  { %v9522_v32 = vmax.f32 %v3743_v0, 0.0 }
 0xd06   :  { %7793 = vmatmul.mubr.msk.f32.gmra.mrb[44].mxu1 %vm290_vm7, %v9522_v32  ;;  %7807 = vmatmul.mubr.msk.f32.gmra.mrb[40].mxu0 %vm290_vm7, %v9522_v32 }
 0xd07   :  { %7817 = vmatprep.mubr.msk.f32.mxu1 %vm290_vm7, %v9501_v1  ;;  %7825 = vmatprep.mubr.msk.f32.mxu0 %vm8627_vm8, %v8626_v36 }
 0xd0a   :  { %7818 = vmatmul.mubr.msk.f32.vlgmr.msra.gmra.mrb[46].mxu1 %vm290_vm7, %v9503_v3 }
 0xd0b   :  { %7820 = vmatprep.mubr.msk.f32.mxu1 %vm290_vm7, %v9515_v30 }
 0xd0e   :  { %7821 = vmatmul.mubr.msk.f32.gmra.mrb[48].mxu1 %vm290_vm7, %v9522_v32 }
 0xd0f   :  { %7830 = vmatprep.mubr.msk.f32.mxu1 %vm8627_vm8, %v8626_v36 }
 0xdce   :  { %v7791_v39 = vpop.f32.mrb[42].mxu1  ;;  %v7805_v40 = vpop.f32.mrb[38].mxu0 }
 0xdcf   :  { %v3843_v41 = vadd.f32 %v7791_v39, %v7305_v33  ;;  %v3943_v42 = vadd.f32 %v7805_v40, %v7310_v37  ;;  %v3837_v31 = vpop.f32.mrb[43].mxu1  ;;  %v3937_v44 = vpop.f32.mrb[39].mxu0 }
 0xdd0   :  { %v3838_v47 = vadd.f32 %v7305_v33, %v3837_v31  ;;  %v3938_v49 = vadd.f32 %v7310_v37, %v3937_v44 }
 0xdd1   :  { %3857 = vst.msk [vmem:[#allocation3 + $0x8] sm:$0xff] %vm290_vm7, %v3843_v41  ;;  %3957 = vst.msk [vmem:[#allocation4 + $0x8] sm:$0xff] %vm290_vm7, %v3943_v42 }
 0xdd2   :  { %3856 = vst.msk [vmem:[#allocation3] sm:$0xff] %vm290_vm7, %v3838_v47  ;;  %3956 = vst.msk [vmem:[#allocation4] sm:$0xff] %vm290_vm7, %v3938_v49 }
 0xdd8   :  { %v9544_v55 = vld [vmem:[#allocation4 + $0x8] sm:$0xff] }
 0xdd9   :  { %v7794_v58 = vpop.f32.mrb[44].mxu1  ;;  %v7808_v34 = vpop.f32.mrb[40].mxu0  ;;  %7829 = vmatpush3.xpose.msk.msra.mxu1 %vm794_vm9, %v9544_v55  ;;  %v9548_v38 = vld [vmem:[#allocation4] sm:$0xff]  ;;  %v9553_v46 = vld [vmem:[#allocation3 + $0x8] sm:$0xff] }
 0xdda   :  { %v3853_v59 = vadd.f32 %v7794_v58, %v7305_v33  ;;  %v3953_v60 = vadd.f32 %v7808_v34, %v7310_v37  ;;  %v3847_v62 = vpop.f32.mrb[45].mxu1  ;;  %v3947_v11 = vpop.f32.mrb[41].mxu0  ;;  %7824 = vmatpush3.xpose.msk.msra.mxu0 %vm794_vm9, %v9548_v38  ;;  %7838 = vmatprep.subr.mxu1 %v8626_v36  ;;  %v9563_v15 = vld [vmem:[#allocation3] sm:$0xff] }
 0xddb   :  { %v3848_v12 = vadd.f32 %v7305_v33, %v3847_v62  ;;  %v3948_v14 = vadd.f32 %v7310_v37, %v3947_v11  ;;  %7833 = vmatprep.subr.mxu0 %v8626_v36 }
 0xddc   :  { %3859 = vst.msk [vmem:[#allocation3 + $0x18] sm:$0xff] %vm290_vm7, %v3853_v59  ;;  %3959 = vst.msk [vmem:[#allocation4 + $0x18] sm:$0xff] %vm290_vm7, %v3953_v60  ;;  %7831 = vmatmul.mubr.msk.f32.vlgmr.msra.gmra.mrb[50].mxu1 %vm794_vm9, %v9553_v46 }
 0xddd   :  { %3858 = vst.msk [vmem:[#allocation3 + $0x10] sm:$0xff] %vm290_vm7, %v3848_v12  ;;  %3958 = vst.msk [vmem:[#allocation4 + $0x10] sm:$0xff] %vm290_vm7, %v3948_v14  ;;  %v7819_v17 = vpop.f32.mrb[46].mxu1  ;;  %7826 = vmatmul.mubr.msk.f32.vlgmr.msra.gmra.mrb[42].mxu0 %vm794_vm9, %v9563_v15  ;;  %7840 = vmatprep.mubr.msk.f32.mxu1 %vm8627_vm8, %v8626_v36 }
 0xdde   :  { %v4043_v18 = vadd.f32 %v7819_v17, %v7315_v57  ;;  %v4037_v35 = vpop.f32.mrb[47].mxu1  ;;  %7835 = vmatprep.mubr.msk.f32.mxu0 %vm8627_vm8, %v8626_v36 }
 0xddf   :  { %v4038_v48 = vadd.f32 %v7315_v57, %v4037_v35 }
 0xde0   :  { %4057 = vst.msk [vmem:[#allocation5 + $0x8] sm:$0xff] %vm290_vm7, %v4043_v18 }
 0xde1   :  { %4056 = vst.msk [vmem:[#allocation5] sm:$0xff] %vm290_vm7, %v4038_v48  ;;  %v7822_v19 = vpop.f32.mrb[48].mxu1 }
 0xde2   :  { %v4053_v16 = vadd.f32 %v7822_v19, %v7315_v57  ;;  %v4047_v20 = vpop.f32.mrb[49].mxu1 }
 0xde3   :  { %v4048_v21 = vadd.f32 %v7315_v57, %v4047_v20  ;;  %v9575_v2 = vld [vmem:[#allocation4 + $0x18] sm:$0xff] }
 0xde4   :  { %4059 = vst.msk [vmem:[#allocation5 + $0x18] sm:$0xff] %vm290_vm7, %v4053_v16  ;;  %7839 = vmatpush3.xpose.msk.msra.mxu1 %vm794_vm9, %v9575_v2  ;;  %v9580_v24 = vld [vmem:[#allocation4 + $0x10] sm:$0xff]  ;;  %v9586_v52 = vld [vmem:[#allocation3 + $0x18] sm:$0xff] }
 0xde5   :  { %4058 = vst.msk [vmem:[#allocation5 + $0x10] sm:$0xff] %vm290_vm7, %v4048_v21  ;;  %7834 = vmatpush3.xpose.msk.msra.mxu0 %vm794_vm9, %v9580_v24  ;;  %7848 = vmatprep.subr.mxu1 %v8626_v36  ;;  %v9591_v25 = vld [vmem:[#allocation3 + $0x10] sm:$0xff] }
 0xde6   :  { %7843 = vmatprep.subr.mxu0 %v8626_v36 }
 0xde7   :  { %7841 = vmatmul.mubr.msk.f32.vlgmr.msra.gmra.mrb[52].mxu1 %vm794_vm9, %v9586_v52  ;;  %v9593_v61 = vld [vmem:[#allocation5 + $0x8] sm:$0xff] }
 0xde8   :  { %7836 = vmatmul.mubr.msk.f32.vlgmr.msra.gmra.mrb[44].mxu0 %vm794_vm9, %v9591_v25  ;;  %7849 = vmatpush3.msra.mxu1 %v9593_v61  ;;  %v9598_v4 = vld [vmem:[#allocation5] sm:$0xff] }
 0xde9   :  { %7844 = vmatpush3.msra.mxu0 %v9598_v4  ;;  %7850 = vmatprep.mubr.msk.f32.mxu1 %vm8627_vm8, %v8626_v36 }
 0xdea   :  { %7858 = vmatprep.subr.mxu1 %v8626_v36  ;;  %7845 = vmatprep.mubr.msk.f32.mxu0 %vm8627_vm8, %v8626_v36 }
 0xdeb   :  { %7853 = vmatprep.subr.mxu0 %v8626_v36  ;;  %v9637_v29 = vld [vmem:[#allocation5 + $0x18] sm:$0xff] }
 0xdec   :  { %v9633_v28 = vld [vmem:[#allocation5 + $0x10] sm:$0xff] }
 0xeaf   :  { %v4220_v50 = vpop.f32.mrb[50].mxu1 }
 0xeb0   :  { %v4144_v27 = vpop.f32.mrb[42].mxu0  ;;  %v7832_v9 = vpop.f32.mrb[51].mxu1  ;;  %v4379_v22 = vsel %vm794_vm9, %v4220_v50, -inf }
 0xeb1   :  { %v7827_v7 = vpop.f32.mrb[43].mxu0  ;;  %4380 = vmax.xlane.f32.xlu1 %v4379_v22  ;;  %v4376_v10 = vsel %vm794_vm9, %v4144_v27, -inf }
 0xeb2   :  { %4377 = vmax.xlane.f32.xlu0 %v4376_v10 }
 0xeba   :  { %v4372_v23 = vpop.f32.mrb[52].mxu1 }
 0xebb   :  { %v4296_v56 = vpop.f32.mrb[44].mxu0  ;;  %v7842_v26 = vpop.f32.mrb[53].mxu1  ;;  %v4385_v6 = vsel %vm794_vm9, %v4372_v23, -inf }
 0xebc   :  { %4386 = vmax.xlane.f32.xlu1 %v4385_v6  ;;  %v7837_v13 = vpop.f32.mrb[45].mxu0  ;;  %v4382_v43 = vsel %vm794_vm9, %v4296_v56, -inf }
 0xebd   :  { %4383 = vmax.xlane.f32.xlu0 %v4382_v43 }
 0xecd   :  { %4812 = vrot.lane.b32.xlu1 %v9544_v55, %s8628_s1 }
 0xed1   :  { %4729 = vrot.lane.b32.xlu1 %v9563_v15, %s8628_s1 }
 0xed3   :  { %4732 = vrot.lane.b32.xlu0 %v9548_v38, %s8628_s1 }
 0xed5   :  { %4809 = vrot.lane.b32.xlu1 %v9553_v46, %s8628_s1 }
 0xed7   :  { %4892 = vrot.lane.b32.xlu0 %v9580_v24, %s8628_s1 }
 0xed9   :  { %4972 = vrot.lane.b32.xlu1 %v9575_v2, %s8628_s1 }
 0xedb   :  { %4889 = vrot.lane.b32.xlu0 %v9591_v25, %s8628_s1 }
 0xedd   :  { %4969 = vrot.lane.b32.xlu1 %v9586_v52, %s8628_s1 }
 0xedf   :  { %5085 = vrot.lane.b32.xlu0 %v9598_v4, %s8628_s1 }
 0xee1   :  { %5162 = vrot.lane.b32.xlu1 %v9593_v61, %s8628_s1 }
 0xee3   :  { %5436 = vrot.lane.b32.xlu0 %v9548_v38, %s8629_s11 }
 0xee5   :  { %5239 = vrot.lane.b32.xlu1 %v9633_v28, %s8628_s1 }
 0xee9   :  { %5316 = vrot.lane.b32.xlu1 %v9637_v29, %s8628_s1 }
 0xf3e   :  { %v4381_v51 = vpop.xlane.xlu1 %4380 }
 0xf3f   :  { %v4389_v45 = vsub.f32 %v4220_v50, %v4381_v51  ;;  %v4378_v54 = vpop.xlane.xlu0 %4377 }
 0xf40   :  { %v4388_v5 = vsub.f32 %v4144_v27, %v4378_v54 }
 0xf41   :  { %v4394_v8 = vmul.f32 1.442695, %v4389_v45 }
 0xf42   :  { %v4392_v53 = vmul.f32 1.442695, %v4388_v5 }
 0xf43   :  { %8169 = vpow2.f32 %v4394_v8 }
 0xf44   :  { %8171 = vpow2.f32 %v4392_v53 }
 0xf49   :  { %v4387_v63 = vpop.xlane.xlu1 %4386 }
 0xf4a   :  { %v4391_v0 = vsub.f32 %v4372_v23, %v4387_v63  ;;  %v4384_v33 = vpop.xlane.xlu0 %4383 }
 0xf4b   :  { %v4390_v37 = vsub.f32 %v4296_v56, %v4384_v33 }
 0xf4c   :  { %v4398_v39 = vmul.f32 1.442695, %v4391_v0 }
 0xf4d   :  { %v9641_v40 = vpop.eup %8169  ;;  %v4396_v41 = vmul.f32 1.442695, %v4390_v37  ;;  %v4813_v42 = vpop.permute.xlu1 %4812 }
 0xf4e   :  { %v9643_v31 = vpop.eup %8171  ;;  %8173 = vpow2.f32 %v4398_v39  ;;  %7851 = vmatmul.mubr.msk.f32.vlgmr.msra.gmra.mrb[54].mxu1 %vm794_vm9, %v9641_v40  ;;  %v4733_v44 = vpop.permute.xlu0 %4732 }
 0xf4f   :  { %8175 = vpow2.f32 %v4396_v41  ;;  %7859 = vmatpush3.msra.mxu1 %v9637_v29  ;;  %7846 = vmatmul.mubr.msk.f32.vlgmr.msra.gmra.mrb[46].mxu0 %vm794_vm9, %v9643_v31 }
 0xf50   :  { %7854 = vmatpush3.msra.mxu0 %v9633_v28  ;;  %7860 = vmatprep.mubr.msk.f32.mxu1 %vm8627_vm8, %v8626_v36 }
 0xf51   :  { %v4730_v47 = vpop.permute.xlu1 %4729  ;;  %7868 = vmatprep.subr.mxu1 %v8626_v36  ;;  %7855 = vmatprep.mubr.msk.f32.mxu0 %vm8627_vm8, %v8626_v36 }
 0xf52   :  { %7863 = vmatprep.subr.mxu0 %v8626_v36  ;;  %v4893_v58 = vpop.permute.xlu0 %4892 }
 0xf55   :  { %v4810_v49 = vpop.permute.xlu1 %4809 }
 0xf56   :  { %v4890_v62 = vpop.permute.xlu0 %4889 }
 0xf58   :  { %v9657_v34 = vpop.eup %8173 }
 0xf59   :  { %v9659_v59 = vpop.eup %8175  ;;  %7861 = vmatmul.mubr.msk.f32.vlgmr.msra.gmra.mrb[56].mxu1 %vm794_vm9, %v9657_v34  ;;  %v4973_v60 = vpop.permute.xlu1 %4972 }
 0xf5a   :  { %7869 = vmatpush3.xpose.msk.msra.mxu1 %vm794_vm9, %v4813_v42  ;;  %7856 = vmatmul.mubr.msk.f32.vlgmr.msra.gmra.mrb[48].mxu0 %vm794_vm9, %v9659_v59  ;;  %v5086_v14 = vpop.permute.xlu0 %5085 }
 0xf5b   :  { %7864 = vmatpush3.xpose.msk.msra.mxu0 %vm794_vm9, %v4733_v44  ;;  %7870 = vmatprep.mubr.msk.f32.mxu1 %vm8627_vm8, %v8626_v36 }
 0xf5c   :  { %7878 = vmatprep.subr.mxu1 %v8626_v36  ;;  %7865 = vmatprep.mubr.msk.f32.mxu0 %vm8627_vm8, %v8626_v36 }
 0xf5d   :  { %7871 = vmatmul.mubr.msk.f32.vlgmr.msra.gmra.mrb[58].mxu1 %vm794_vm9, %v4810_v49  ;;  %v4970_v11 = vpop.permute.xlu1 %4969  ;;  %7873 = vmatprep.subr.mxu0 %v8626_v36 }
 0xf5e   :  { %7879 = vmatpush3.xpose.msk.msra.mxu1 %vm794_vm9, %v4973_v60  ;;  %7866 = vmatmul.mubr.msk.f32.vlgmr.msra.gmra.mrb[50].mxu0 %vm794_vm9, %v4730_v47  ;;  %v5437_v45 = vpop.permute.xlu0 %5436 }
 0xf5f   :  { %7874 = vmatpush3.xpose.msk.msra.mxu0 %vm794_vm9, %v4893_v58  ;;  %7880 = vmatprep.mubr.msk.f32.mxu1 %vm8627_vm8, %v8626_v36 }
 0xf60   :  { %7888 = vmatprep.subr.mxu1 %v8626_v36  ;;  %7875 = vmatprep.mubr.msk.f32.mxu0 %vm8627_vm8, %v8626_v36 }
 0xf61   :  { %7881 = vmatmul.mubr.msk.f32.vlgmr.msra.gmra.mrb[60].mxu1 %vm794_vm9, %v4970_v11  ;;  %v5163_v12 = vpop.permute.xlu1 %5162  ;;  %7883 = vmatprep.subr.mxu0 %v8626_v36 }
 0xf62   :  { %7876 = vmatmul.mubr.msk.f32.vlgmr.msra.gmra.mrb[52].mxu0 %vm794_vm9, %v4890_v62  ;;  %7889 = vmatpush3.msra.mxu1 %v5163_v12 }
 0xf63   :  { %7884 = vmatpush3.msra.mxu0 %v5086_v14  ;;  %7890 = vmatprep.mubr.msk.f32.mxu1 %vm8627_vm8, %v8626_v36 }
 0xf64   :  { %7898 = vmatprep.subr.mxu1 %v8626_v36  ;;  %7885 = vmatprep.mubr.msk.f32.mxu0 %vm8627_vm8, %v8626_v36 }
 0xf65   :  { %7893 = vmatprep.subr.mxu0 %v8626_v36  ;;  %v5240_v43 = vpop.permute.xlu1 %5239 }
 0xf69   :  { %v5317_v51 = vpop.permute.xlu1 %5316 }
0x1021   :  { %v9691_v57 = vpop.f32.mrb[54].mxu1 }
0x1022   :  { %v9693_v17 = vpop.f32.mrb[46].mxu0  ;;  %v7852_v18 = vpop.f32.mrb[55].mxu1 }
0x1023   :  { %v7847_v35 = vpop.f32.mrb[47].mxu0 }
0x102c   :  { %v9695_v48 = vpop.f32.mrb[56].mxu1 }
0x102d   :  { %v9697_v19 = vpop.f32.mrb[48].mxu0  ;;  %v7862_v16 = vpop.f32.mrb[57].mxu1 }
0x102e   :  { %v7857_v20 = vpop.f32.mrb[49].mxu0 }
0x1030   :  { %v4884_v21 = vpop.f32.mrb[58].mxu1 }
0x1031   :  { %v4804_v50 = vpop.f32.mrb[50].mxu0  ;;  %v7872_v27 = vpop.f32.mrb[59].mxu1  ;;  %v5051_v9 = vsel %vm794_vm9, %v4884_v21, -inf }
0x1032   :  { %5052 = vmax.xlane.f32.xlu1 %v5051_v9  ;;  %v7867_v22 = vpop.f32.mrb[51].mxu0  ;;  %v5048_v7 = vsel %vm794_vm9, %v4804_v50, -inf }
0x1033   :  { %5049 = vmax.xlane.f32.xlu0 %v5048_v7 }
0x1034   :  { %v5044_v10 = vpop.f32.mrb[60].mxu1 }
0x1035   :  { %v4964_v23 = vpop.f32.mrb[52].mxu0  ;;  %v7882_v56 = vpop.f32.mrb[61].mxu1  ;;  %v5057_v26 = vsel %vm794_vm9, %v5044_v10, -inf }
0x1036   :  { %v7877_v6 = vpop.f32.mrb[53].mxu0  ;;  %v5054_v13 = vsel %vm794_vm9, %v4964_v23, -inf }
0x1037   :  { %5058 = vmax.xlane.f32.xlu0 %v5057_v26 }
0x103b   :  { %5055 = vmax.xlane.f32.xlu0 %v5054_v13 }
0x1043   :  { %5516 = vrot.lane.b32.xlu1 %v9544_v55, %s8629_s11 }
0x1047   :  { %5513 = vrot.lane.b32.xlu1 %v9553_v46, %s8629_s11 }
0x104b   :  { %5676 = vrot.lane.b32.xlu1 %v9575_v2, %s8629_s11 }
0x104f   :  { %5673 = vrot.lane.b32.xlu1 %v9586_v52, %s8629_s11 }
0x1051   :  { %5433 = vrot.lane.b32.xlu0 %v9563_v15, %s8629_s11 }
0x1053   :  { %5866 = vrot.lane.b32.xlu1 %v9593_v61, %s8629_s11 }
0x1055   :  { %5596 = vrot.lane.b32.xlu0 %v9580_v24, %s8629_s11 }
0x1057   :  { %5943 = vrot.lane.b32.xlu1 %v9633_v28, %s8629_s11 }
0x1059   :  { %5593 = vrot.lane.b32.xlu0 %v9591_v25, %s8629_s11 }
0x105b   :  { %6020 = vrot.lane.b32.xlu1 %v9637_v29, %s8629_s11 }
0x105d   :  { %5789 = vrot.lane.b32.xlu0 %v9598_v4, %s8629_s11 }
0x105f   :  { %6220 = vrot.lane.b32.xlu1 %v9544_v55, %s8630_s29 }
0x1061   :  { %6140 = vrot.lane.b32.xlu0 %v9548_v38, %s8630_s29 }
0x10bf   :  { %v5053_v54 = vpop.xlane.xlu1 %5052 }
0x10c0   :  { %v5061_v5 = vsub.f32 %v4884_v21, %v5053_v54  ;;  %v5050_v8 = vpop.xlane.xlu0 %5049 }
0x10c1   :  { %v5060_v53 = vsub.f32 %v4804_v50, %v5050_v8 }
0x10c2   :  { %v5066_v63 = vmul.f32 1.442695, %v5061_v5 }
0x10c3   :  { %v5064_v0 = vmul.f32 1.442695, %v5060_v53  ;;  %v5517_v39 = vpop.permute.xlu1 %5516 }
0x10c4   :  { %8177 = vpow2.f32 %v5066_v63  ;;  %v5059_v33 = vpop.xlane.xlu0 %5058 }
0x10c5   :  { %8179 = vpow2.f32 %v5064_v0  ;;  %v5063_v37 = vsub.f32 %v5044_v10, %v5059_v33 }
0x10c7   :  { %v5070_v41 = vmul.f32 1.442695, %v5063_v37  ;;  %v5514_v38 = vpop.permute.xlu1 %5513 }
0x10c8   :  { %v5056_v42 = vpop.xlane.xlu0 %5055 }
0x10c9   :  { %8181 = vpow2.f32 %v5070_v41  ;;  %v5062_v55 = vsub.f32 %v4964_v23, %v5056_v42 }
0x10cb   :  { %v5068_v44 = vmul.f32 1.442695, %v5062_v55  ;;  %v5677_v60 = vpop.permute.xlu1 %5676 }
0x10cc   :  { %v5434_v49 = vpop.permute.xlu0 %5433 }
0x10cd   :  { %8183 = vpow2.f32 %v5068_v44 }
0x10ce   :  { %v9729_v47 = vpop.eup %8177 }
0x10cf   :  { %v9731_v58 = vpop.eup %8179  ;;  %7891 = vmatmul.mubr.msk.f32.vlgmr.msra.gmra.mrb[62].mxu1 %vm794_vm9, %v9729_v47  ;;  %v5674_v14 = vpop.permute.xlu1 %5673 }
0x10d0   :  { %7899 = vmatpush3.msra.mxu1 %v5317_v51  ;;  %7886 = vmatmul.mubr.msk.f32.vlgmr.msra.gmra.mrb[54].mxu0 %vm794_vm9, %v9731_v58  ;;  %v5597_v11 = vpop.permute.xlu0 %5596 }
0x10d1   :  { %7894 = vmatpush3.msra.mxu0 %v5240_v43  ;;  %7900 = vmatprep.mubr.msk.f32.mxu1 %vm8627_vm8, %v8626_v36 }
0x10d2   :  { %7908 = vmatprep.subr.mxu1 %v8626_v36  ;;  %7895 = vmatprep.mubr.msk.f32.mxu0 %vm8627_vm8, %v8626_v36 }
0x10d3   :  { %v9742_v62 = vpop.eup %8181  ;;  %7903 = vmatprep.subr.mxu0 %v8626_v36  ;;  %v5867_v35 = vpop.permute.xlu1 %5866 }
0x10d4   :  { %7901 = vmatmul.mubr.msk.f32.vlgmr.msra.gmra.mrb[64].mxu1 %vm794_vm9, %v9742_v62  ;;  %v5594_v18 = vpop.permute.xlu0 %5593 }
0x10d5   :  { %7910 = vmatprep.mubr.msk.f32.mxu1 %vm8627_vm8, %v8626_v36 }
0x10d7   :  { %v9749_v12 = vpop.eup %8183  ;;  %7909 = vmatpush3.xpose.msk.msra.mxu1 %vm794_vm9, %v5517_v39  ;;  %v5944_v63 = vpop.permute.xlu1 %5943 }
0x10d8   :  { %7896 = vmatmul.mubr.msk.f32.vlgmr.msra.gmra.mrb[56].mxu0 %vm794_vm9, %v9749_v12  ;;  %7918 = vmatprep.subr.mxu1 %v8626_v36  ;;  %v5790_v16 = vpop.permute.xlu0 %5789 }
0x10d9   :  { %7904 = vmatpush3.xpose.msk.msra.mxu0 %vm794_vm9, %v5437_v45  ;;  %7905 = vmatprep.mubr.msk.f32.mxu0 %vm8627_vm8, %v8626_v36 }
0x10da   :  { %7911 = vmatmul.mubr.msk.f32.vlgmr.msra.gmra.mrb[66].mxu1 %vm794_vm9, %v5514_v38  ;;  %7913 = vmatprep.subr.mxu0 %v8626_v36 }
0x10db   :  { %7919 = vmatpush3.xpose.msk.msra.mxu1 %vm794_vm9, %v5677_v60  ;;  %7920 = vmatprep.mubr.msk.f32.mxu1 %vm8627_vm8, %v8626_v36  ;;  %v6021_v0 = vpop.permute.xlu1 %6020 }
0x10dc   :  { %7906 = vmatmul.mubr.msk.f32.vlgmr.msra.gmra.mrb[58].mxu0 %vm794_vm9, %v5434_v49  ;;  %7928 = vmatprep.subr.mxu1 %v8626_v36  ;;  %v6141_v37 = vpop.permute.xlu0 %6140 }
0x10dd   :  { %7914 = vmatpush3.xpose.msk.msra.mxu0 %vm794_vm9, %v5597_v11  ;;  %7915 = vmatprep.mubr.msk.f32.mxu0 %vm8627_vm8, %v8626_v36 }
0x10de   :  { %7921 = vmatmul.mubr.msk.f32.vlgmr.msra.gmra.mrb[68].mxu1 %vm794_vm9, %v5674_v14  ;;  %7923 = vmatprep.subr.mxu0 %v8626_v36 }
0x10df   :  { %7929 = vmatpush3.msra.mxu1 %v5867_v35  ;;  %7930 = vmatprep.mubr.msk.f32.mxu1 %vm8627_vm8, %v8626_v36  ;;  %v6221_v33 = vpop.permute.xlu1 %6220 }
0x10e0   :  { %7916 = vmatmul.mubr.msk.f32.vlgmr.msra.gmra.mrb[60].mxu0 %vm794_vm9, %v5594_v18  ;;  %7938 = vmatprep.subr.mxu1 %v8626_v36 }
0x10e1   :  { %7924 = vmatpush3.msra.mxu0 %v5790_v16  ;;  %7925 = vmatprep.mubr.msk.f32.mxu0 %vm8627_vm8, %v8626_v36 }
0x10e2   :  { %7933 = vmatprep.subr.mxu0 %v8626_v36 }
0x11a2   :  { %v9777_v20 = vpop.f32.mrb[62].mxu1 }
0x11a3   :  { %v9779_v21 = vpop.f32.mrb[54].mxu0  ;;  %v7892_v50 = vpop.f32.mrb[63].mxu1 }
0x11a4   :  { %v7887_v27 = vpop.f32.mrb[55].mxu0 }
0x11a7   :  { %v9781_v9 = vpop.f32.mrb[64].mxu1 }
0x11a8   :  { %v7902_v22 = vpop.f32.mrb[65].mxu1 }
0x11ab   :  { %v9783_v7 = vpop.f32.mrb[56].mxu0 }
0x11ac   :  { %v7897_v10 = vpop.f32.mrb[57].mxu0 }
0x11ad   :  { %v5588_v23 = vpop.f32.mrb[66].mxu1 }
0x11ae   :  { %v7912_v56 = vpop.f32.mrb[67].mxu1  ;;  %v5755_v26 = vsel %vm794_vm9, %v5588_v23, -inf }
0x11af   :  { %5756 = vmax.xlane.f32.xlu1 %v5755_v26  ;;  %v5508_v6 = vpop.f32.mrb[58].mxu0 }
0x11b0   :  { %v7907_v13 = vpop.f32.mrb[59].mxu0  ;;  %v5752_v43 = vsel %vm794_vm9, %v5508_v6, -inf }
0x11b1   :  { %v5748_v51 = vpop.f32.mrb[68].mxu1  ;;  %5753 = vmax.xlane.f32.xlu0 %v5752_v43 }
0x11b2   :  { %v7922_v45 = vpop.f32.mrb[69].mxu1  ;;  %v5761_v8 = vsel %vm794_vm9, %v5748_v51, -inf }
0x11b3   :  { %v5668_v54 = vpop.f32.mrb[60].mxu0 }
0x11b4   :  { %v7917_v5 = vpop.f32.mrb[61].mxu0  ;;  %v5758_v53 = vsel %vm794_vm9, %v5668_v54, -inf }
0x11b5   :  { %5762 = vmax.xlane.f32.xlu0 %v5761_v8 }
0x11b9   :  { %5759 = vmax.xlane.f32.xlu0 %v5758_v53 }
0x11c0   :  { %6217 = vrot.lane.b32.xlu1 %v9553_v46, %s8630_s29 }
0x11c4   :  { %6380 = vrot.lane.b32.xlu1 %v9575_v2, %s8630_s29 }
0x11c8   :  { %6377 = vrot.lane.b32.xlu1 %v9586_v52, %s8630_s29 }
0x11cf   :  { %6137 = vrot.lane.b32.xlu0 %v9563_v15, %s8630_s29 }
0x11d3   :  { %6300 = vrot.lane.b32.xlu0 %v9580_v24, %s8630_s29 }
0x11d7   :  { %6297 = vrot.lane.b32.xlu0 %v9591_v25, %s8630_s29 }
0x123c   :  { %v5757_v46 = vpop.xlane.xlu1 %5756 }
0x123d   :  { %v5765_v39 = vsub.f32 %v5588_v23, %v5757_v46 }
0x123e   :  { %v5754_v41 = vpop.xlane.xlu0 %5753 }
0x123f   :  { %v5770_v2 = vmul.f32 1.442695, %v5765_v39  ;;  %v5764_v42 = vsub.f32 %v5508_v6, %v5754_v41 }
0x1240   :  { %v6218_v11 = vpop.permute.xlu1 %6217 }
0x1241   :  { %8185 = vpow2.f32 %v5770_v2  ;;  %v5768_v52 = vmul.f32 1.442695, %v5764_v42  ;;  %v5075_v2 = vsel %vm794_vm9, %v9729_v47, 0.0  ;;  %v5072_v42 = vsel %vm794_vm9, %v9731_v58, 0.0 }
0x1242   :  { %v5763_v55 = vpop.xlane.xlu0 %5762 }
0x1243   :  { %8187 = vpow2.f32 %v5768_v52  ;;  %v5767_v15 = vsub.f32 %v5748_v51, %v5763_v55  ;;  %v5081_v52 = vsel %vm794_vm9, %v9742_v62, 0.0 }
0x1244   :  { %v6381_v35 = vpop.permute.xlu1 %6380 }
0x1245   :  { %v5774_v44 = vmul.f32 1.442695, %v5767_v15 }
0x1246   :  { %v5760_v38 = vpop.xlane.xlu0 %5759 }
0x1247   :  { %8189 = vpow2.f32 %v5774_v44  ;;  %v5766_v24 = vsub.f32 %v5668_v54, %v5760_v38 }
0x1248   :  { %v6378_v27 = vpop.permute.xlu1 %6377 }
0x1249   :  { %v5772_v49 = vmul.f32 1.442695, %v5766_v24 }
0x124a   :  { %v6138_v18 = vpop.permute.xlu0 %6137 }
0x124b   :  { %v9801_v25 = vpop.eup %8185  ;;  %8191 = vpow2.f32 %v5772_v49 }
0x124c   :  { %7931 = vmatmul.mubr.msk.f32.vlgmr.msra.gmra.mrb[70].mxu1 %vm794_vm9, %v9801_v25 }
0x124d   :  { %v9805_v60 = vpop.eup %8187  ;;  %7939 = vmatpush3.msra.mxu1 %v6021_v0  ;;  %7940 = vmatprep.mubr.msk.f32.mxu1 %vm8627_vm8, %v8626_v36 }
0x124e   :  { %7926 = vmatmul.mubr.msk.f32.vlgmr.msra.gmra.mrb[62].mxu0 %vm794_vm9, %v9805_v60  ;;  %7948 = vmatprep.subr.mxu1 %v8626_v36  ;;  %v6301_v50 = vpop.permute.xlu0 %6300 }
0x124f   :  { %7934 = vmatpush3.msra.mxu0 %v5944_v63  ;;  %7935 = vmatprep.mubr.msk.f32.mxu0 %vm8627_vm8, %v8626_v36 }
0x1250   :  { %7943 = vmatprep.subr.mxu0 %v8626_v36 }
0x1251   :  { %v8190_v14 = vpop.eup %8189 }
0x1252   :  { %7941 = vmatmul.mubr.msk.f32.vlgmr.msra.gmra.mrb[72].mxu1 %vm794_vm9, %v8190_v14  ;;  %v6298_v22 = vpop.permute.xlu0 %6297 }
0x1253   :  { %7950 = vmatprep.mubr.msk.f32.mxu1 %vm8627_vm8, %v8626_v36 }
0x1254   :  { %7949 = vmatpush3.xpose.msk.msra.mxu1 %vm794_vm9, %v6221_v33 }
0x1255   :  { %v9819_v16 = vpop.eup %8191  ;;  %7958 = vmatprep.subr.mxu1 %v8626_v36 }
0x1256   :  { %7936 = vmatmul.mubr.msk.f32.vlgmr.msra.gmra.mrb[64].mxu0 %vm794_vm9, %v9819_v16  ;;  %v5782_v47 = vsel %vm794_vm9, %v9819_v16, 0.0 }
0x1257   :  { %7944 = vmatpush3.xpose.msk.msra.mxu0 %vm794_vm9, %v6141_v37  ;;  %7951 = vmatmul.mubr.msk.f32.vlgmr.msra.gmra.mrb[74].mxu1 %vm794_vm9, %v6218_v11 }
0x1258   :  { %7959 = vmatpush3.xpose.msk.msra.mxu1 %vm794_vm9, %v6381_v35  ;;  %7945 = vmatprep.mubr.msk.f32.mxu0 %vm8627_vm8, %v8626_v36 }
0x1259   :  { %7953 = vmatprep.subr.mxu0 %v8626_v36  ;;  %7960 = vmatprep.mubr.msk.f32.mxu1 %vm8627_vm8, %v8626_v36 }
0x125a   :  { %7946 = vmatmul.mubr.msk.f32.vlgmr.msra.gmra.mrb[66].mxu0 %vm794_vm9, %v6138_v18  ;;  %7968 = vmatprep.subr.mxu1 %v8626_v36 }
0x125b   :  { %7954 = vmatpush3.xpose.msk.msra.mxu0 %vm794_vm9, %v6301_v50  ;;  %7961 = vmatmul.mubr.msk.f32.vlgmr.msra.gmra.mrb[76].mxu1 %vm794_vm9, %v6378_v27 }
0x125c   :  { %7955 = vmatprep.mubr.msk.f32.mxu0 %vm8627_vm8, %v8626_v36  ;;  %7970 = vmatprep.mubr.msk.f32.mxu1 %vm8627_vm8, %v8626_v36 }
0x125d   :  { %7963 = vmatprep.subr.mxu0 %v8626_v36 }
0x125e   :  { %7956 = vmatmul.mubr.msk.f32.vlgmr.msra.gmra.mrb[68].mxu0 %vm794_vm9, %v6298_v22 }
0x125f   :  { %7965 = vmatprep.mubr.msk.f32.mxu0 %vm8627_vm8, %v8626_v36 }
0x131f   :  { %v9844_v10 = vpop.f32.mrb[70].mxu1 }
0x1320   :  { %v7932_v23 = vpop.f32.mrb[71].mxu1 }
0x1321   :  { %v9846_v56 = vpop.f32.mrb[62].mxu0 }
0x1322   :  { %v7927_v26 = vpop.f32.mrb[63].mxu0 }
0x1325   :  { %v9848_v6 = vpop.f32.mrb[72].mxu1 }
0x1326   :  { %v7942_v13 = vpop.f32.mrb[73].mxu1 }
0x1329   :  { %v9850_v43 = vpop.f32.mrb[64].mxu0 }
0x132a   :  { %v6292_v51 = vpop.f32.mrb[74].mxu1  ;;  %v7937_v45 = vpop.f32.mrb[65].mxu0 }
0x132b   :  { %v7952_v54 = vpop.f32.mrb[75].mxu1  ;;  %v6459_v5 = vsel %vm794_vm9, %v6292_v51, -inf  ;;  %v4403_v45 = vsel %vm794_vm9, %v9641_v40, 0.0 }
0x132c   :  { %6460 = vmax.xlane.f32.xlu1 %v6459_v5  ;;  %v4409_v5 = vsel %vm794_vm9, %v9657_v34, 0.0 }
0x132d   :  { %v6212_v8 = vpop.f32.mrb[66].mxu0 }
0x132e   :  { %v6452_v53 = vpop.f32.mrb[76].mxu1  ;;  %v7947_v63 = vpop.f32.mrb[67].mxu0  ;;  %v6456_v0 = vsel %vm794_vm9, %v6212_v8, -inf }
0x132f   :  { %v7962_v33 = vpop.f32.mrb[77].mxu1  ;;  %6457 = vmax.xlane.f32.xlu0 %v6456_v0  ;;  %v6465_v39 = vsel %vm794_vm9, %v6452_v53, -inf }
0x1331   :  { %v6372_v37 = vpop.f32.mrb[68].mxu0 }
0x1332   :  { %v7957_v46 = vpop.f32.mrb[69].mxu0  ;;  %v6462_v41 = vsel %vm794_vm9, %v6372_v37, -inf }
0x1333   :  { %6466 = vmax.xlane.f32.xlu0 %v6465_v39 }
0x1337   :  { %6463 = vmax.xlane.f32.xlu0 %v6462_v41 }
0x133d   :  { %6570 = vrot.lane.b32.xlu1 %v9593_v61, %s8630_s29  ;;  %v5776_v61 = vsel %vm794_vm9, %v9805_v60, 0.0 }
0x1341   :  { %6647 = vrot.lane.b32.xlu1 %v9633_v28, %s8630_s29  ;;  %v5785_v28 = vsel %vm794_vm9, %v8190_v14, 0.0 }
0x1345   :  { %6724 = vrot.lane.b32.xlu1 %v9637_v29, %s8630_s29  ;;  %v5078_v29 = vsel %vm794_vm9, %v9749_v12, 0.0 }
0x134d   :  { %6493 = vrot.lane.b32.xlu0 %v9598_v4, %s8630_s29  ;;  %v5779_v4 = vsel %vm794_vm9, %v9801_v25, 0.0 }
0x1369   :  { %5076 = vadd.xlane.f32.xlu1 %v5075_v2 }
0x136c   :  { %5073 = vadd.xlane.f32.xlu0 %v5072_v42 }
0x136d   :  { %5082 = vadd.xlane.f32.xlu1 %v5081_v52 }
0x1370   :  { %5777 = vadd.xlane.f32.xlu0 %v5776_v61 }
0x1371   :  { %5786 = vadd.xlane.f32.xlu1 %v5785_v28 }
0x1374   :  { %5780 = vadd.xlane.f32.xlu0 %v5779_v4 }
0x1378   :  { %5079 = vadd.xlane.f32.xlu0 %v5078_v29 }
0x137c   :  { %5783 = vadd.xlane.f32.xlu0 %v5782_v47 }
0x13b9   :  { %v6461_v58 = vpop.xlane.xlu1 %6460 }
0x13ba   :  { %v6469_v62 = vsub.f32 %v6292_v51, %v6461_v58 }
0x13bc   :  { %v6474_v55 = vmul.f32 1.442695, %v6469_v62  ;;  %v6458_v15 = vpop.xlane.xlu0 %6457 }
0x13bd   :  { %v6571_v44 = vpop.permute.xlu1 %6570  ;;  %v6468_v38 = vsub.f32 %v6212_v8, %v6458_v15  ;;  %v4406_v8 = vsel %vm794_vm9, %v9659_v59, 0.0 }
0x13be   :  { %8193 = vpow2.f32 %v6474_v55  ;;  %7969 = vmatpush3.msra.mxu1 %v6571_v44 }
0x13bf   :  { %v6472_v24 = vmul.f32 1.442695, %v6468_v38  ;;  %7978 = vmatprep.subr.mxu1 %v8626_v36 }
0x13c0   :  { %v6467_v49 = vpop.xlane.xlu0 %6466 }
0x13c1   :  { %8195 = vpow2.f32 %v6472_v24  ;;  %v6471_v25 = vsub.f32 %v6452_v53, %v6467_v49  ;;  %v6648_v12 = vpop.permute.xlu1 %6647 }
0x13c3   :  { %v6478_v60 = vmul.f32 1.442695, %v6471_v25 }
0x13c4   :  { %v6464_v11 = vpop.xlane.xlu0 %6463 }
0x13c5   :  { %8197 = vpow2.f32 %v6478_v60  ;;  %v6470_v14 = vsub.f32 %v6372_v37, %v6464_v11  ;;  %v6725_v50 = vpop.permute.xlu1 %6724 }
0x13c7   :  { %v6476_v18 = vmul.f32 1.442695, %v6470_v14 }
0x13c8   :  { %v8194_v35 = vpop.eup %8193  ;;  %v6494_v16 = vpop.permute.xlu0 %6493 }
0x13c9   :  { %8199 = vpow2.f32 %v6476_v18  ;;  %7971 = vmatmul.mubr.msk.f32.vlgmr.msra.gmra.mrb[78].mxu1 %vm794_vm9, %v8194_v35  ;;  %v6483_v27 = vsel %vm794_vm9, %v8194_v35, 0.0  ;;  %7964 = vmatpush3.msra.mxu0 %v6494_v16 }
0x13ca   :  { %7979 = vmatpush3.msra.mxu1 %v6725_v50  ;;  %6484 = vadd.xlane.f32.xlu1 %v6483_v27  ;;  %v6832_v50 = vld [vmem:[#allocation30] sm:$0xff]  ;;  %v6833_v27 = vld [vmem:[#allocation30 + $0x8] sm:$0xff] }
0x13cb   :  { %v8196_v22 = vpop.eup %8195  ;;  %7973 = vmatprep.subr.mxu0 %v8626_v36  ;;  %7980 = vmatprep.mubr.msk.f32.mxu1 %vm8627_vm8, %v8626_v36 }
0x13cc   :  { %7966 = vmatmul.mubr.msk.f32.vlgmr.msra.gmra.mrb[70].mxu0 %vm794_vm9, %v8196_v22  ;;  %v6480_v23 = vsel %vm794_vm9, %v8196_v22, 0.0  ;;  %v8053_v22 = vpack.c.bf16 %v6833_v27, %v6832_v50 }
0x13cd   :  { %7974 = vmatpush3.msra.mxu0 %v6648_v12  ;;  %6481 = vadd.xlane.f32.xlu0 %v6480_v23  ;;  %v6834_v23 = vld [vmem:[#allocation30 + $0x10] sm:$0xff] }
0x13ce   :  { %7975 = vmatprep.mubr.msk.f32.mxu0 %vm8627_vm8, %v8626_v36  ;;  %v4400_v36 = vsel %vm794_vm9, %v9643_v31, 0.0  ;;  %8054 = vmatprep.subr.bf16.mxu0 %v8053_v22 }
0x13cf   :  { %v8198_v26 = vpop.eup %8197 }
0x13d0   :  { %7981 = vmatmul.mubr.msk.f32.vlgmr.msra.gmra.mrb[80].mxu1 %vm794_vm9, %v8198_v26  ;;  %v6489_v13 = vsel %vm794_vm9, %v8198_v26, 0.0  ;;  %v6835_v26 = vld [vmem:[#allocation30 + $0x18] sm:$0xff] }
0x13d1   :  { %6490 = vadd.xlane.f32.xlu1 %v6489_v13  ;;  %v8057_v13 = vpack.c.bf16 %v6835_v26, %v6834_v23 }
0x13d3   :  { %v8200_v51 = vpop.eup %8199 }
0x13d4   :  { %7976 = vmatmul.mubr.msk.f32.vlgmr.msra.gmra.mrb[72].mxu0 %vm794_vm9, %v8200_v51  ;;  %v6486_v54 = vsel %vm794_vm9, %v8200_v51, 0.0 }
0x13d5   :  { %4404 = vadd.xlane.f32.xlu1 %v4403_v45  ;;  %6487 = vadd.xlane.f32.xlu0 %v6486_v54 }
0x13d6   :  { %8056 = vmatpush3.bf16.msra.mxu0 %v8053_v22 }
0x13d7   :  { %8058 = vmatprep.subr.bf16.mxu0 %v8057_v13 }
0x13d9   :  { %4410 = vadd.xlane.f32.xlu1 %v4409_v5  ;;  %4401 = vadd.xlane.f32.xlu0 %v4400_v36 }
0x13da   :  { %8060 = vmatpush3.bf16.msra.mxu0 %v8057_v13 }
0x13dd   :  { %4407 = vadd.xlane.f32.xlu0 %v4406_v8 }
0x13f6   :  { %v5077_v53 = vpop.xlane.xlu1 %5076 }
0x13f7   :  { %8201 = vrcp.f32 %v5077_v53 }
0x13f9   :  { %v5074_v63 = vpop.xlane.xlu0 %5073 }
0x13fa   :  { %8203 = vrcp.f32 %v5074_v63  ;;  %v5083_v0 = vpop.xlane.xlu1 %5082 }
0x13fd   :  { %v5778_v40 = vpop.xlane.xlu0 %5777 }
0x13fe   :  { %8205 = vrcp.f32 %v5778_v40  ;;  %v5787_v31 = vpop.xlane.xlu1 %5786 }
0x1401   :  { %v8202_v33 = vpop.eup %8201  ;;  %v5781_v37 = vpop.xlane.xlu0 %5780 }
0x1402   :  { %8207 = vrcp.f32 %v5781_v37  ;;  %v5397_v34 = vmul.f32 %v8202_v33, %v9777_v20 }
0x1403   :  { %8209 = vrcp.f32 %v5083_v0 }
0x1404   :  { %v8204_v46 = vpop.eup %8203  ;;  %5406 = vrot.lane.b32.xlu1 %v5397_v34, %s8611_s28 }
0x1405   :  { %v5080_v39 = vpop.xlane.xlu0 %5079  ;;  %v5396_v59 = vmul.f32 %v8204_v46, %v9779_v21 }
0x1406   :  { %8211 = vrcp.f32 %v5080_v39 }
0x1407   :  { %5404 = vrot.lane.b32.xlu0 %v5396_v59, %s8611_s28  ;;  %8213 = vrcp.f32 %v5787_v31 }
0x1408   :  { %v8206_v41 = vpop.eup %8205 }
0x1409   :  { %v5784_v2 = vpop.xlane.xlu0 %5783  ;;  %v6100_v42 = vmul.f32 %v8206_v41, %v9846_v56 }
0x140a   :  { %8215 = vrcp.f32 %v5784_v2 }
0x140b   :  { %6108 = vrot.lane.b32.xlu1 %v6100_v42, %s8631_s22 }
0x140c   :  { %v8208_v20 = vpop.eup %8207 }
0x140d   :  { %v6101_v52 = vmul.f32 %v8208_v20, %v9844_v10  ;;  %v8210_v61 = vpop.eup %8209 }
0x140e   :  { %v5399_v21 = vmul.f32 %v8210_v61, %v9781_v9 }
0x140f   :  { %6110 = vrot.lane.b32.xlu1 %v6101_v52, %s8631_s22 }
0x1410   :  { %v8212_v28 = vpop.eup %8211 }
0x1411   :  { %v5398_v4 = vmul.f32 %v8212_v28, %v9783_v7  ;;  %v8214_v29 = vpop.eup %8213 }
0x1412   :  { %v6103_v47 = vmul.f32 %v8214_v29, %v9848_v6  ;;  %v6949_v29 = vlaneseq }
0x1413   :  { %5410 = vrot.lane.b32.xlu1 %v5399_v21, %s8611_s28  ;;  %5408 = vrot.lane.b32.xlu0 %v5398_v4, %s8611_s28  ;;  %v8633_v21 = vmov 1966171168  }
0x1414   :  { %v8216_v56 = vpop.eup %8215  ;;  %v6947_v4 = vunpack.c.l.s4 %v8633_v21 }
0x1415   :  { %v6102_v58 = vmul.f32 %v8216_v56, %v9850_v43 }
0x1416   :  { %v6948_v56 = vunpack.c.0.s8 %v6947_v4 }
0x1417   :  { %6114 = vrot.lane.b32.xlu1 %v6103_v47, %s8631_s22  ;;  %6112 = vrot.lane.b32.xlu0 %v6102_v58, %s8631_s22  ;;  %v6950_v47 = vshrl.u32 %v6949_v29, 7  ;;  %v7368_v58 = vld [vmem:[%s10045_s20] ss:$0 sm:$0xff]  ;;  %s8634_s20 = smov [#allocation31]  }
0x1418   :  { %s7214_s7 = sshll.u32 %s8634_s20, 4  ;;  %s7215_s7 = int_to_ptr.vmem [resolvable:$true] %s7214_s7 }
0x1419   :  { %s8567_s30 = scalar_lea.vmem %s7215_s7, 512  ;;  %p8572_p9 = scmp.lt.s32.totalorder %s7215_s7, %s7215_s7 }
0x141a   :  { %p8568_p8 = scmp.ne.s32.totalorder %s7215_s7, %s8567_s30  ;;  %p8573_p10 = scmp.lt.s32.totalorder %s8567_s30, %s8567_s30 }
0x141c   :  { %p8574_p11 = por %p8573_p10, %p8572_p9 }
0x141e   :  { %p8575_p12 = pnand %p8574_p11, %p8568_p8 }
0x1457   :  { %v6485_v10 = vpop.xlane.xlu1 %6484 }
0x145a   :  { %v6482_v62 = vpop.xlane.xlu0 %6481 }
0x145e   :  { %v6491_v55 = vpop.xlane.xlu1 %6490 }
0x1462   :  { %v4405_v9 = vpop.xlane.xlu1 %4404  ;;  %v6488_v15 = vpop.xlane.xlu0 %6487 }
0x1463   :  { %8217 = vrcp.f32 %v4405_v9 }
0x1466   :  { %v4411_v7 = vpop.xlane.xlu1 %4410  ;;  %v4402_v44 = vpop.xlane.xlu0 %4401 }
0x1467   :  { %8219 = vrcp.f32 %v4411_v7 }
0x1468   :  { %8221 = vrcp.f32 %v4402_v44 }
0x146a   :  { %v4408_v38 = vpop.xlane.xlu0 %4407 }
0x146b   :  { %8223 = vrcp.f32 %v4408_v38 }
0x146c   :  { %8225 = vrcp.f32 %v6485_v10 }
0x146d   :  { %v8218_v24 = vpop.eup %8217  ;;  %8227 = vrcp.f32 %v6482_v62 }
0x146e   :  { %v4709_v6 = vmul.f32 %v8218_v24, %v9691_v57  ;;  %8229 = vrcp.f32 %v6491_v55  ;;  %v9948_v55 = vsub.s32 %v6948_v56, %v6950_v47 }
0x146f   :  { %8231 = vrcp.f32 %v6488_v15 }
0x1470   :  { %4713 = vst.msk [vmem:[#allocation6 + $0x8] sm:$0xff] %vm794_vm9, %v4709_v6 }
0x1471   :  { %v8220_v43 = vpop.eup %8219 }
0x1472   :  { %v8222_v49 = vpop.eup %8221  ;;  %v4711_v25 = vmul.f32 %v8220_v43, %v9695_v48 }
0x1473   :  { %v4708_v12 = vmul.f32 %v8222_v49, %v9693_v17 }
0x1474   :  { %4715 = vst.msk [vmem:[#allocation6 + $0x18] sm:$0xff] %vm794_vm9, %v4711_v25 }
0x1475   :  { %v8224_v60 = vpop.eup %8223  ;;  %4712 = vst.msk [vmem:[#allocation6] sm:$0xff] %vm794_vm9, %v4708_v12 }
0x1476   :  { %v4710_v11 = vmul.f32 %v8224_v60, %v9697_v19  ;;  %v5407_v14 = vpop.permute.xlu1 %5406  ;;  %v8226_v51 = vpop.eup %8225 }
0x1477   :  { %5417 = vst.msk [vmem:[#allocation6 + $0x8] sm:$0xff] %vm2139_vm10, %v5407_v14  ;;  %v8228_v36 = vpop.eup %8227 }
0x1478   :  { %4714 = vst.msk [vmem:[#allocation6 + $0x10] sm:$0xff] %vm794_vm9, %v4710_v11  ;;  %v8230_v40 = vpop.eup %8229 }
0x1479   :  { %v5405_v57 = vpop.permute.xlu0 %5404  ;;  %v8232_v34 = vpop.eup %8231 }
0x147a   :  { %5416 = vst.msk [vmem:[#allocation6] sm:$0xff] %vm2139_vm10, %v5405_v57 }
0x147d   :  { %v6109_v18 = vpop.permute.xlu1 %6108 }
0x147e   :  { %6120 = vst.msk [vmem:[#allocation6] sm:$0xff] %vm2844_vm11, %v6109_v18 }
0x1481   :  { %v6111_v48 = vpop.permute.xlu1 %6110 }
0x1482   :  { %6121 = vst.msk [vmem:[#allocation6 + $0x8] sm:$0xff] %vm2844_vm11, %v6111_v48 }
0x1485   :  { %v5411_v17 = vpop.permute.xlu1 %5410  ;;  %v5409_v35 = vpop.permute.xlu0 %5408 }
0x1486   :  { %5419 = vst.msk [vmem:[#allocation6 + $0x18] sm:$0xff] %vm2139_vm10, %v5411_v17  ;;  %5418 = vst.msk [vmem:[#allocation6 + $0x10] sm:$0xff] %vm2139_vm10, %v5409_v35 }
0x1489   :  { %v6115_v19 = vpop.permute.xlu1 %6114  ;;  %v6113_v16 = vpop.permute.xlu0 %6112 }
0x148a   :  { %6123 = vst.msk [vmem:[#allocation6 + $0x18] sm:$0xff] %vm2844_vm11, %v6115_v19  ;;  %6122 = vst.msk [vmem:[#allocation6 + $0x10] sm:$0xff] %vm2844_vm11, %v6113_v16 }
0x149c   :  { %v6642_v45 = vpop.f32.mrb[78].mxu1 }
0x149d   :  { %v6805_v54 = vmul.f32 %v8226_v51, %v6642_v45  ;;  %v7972_v5 = vpop.f32.mrb[79].mxu1 }
0x149f   :  { %6814 = vrot.lane.b32.xlu1 %v6805_v54, %s8632_s8  ;;  %v6565_v8 = vpop.f32.mrb[70].mxu0 }
0x14a0   :  { %v6804_v53 = vmul.f32 %v8228_v36, %v6565_v8  ;;  %v7967_v63 = vpop.f32.mrb[71].mxu0 }
0x14a2   :  { %6812 = vrot.lane.b32.xlu0 %v6804_v53, %s8632_s8 }
0x14a3   :  { %v6796_v0 = vpop.f32.mrb[80].mxu1 }
0x14a4   :  { %v6807_v33 = vmul.f32 %v8230_v40, %v6796_v0  ;;  %v7982_v37 = vpop.f32.mrb[81].mxu1 }
0x14a6   :  { %6818 = vrot.lane.b32.xlu1 %v6807_v33, %s8632_s8 }
0x14a7   :  { %v6719_v46 = vpop.f32.mrb[72].mxu0 }
0x14a8   :  { %v6806_v31 = vmul.f32 %v8232_v34, %v6719_v46  ;;  %v7977_v39 = vpop.f32.mrb[73].mxu0 }
0x14aa   :  { %6816 = vrot.lane.b32.xlu0 %v6806_v31, %s8632_s8 }
0x1511   :  { %v6815_v59 = vpop.permute.xlu1 %6814 }
0x1512   :  { %6825 = vst.msk [vmem:[#allocation6 + $0x8] sm:$0xff] %vm3549_vm12, %v6815_v59 }
0x1514   :  { %v6813_v41 = vpop.permute.xlu0 %6812 }
0x1515   :  { %6824 = vst.msk [vmem:[#allocation6] sm:$0xff] %vm3549_vm12, %v6813_v41 }
0x1518   :  { %v6819_v2 = vpop.permute.xlu1 %6818 }
0x1519   :  { %6827 = vst.msk [vmem:[#allocation6 + $0x18] sm:$0xff] %vm3549_vm12, %v6819_v2  ;;  %v6829_v52 = vld [vmem:[#allocation6 + $0x8] sm:$0xff] }
0x151c   :  { %v6817_v42 = vpop.permute.xlu0 %6816  ;;  %v6828_v20 = vld [vmem:[#allocation6] sm:$0xff] }
0x151d   :  { %6826 = vst.msk [vmem:[#allocation6 + $0x10] sm:$0xff] %vm3549_vm12, %v6817_v42  ;;  %7991 = vmatprep.mubr.msk.f32.mxu0 %vm290_vm7, %v6828_v20 }
0x151e   :  { %7992 = vmatmul.mubr.msk.f32.vlgmr.msra.gmra.mrb[74].mxu0 %vm290_vm7, %v6829_v52 }
0x1520   :  { %v6831_v28 = vld [vmem:[#allocation6 + $0x18] sm:$0xff] }
0x1524   :  { %v6830_v61 = vld [vmem:[#allocation6 + $0x10] sm:$0xff] }
0x1525   :  { %7994 = vmatprep.mubr.msk.f32.mxu0 %vm290_vm7, %v6830_v61 }
0x1526   :  { %7995 = vmatmul.mubr.msk.f32.gmra.mrb[76].mxu0 %vm290_vm7, %v6831_v28 }
0x15f1   :  { %v7993_v10 = vpop.f32.mrb[74].mxu0 }
0x15f2   :  { %v6927_v62 = vadd.f32 %v7993_v10, %v7368_v58  ;;  %v6921_v9 = vpop.f32.mrb[75].mxu0 }
0x15f3   :  { %v6922_v15 = vadd.f32 %v7368_v58, %v6921_v9 }
0x15f4   :  { %v6941_v7 = vadd.f32 %v6927_v62, %v9503_v3 }
0x15f5   :  { %v6940_v44 = vadd.f32 %v6922_v15, %v9501_v1 }
0x15f6   :  { %v7012_v38 = vcombine.high %v6941_v7, %v6941_v7  ;;  %v7019_v24 = vrot.slane %v6941_v7, %v9948_v55 }
0x15f7   :  { %v6945_v6 = vcombine.high %v6940_v44, %v6940_v44  ;;  %v6952_v43 = vrot.slane %v6940_v44, %v9948_v55 }
0x15f8   :  { %v7026_v49 = vrot.slane %v7012_v38, %v9948_v55  ;;  %v7027_v25 = vcombine.high %v7019_v24, %v7019_v24  ;;  %v7035_v12 = vrot.slane %v7019_v24, %v9948_v55 }
0x15f9   :  { %v6959_v60 = vrot.slane %v6945_v6, %v9948_v55  ;;  %v6960_v11 = vcombine.high %v6952_v43, %v6952_v43  ;;  %v6968_v14 = vrot.slane %v6952_v43, %v9948_v55  ;;  %v7996_v3 = vpop.f32.mrb[76].mxu0 }
0x15fa   :  { %v7028_v57 = vcombine.high %v7026_v49, %v7026_v49  ;;  %v7042_v1 = vrot.slane %v7026_v49, %v9948_v55  ;;  %v7049_v18 = vrot.slane %v7027_v25, %v9948_v55  ;;  %v7057_v48 = vcombine.high %v7035_v12, %v7035_v12  ;;  %7069 = vst.msk [vmem:[#allocation31 + $0x1] sm:$0x1] %vm7002_vm13, %v7035_v12  ;;  %v6931_v17 = vpop.f32.mrb[77].mxu0 }
0x15fb   :  { %v6961_v35 = vcombine.high %v6959_v60, %v6959_v60  ;;  %v6975_v19 = vrot.slane %v6959_v60, %v9948_v55  ;;  %v6982_v16 = vrot.slane %v6960_v11, %v9948_v55  ;;  %v6990_v50 = vcombine.high %v6968_v14, %v6968_v14  ;;  %7003 = vst.msk [vmem:[#allocation31] sm:$0x1] %vm7002_vm13, %v6968_v14 }
0x15fc   :  { %v7056_v27 = vrot.slane %v7028_v57, %v9948_v55  ;;  %v7058_v22 = vcombine.high %v7042_v1, %v7042_v1  ;;  %v7059_v23 = vcombine.high %v7049_v18, %v7049_v18  ;;  %7070 = vst.msk [vmem:[#allocation31 + $0x5] sm:$0x1] %vm7002_vm13, %v7049_v18  ;;  %7071 = vst.msk [vmem:[#allocation31 + $0x9] sm:$0x1] %vm7002_vm13, %v7057_v48 }
0x15fd   :  { %7073 = vst.msk [vmem:[#allocation31 + $0x11] sm:$0x1] %vm7002_vm13, %v7042_v1  ;;  %v6937_v26 = vadd.f32 %v7996_v3, %v7368_v58  ;;  %v6989_v13 = vrot.slane %v6961_v35, %v9948_v55  ;;  %v6991_v51 = vcombine.high %v6975_v19, %v6975_v19  ;;  %v6992_v45 = vcombine.high %v6982_v16, %v6982_v16 }
0x15fe   :  { %7004 = vst.msk [vmem:[#allocation31 + $0x4] sm:$0x1] %vm7002_vm13, %v6982_v16  ;;  %7005 = vst.msk [vmem:[#allocation31 + $0x8] sm:$0x1] %vm7002_vm13, %v6990_v50  ;;  %v6932_v54 = vadd.f32 %v7368_v58, %v6931_v17  ;;  %v7060_v5 = vcombine.high %v7056_v27, %v7056_v27 }
0x15ff   :  { %7007 = vst.msk [vmem:[#allocation31 + $0x10] sm:$0x1] %vm7002_vm13, %v6975_v19  ;;  %7072 = vst.msk [vmem:[#allocation31 + $0xd] sm:$0x1] %vm7002_vm13, %v7059_v23  ;;  %v6943_v36 = vadd.f32 %v6937_v26, %v9522_v32  ;;  %v6993_v8 = vcombine.high %v6989_v13, %v6989_v13 }
0x1600   :  { %7074 = vst.msk [vmem:[#allocation31 + $0x15] sm:$0x1] %vm7002_vm13, %v7056_v27  ;;  %7075 = vst.msk [vmem:[#allocation31 + $0x19] sm:$0x1] %vm7002_vm13, %v7058_v22  ;;  %v6942_v53 = vadd.f32 %v6932_v54, %v9515_v30 }
0x1601   :  { %7006 = vst.msk [vmem:[#allocation31 + $0xc] sm:$0x1] %vm7002_vm13, %v6992_v45  ;;  %7008 = vst.msk [vmem:[#allocation31 + $0x14] sm:$0x1] %vm7002_vm13, %v6989_v13  ;;  %v7144_v63 = vcombine.high %v6943_v36, %v6943_v36  ;;  %v7151_v40 = vrot.slane %v6943_v36, %v9948_v55 }
0x1602   :  { %7009 = vst.msk [vmem:[#allocation31 + $0x18] sm:$0x1] %vm7002_vm13, %v6991_v51  ;;  %7076 = vst.msk [vmem:[#allocation31 + $0x1d] sm:$0x1] %vm7002_vm13, %v7060_v5  ;;  %v7078_v0 = vcombine.high %v6942_v53, %v6942_v53  ;;  %v7085_v33 = vrot.slane %v6942_v53, %v9948_v55 }
0x1603   :  { %7010 = vst.msk [vmem:[#allocation31 + $0x1c] sm:$0x1] %vm7002_vm13, %v6993_v8  ;;  %v7158_v32 = vrot.slane %v7144_v63, %v9948_v55  ;;  %v7159_v37 = vcombine.high %v7151_v40, %v7151_v40  ;;  %v7167_v34 = vrot.slane %v7151_v40, %v9948_v55 }
0x1604   :  { %v7092_v46 = vrot.slane %v7078_v0, %v9948_v55  ;;  %v7093_v31 = vcombine.high %v7085_v33, %v7085_v33  ;;  %v7101_v30 = vrot.slane %v7085_v33, %v9948_v55 }
0x1605   :  { %v7160_v39 = vcombine.high %v7158_v32, %v7158_v32  ;;  %v7174_v59 = vrot.slane %v7158_v32, %v9948_v55  ;;  %v7181_v41 = vrot.slane %v7159_v37, %v9948_v55  ;;  %v7189_v2 = vcombine.high %v7167_v34, %v7167_v34  ;;  %7201 = vst.msk [vmem:[#allocation31 + $0x3] sm:$0x1] %vm7002_vm13, %v7167_v34 }
0x1606   :  { %v7094_v42 = vcombine.high %v7092_v46, %v7092_v46  ;;  %v7108_v20 = vrot.slane %v7092_v46, %v9948_v55  ;;  %v7115_v52 = vrot.slane %v7093_v31, %v9948_v55  ;;  %v7123_v61 = vcombine.high %v7101_v30, %v7101_v30  ;;  %7135 = vst.msk [vmem:[#allocation31 + $0x2] sm:$0x1] %vm7002_vm13, %v7101_v30 }
0x1607   :  { %v7188_v28 = vrot.slane %v7160_v39, %v9948_v55  ;;  %v7190_v21 = vcombine.high %v7174_v59, %v7174_v59  ;;  %v7191_v4 = vcombine.high %v7181_v41, %v7181_v41  ;;  %7202 = vst.msk [vmem:[#allocation31 + $0x7] sm:$0x1] %vm7002_vm13, %v7181_v41  ;;  %7203 = vst.msk [vmem:[#allocation31 + $0xb] sm:$0x1] %vm7002_vm13, %v7189_v2 }
0x1608   :  { %7205 = vst.msk [vmem:[#allocation31 + $0x13] sm:$0x1] %vm7002_vm13, %v7174_v59  ;;  %v7122_v29 = vrot.slane %v7094_v42, %v9948_v55  ;;  %v7124_v56 = vcombine.high %v7108_v20, %v7108_v20  ;;  %v7125_v47 = vcombine.high %v7115_v52, %v7115_v52  ;;  %7136 = vst.msk [vmem:[#allocation31 + $0x6] sm:$0x1] %vm7002_vm13, %v7115_v52 }
0x1609   :  { %7137 = vst.msk [vmem:[#allocation31 + $0xa] sm:$0x1] %vm7002_vm13, %v7123_v61  ;;  %7139 = vst.msk [vmem:[#allocation31 + $0x12] sm:$0x1] %vm7002_vm13, %v7108_v20  ;;  %v7192_v58 = vcombine.high %v7188_v28, %v7188_v28 }
0x160a   :  { %7204 = vst.msk [vmem:[#allocation31 + $0xf] sm:$0x1] %vm7002_vm13, %v7191_v4  ;;  %7206 = vst.msk [vmem:[#allocation31 + $0x17] sm:$0x1] %vm7002_vm13, %v7188_v28  ;;  %v7126_v10 = vcombine.high %v7122_v29, %v7122_v29 }
0x160b   :  { %7207 = vst.msk [vmem:[#allocation31 + $0x1b] sm:$0x1] %vm7002_vm13, %v7190_v21  ;;  %7138 = vst.msk [vmem:[#allocation31 + $0xe] sm:$0x1] %vm7002_vm13, %v7125_v47 }
0x160c   :  { %7140 = vst.msk [vmem:[#allocation31 + $0x16] sm:$0x1] %vm7002_vm13, %v7122_v29  ;;  %7141 = vst.msk [vmem:[#allocation31 + $0x1a] sm:$0x1] %vm7002_vm13, %v7124_v56 }
0x160d   :  { %7208 = vst.msk [vmem:[#allocation31 + $0x1f] sm:$0x1] %vm7002_vm13, %v7192_v58  ;;  %7142 = vst.msk [vmem:[#allocation31 + $0x1e] sm:$0x1] %vm7002_vm13, %v7126_v10 }
0x160e   :  { %8578 = shalt.err (!%p8575_p12)
}
0x160f   :  { %s10067_s11 = sld [smem:[#allocation47_spill]] }
0x1615   :  { %s8579_s29 = scalar_lea.hbm %s10067_s11, 512 }
0x1616   :  { %p8580_p13 = scmp.ne.s32.totalorder %s10067_s11, %s8579_s29  ;;  %p8583_p0 = scmp.lt.u32.totalorder %s8579_s29, %s10067_s11 }
0x1618   :  { %p8585_p1 = pnand %p8583_p0, %p8580_p13 }
0x161a   :  { %8588 = shalt.err (!%p8585_p1)
}
0x161b   :  { %7220 = dma.vmem_to_hbm [thread:$0]  %s7215_s7, 512, %s10067_s11, [#allocation9], %s8617_s16, %s8617_s16, %s8618_s25  }
0x161c   :  { %8605 = dma.done.wait [#allocation9], 512  }
0x161d   :  { %8606 = vsyncadd [#allocation9], 4294966784 }
0x161e   :  { %7224 = vsyncpa [#allocation8], 1 }
0x161f   :  { %7225 = vsyncpa [#allocation11], 1 }
0x1620   :  { %7226 = vsyncpa [#allocation14], 1 }
0x1621   :  { %7227 = vsyncpa [#allocation17], 1 }
0x1622   :  { %7228 = vsyncpa [#allocation20], 1 }
0x1623   :  { %7229 = vsyncpa [#allocation23], 1 }
0x1624   :  { %7230 = vsyncpa [#allocation26], 1 }
0x1625   :  { %7231 = vsyncpa [#allocation29], 1 }
0x1626   :  { %7232 = vsyncpa [#allocation9], 1 }

</bundles_post_ra>
